<compile_context>
chip_gen: v5e
topology: v5e:2x2
jax: 0.10.0
libtpu: 0.0.40
codegen_flags: <defaults>
</compile_context>

<pallas_src>
import functools

import jax
import jax.numpy as jnp
from jax import lax
from jax.experimental import pallas as pl
from jax.experimental.pallas import tpu as pltpu

LANE = 128


def _rup(x):
    return ((x + LANE - 1) // LANE) * LANE


def _one_hot_bf16(cond):
    # bool -> {0,1} in bf16 (exact values); route through f32 to stay on the proven
    # bool->f32 convert path, then a trivial f32->bf16 pack.
    return cond.astype(jnp.float32).astype(jnp.bfloat16)


# ------------------------------ fused Pallas kernel ---------------------------------

def fused_kernel(srcc_ref, dstc_ref, dstr_ref, e_ref, h_ref,
                 wea1, bea1, wea2, bea2,
                 wsrc, wdst, bsd,
                 wte1, bte1, wte2, bte2,
                 wpd, wpe, bpde, wphi, bphi,
                 out_ref, agg_acc):
    f32 = jnp.float32
    bf16 = jnp.bfloat16
    k = pl.program_id(0)

    @pl.when(k == 0)
    def _():
        agg_acc[...] = jnp.zeros_like(agg_acc)

    h = h_ref[...]                                   # (N, Fn) bf16, resident node table
    n_nodes = h.shape[0]
    tile_e = e_ref.shape[0]

    # ---- in-kernel gather of h[src] / h[dst]: one-hot (tile_e, N) @ (N, Fn) matmuls.
    #      src/dst arrive as (tile_e, 1) columns so they broadcast along lanes. ----
    cols = lax.broadcasted_iota(jnp.int32, (tile_e, n_nodes), 1)
    oh_src = _one_hot_bf16(cols == srcc_ref[...])    # (tile_e, N)
    oh_dst = _one_hot_bf16(cols == dstc_ref[...])    # (tile_e, N)
    hs = jnp.dot(oh_src, h, preferred_element_type=f32)   # exact copies of bf16 rows
    hd = jnp.dot(oh_dst, h, preferred_element_type=f32)

    # ---- edge_affine: Linear -> ReLU -> Linear (bf16 MXU operands, f32 accumulate) ----
    e = e_ref[...]                                   # (tile_e, Fe) bf16, un-padded lanes
    ec = jnp.maximum(jnp.dot(e, wea1[...], preferred_element_type=f32) + bea1[...], 0.0)
    ec = jnp.dot(ec.astype(bf16), wea2[...], preferred_element_type=f32) + bea2[...]

    # ---- src_affine + dst_affine (biases pre-summed host-side into bsd) ----
    sd = (jnp.dot(hs.astype(bf16), wsrc[...], preferred_element_type=f32)
          + jnp.dot(hd.astype(bf16), wdst[...], preferred_element_type=f32)
          + bsd[...])

    # ---- theta_edge: ReLU -> Linear -> ReLU -> Linear ----
    z = jnp.maximum(ec + sd, 0.0)
    z = jnp.maximum(jnp.dot(z.astype(bf16), wte1[...], preferred_element_type=f32)
                    + bte1[...], 0.0)
    e_emb = jnp.dot(z.astype(bf16), wte2[...], preferred_element_type=f32) + bte2[...]

    # ---- fn.u_mul_e('h','e_emb','m') + fn.sum('m','h'): bf16 one-hot scatter matmul,
    #      f32 MXU accumulation into the VMEM-resident aggregator. ----
    msg = (hs * e_emb).astype(bf16)                  # (tile_e, Fn)
    rows = lax.broadcasted_iota(jnp.int32, (n_nodes, tile_e), 0)
    oh_dst_t = _one_hot_bf16(rows == dstr_ref[...])  # (N, tile_e), row idx broadcast
    agg_acc[...] += jnp.dot(oh_dst_t, msg, preferred_element_type=f32)

    # ---- node epilogue: phi( ReLU( phi_dst(h) + phi_edge(agg) ) ), runs once ----
    @pl.when(k == pl.num_programs(0) - 1)
    def _():
        t = (jnp.dot(h, wpd[...], preferred_element_type=f32)
             + jnp.dot(agg_acc[...].astype(bf16), wpe[...], preferred_element_type=f32)
             + bpde[...])
        t = jnp.maximum(t, 0.0)
        out_ref[...] = (jnp.dot(t.astype(bf16), wphi[...], preferred_element_type=f32)
                        + bphi[...])


# -------------------------------- host-side wrapper ----------------------------------

_W_ORDER = ('wea1', 'bea1', 'wea2', 'bea2', 'wsrc', 'wdst', 'bsd',
            'wte1', 'bte1', 'wte2', 'bte2',
            'wpd', 'wpe', 'bpde', 'wphi', 'bphi')


def _prepare_weights(params, FoP):
    """Matrices in bf16 at their true dims (no K padding), biases in f32.
    Only phi's output dim is lane-padded to 128 so the single output store is
    lane-dense; paired biases are pre-summed (bsrc+bdst, bpd+bpe)."""
    bf = lambda w: w.astype(jnp.bfloat16)
    f32 = lambda b: b.astype(jnp.float32)
    Fo = params['wphi'].shape[1]
    p = dict(
        wea1=bf(params['wea1']), bea1=f32(params['bea1']),
        wea2=bf(params['wea2']), bea2=f32(params['bea2']),
        wsrc=bf(params['wsrc']), wdst=bf(params['wdst']),
        bsd=f32(params['bsrc'] + params['bdst']),
        wte1=bf(params['wte1']), bte1=f32(params['bte1']),
        wte2=bf(params['wte2']), bte2=f32(params['bte2']),
        wpd=bf(params['wpd']), wpe=bf(params['wpe']),
        bpde=f32(params['bpd'] + params['bpe']),
        wphi=bf(jnp.pad(params['wphi'], ((0, 0), (0, FoP - Fo)))),
        bphi=f32(jnp.pad(params['bphi'], ((0, 0), (0, FoP - Fo)))),
    )
    return [p[k] for k in _W_ORDER]


@functools.partial(jax.jit, static_argnames=("tile_e",))
def smooth_conv_forward(node_feat, e_feat, src_idx, dst_idx, params, *, tile_e=512):
    N, Fn = node_feat.shape
    E, Fe = e_feat.shape
    Fo = params['wphi'].shape[1]
    FoP = _rup(Fo)

    # Resident VMEM state: bf16 node table + f32 aggregator + f32 output block.
    # Trivial here; for large graphs (esp. v7x 64 MiB VMEM) add an N-tiling grid axis.
    resident = N * Fn * 2 + N * Fn * 4 + N * FoP * 4
    assert resident < 24 * 1024 * 1024, "node state too large: add an N-tiling grid axis"

    weights = _prepare_weights(params, FoP)

    E_pad = pl.cdiv(E, tile_e) * tile_e
    pad_e = E_pad - E
    h_bf = node_feat.astype(jnp.bfloat16)                        # (N, Fn) resident table
    e_p = jnp.pad(e_feat, ((0, pad_e), (0, 0))).astype(jnp.bfloat16)
    # Padded edges carry src = dst = N (no such node): their one-hot rows/cols are zero.
    src_pad = jnp.pad(src_idx.astype(jnp.int32), (0, pad_e), constant_values=N)
    dst_pad = jnp.pad(dst_idx.astype(jnp.int32), (0, pad_e), constant_values=N)
    src_col = src_pad.reshape(E_pad, 1)          # column layout -> lane broadcast
    dst_col = dst_pad.reshape(E_pad, 1)
    dst_row = dst_pad.reshape(1, E_pad)          # row layout -> sublane broadcast

    full2d = lambda a: pl.BlockSpec(a.shape, lambda k: (0, 0))

    out_p = pl.pallas_call(
        fused_kernel,
        out_shape=jax.ShapeDtypeStruct((N, FoP), jnp.float32),
        grid=(E_pad // tile_e,),
        in_specs=[pl.BlockSpec((tile_e, 1), lambda k: (k, 0)),    # src idx (column)
                  pl.BlockSpec((tile_e, 1), lambda k: (k, 0)),    # dst idx (column)
                  pl.BlockSpec((1, tile_e), lambda k: (0, k)),    # dst idx (row)
                  pl.BlockSpec((tile_e, Fe), lambda k: (k, 0)),   # edge feats, un-padded
                  full2d(h_bf)]                                   # resident node table
                 + [full2d(w) for w in weights],
        out_specs=pl.BlockSpec((N, FoP), lambda k: (0, 0)),       # resident, lane-dense
        scratch_shapes=[pltpu.VMEM((N, Fn), jnp.float32)],        # aggregation accum
        compiler_params=pltpu.CompilerParams(
            dimension_semantics=("arbitrary",)),   # sequential: carried accumulator
    )(src_col, dst_col, dst_row, e_p, h_bf, *weights)
    return out_p[:, :Fo]


# ----------------------------- deterministic parameters ------------------------------

def init_linear(key, fan_in, fan_out):
    kw, kb = jax.random.split(key)
    w = jax.random.normal(kw, (fan_in, fan_out), jnp.float32) / jnp.sqrt(float(fan_in))
    b = 0.01 * jax.random.normal(kb, (1, fan_out), jnp.float32)
    return w, b


def init_params(key, in_node, in_edge, out_node, hidden):
    keys = jax.random.split(key, 9)
    p = {}
    p['wea1'], p['bea1'] = init_linear(keys[0], in_edge, hidden)   # edge_affine L0
    p['wea2'], p['bea2'] = init_linear(keys[1], hidden, hidden)    # edge_affine L1
    p['wsrc'], p['bsrc'] = init_linear(keys[2], in_node, hidden)   # src_affine
    p['wdst'], p['bdst'] = init_linear(keys[3], in_node, hidden)   # dst_affine
    p['wte1'], p['bte1'] = init_linear(keys[4], hidden, hidden)    # theta_edge L0
    p['wte2'], p['bte2'] = init_linear(keys[5], hidden, in_node)   # theta_edge L1
    p['wpd'],  p['bpd']  = init_linear(keys[6], in_node, hidden)   # phi_dst
    p['wpe'],  p['bpe']  = init_linear(keys[7], in_node, hidden)   # phi_edge
    p['wphi'], p['bphi'] = init_linear(keys[8], hidden, out_node)  # phi
    return p


# -------------------------------- pure-JAX references --------------------------------

def _reference(node_feat, e_feat, src_idx, dst_idx, p, *, mixed):
    f32 = jnp.float32

    def lin(x, w, b):
        if mixed:
            x = x.astype(jnp.bfloat16)
            w = w.astype(jnp.bfloat16)
        return jnp.dot(x, w, preferred_element_type=f32) + b

    relu = lambda x: jnp.maximum(x, 0.0)
    h = node_feat.astype(jnp.bfloat16).astype(f32) if mixed else node_feat
    hs, hd = h[src_idx], h[dst_idx]
    ec = lin(relu(lin(e_feat, p['wea1'], p['bea1'])), p['wea2'], p['bea2'])
    sc = lin(hs, p['wsrc'], p['bsrc'])
    dc = lin(hd, p['wdst'], p['bdst'])
    z = relu(ec + sc + dc)
    e_emb = lin(relu(lin(z, p['wte1'], p['bte1'])), p['wte2'], p['bte2'])
    msg = hs * e_emb
    if mixed:
        msg = msg.astype(jnp.bfloat16).astype(f32)
    agg = jnp.zeros_like(h).at[dst_idx].add(msg)
    t = relu(lin(h, p['wpd'], p['bpd']) + lin(agg, p['wpe'], p['bpe']))
    return lin(t, p['wphi'], p['bphi'])


# -------------------------------------- main ------------------------------------------

if __name__ == "__main__":
    # Small deterministic problem.  in_node_feats == hidden_dim so the module's
    # `src_code * e_emb` side-product is shape-consistent (as the PyTorch forward needs).
    # E is deliberately NOT a multiple of tile_e to exercise the padded-edge tail.
    N_NODES, N_EDGES = 64, 1000
    IN_NODE, IN_EDGE, OUT_NODE, HIDDEN = 32, 16, 32, 32

    key = jax.random.PRNGKey(0)
    k_feat, k_efeat, k_src, k_dst, k_param = jax.random.split(key, 5)

    node_feat = jax.random.normal(k_feat, (N_NODES, IN_NODE), jnp.float32)
    e_feat = jax.random.normal(k_efeat, (N_EDGES, IN_EDGE), jnp.float32)
    src_idx = jax.random.randint(k_src, (N_EDGES,), 0, N_NODES, jnp.int32)
    dst_idx = jax.random.randint(k_dst, (N_EDGES,), 0, N_NODES, jnp.int32)
    params = init_params(k_param, IN_NODE, IN_EDGE, OUT_NODE, HIDDEN)

    out = smooth_conv_forward(node_feat, e_feat, src_idx, dst_idx, params, tile_e=512)
    out = jax.block_until_ready(out)
    assert out.shape == (N_NODES, OUT_NODE)

    # 1) tight check against a plain-JAX reference using the kernel's precision policy
    ref_mixed = _reference(node_feat, e_feat, src_idx, dst_idx, params, mixed=True)
    assert jnp.allclose(out, ref_mixed, rtol=1e-2, atol=1e-2), (
        f"mixed-precision mismatch: max abs diff {jnp.max(jnp.abs(out - ref_mixed))}")

    # 2) semantic sanity check against the full-f32 reference (bf16 rounding only)
    ref_f32 = _reference(node_feat, e_feat, src_idx, dst_idx, params, mixed=False)
    rel_err = jnp.linalg.norm(out - ref_f32) / jnp.linalg.norm(ref_f32)
    assert rel_err < 5e-2, f"relative error vs f32 reference too large: {rel_err}"

    print("KERNEL_OK")
</pallas_src>

<mosaic_0001>
module attributes {stable_mosaic.version = 11 : i64} {
  func.func @fused_kernel(%arg0: i32, %arg1: memref<512x1xi32, #tpu.memory_space<vmem>>, %arg2: memref<512x1xi32, #tpu.memory_space<vmem>>, %arg3: memref<1x512xi32, #tpu.memory_space<vmem>>, %arg4: memref<512x16xbf16, #tpu.memory_space<vmem>>, %arg5: memref<64x32xbf16, #tpu.memory_space<vmem>>, %arg6: memref<16x32xbf16, #tpu.memory_space<vmem>>, %arg7: memref<1x32xf32, #tpu.memory_space<vmem>>, %arg8: memref<32x32xbf16, #tpu.memory_space<vmem>>, %arg9: memref<1x32xf32, #tpu.memory_space<vmem>>, %arg10: memref<32x32xbf16, #tpu.memory_space<vmem>>, %arg11: memref<32x32xbf16, #tpu.memory_space<vmem>>, %arg12: memref<1x32xf32, #tpu.memory_space<vmem>>, %arg13: memref<32x32xbf16, #tpu.memory_space<vmem>>, %arg14: memref<1x32xf32, #tpu.memory_space<vmem>>, %arg15: memref<32x32xbf16, #tpu.memory_space<vmem>>, %arg16: memref<1x32xf32, #tpu.memory_space<vmem>>, %arg17: memref<32x32xbf16, #tpu.memory_space<vmem>>, %arg18: memref<32x32xbf16, #tpu.memory_space<vmem>>, %arg19: memref<1x32xf32, #tpu.memory_space<vmem>>, %arg20: memref<32x128xbf16, #tpu.memory_space<vmem>>, %arg21: memref<1x128xf32, #tpu.memory_space<vmem>>, %arg22: memref<64x128xf32, #tpu.memory_space<vmem>>, %arg23: memref<64x32xf32, #tpu.memory_space<vmem>>) attributes {dimension_semantics = [#tpu.dimension_semantics<arbitrary>], iteration_bounds = array<i64: 2>, scalar_prefetch = 0 : i64, scratch_operands = 1 : i64, tpu.core_type = #tpu.core_type<tc>, window_params = [{transform_indices = @transform_0, window_bounds = array<i64: 512, 1>}, {transform_indices = @transform_1, window_bounds = array<i64: 512, 1>}, {transform_indices = @transform_2, window_bounds = array<i64: 1, 512>}, {transform_indices = @transform_3, window_bounds = array<i64: 512, 16>}, {pipeline_mode = #tpu.pipeline_mode<synchronous>, transform_indices = @transform_4, window_bounds = array<i64: 64, 32>}, {pipeline_mode = #tpu.pipeline_mode<synchronous>, transform_indices = @transform_5, window_bounds = array<i64: 16, 32>}, {pipeline_mode = #tpu.pipeline_mode<synchronous>, transform_indices = @transform_6, window_bounds = array<i64: 1, 32>}, {pipeline_mode = #tpu.pipeline_mode<synchronous>, transform_indices = @transform_7, window_bounds = array<i64: 32, 32>}, {pipeline_mode = #tpu.pipeline_mode<synchronous>, transform_indices = @transform_8, window_bounds = array<i64: 1, 32>}, {pipeline_mode = #tpu.pipeline_mode<synchronous>, transform_indices = @transform_9, window_bounds = array<i64: 32, 32>}, {pipeline_mode = #tpu.pipeline_mode<synchronous>, transform_indices = @transform_10, window_bounds = array<i64: 32, 32>}, {pipeline_mode = #tpu.pipeline_mode<synchronous>, transform_indices = @transform_11, window_bounds = array<i64: 1, 32>}, {pipeline_mode = #tpu.pipeline_mode<synchronous>, transform_indices = @transform_12, window_bounds = array<i64: 32, 32>}, {pipeline_mode = #tpu.pipeline_mode<synchronous>, transform_indices = @transform_13, window_bounds = array<i64: 1, 32>}, {pipeline_mode = #tpu.pipeline_mode<synchronous>, transform_indices = @transform_14, window_bounds = array<i64: 32, 32>}, {pipeline_mode = #tpu.pipeline_mode<synchronous>, transform_indices = @transform_15, window_bounds = array<i64: 1, 32>}, {pipeline_mode = #tpu.pipeline_mode<synchronous>, transform_indices = @transform_16, window_bounds = array<i64: 32, 32>}, {pipeline_mode = #tpu.pipeline_mode<synchronous>, transform_indices = @transform_17, window_bounds = array<i64: 32, 32>}, {pipeline_mode = #tpu.pipeline_mode<synchronous>, transform_indices = @transform_18, window_bounds = array<i64: 1, 32>}, {pipeline_mode = #tpu.pipeline_mode<synchronous>, transform_indices = @transform_19, window_bounds = array<i64: 32, 128>}, {pipeline_mode = #tpu.pipeline_mode<synchronous>, transform_indices = @transform_20, window_bounds = array<i64: 1, 128>}, {pipeline_mode = #tpu.pipeline_mode<synchronous>, transform_indices = @transform_21, window_bounds = array<i64: 64, 128>}]} {
    %c0_i32 = arith.constant 0 : i32
    %0 = arith.cmpi eq, %arg0, %c0_i32 : i32
    %1 = arith.extui %0 : i1 to i32
    %c0_i32_0 = arith.constant 0 : i32
    %2 = arith.cmpi ne, %1, %c0_i32_0 : i32
    scf.if %2 {
      %cst_48 = arith.constant 0.000000e+00 : f32
      %76 = vector.broadcast %cst_48 : f32 to vector<64x32xf32>
      %c0_49 = arith.constant 0 : index
      %c0_50 = arith.constant 0 : index
      %77 = vector.load %arg23[%c0_49, %c0_50] : memref<64x32xf32, #tpu.memory_space<vmem>>, vector<64x32xf32>
      tpu.vector_store %arg23[%c0_49, %c0_50], %76 {strides = array<i32>} : memref<64x32xf32, #tpu.memory_space<vmem>>, vector<64x32xf32>,
    } else {
    }
    %c0 = arith.constant 0 : index
    %c0_1 = arith.constant 0 : index
    %3 = vector.load %arg5[%c0, %c0_1] : memref<64x32xbf16, #tpu.memory_space<vmem>>, vector<64x32xbf16>
    %4 = tpu.iota {dimensions = array<i32: 1>} : vector<512x64xi32>
    %c0_2 = arith.constant 0 : index
    %c0_3 = arith.constant 0 : index
    %5 = vector.load %arg1[%c0_2, %c0_3] : memref<512x1xi32, #tpu.memory_space<vmem>>, vector<512x1xi32>
    %6 = vector.broadcast %5 : vector<512x1xi32> to vector<512x64xi32>
    %7 = arith.cmpi eq, %4, %6 : vector<512x64xi32>
    %8 = arith.extui %7 : vector<512x64xi1> to vector<512x64xi32>
    %9 = arith.sitofp %8 : vector<512x64xi32> to vector<512x64xf32>
    %10 = arith.truncf %9 : vector<512x64xf32> to vector<512x64xbf16>
    %c0_4 = arith.constant 0 : index
    %c0_5 = arith.constant 0 : index
    %11 = vector.load %arg2[%c0_4, %c0_5] : memref<512x1xi32, #tpu.memory_space<vmem>>, vector<512x1xi32>
    %12 = vector.broadcast %11 : vector<512x1xi32> to vector<512x64xi32>
    %13 = arith.cmpi eq, %4, %12 : vector<512x64xi32>
    %14 = arith.extui %13 : vector<512x64xi1> to vector<512x64xi32>
    %15 = arith.sitofp %14 : vector<512x64xi32> to vector<512x64xf32>
    %16 = arith.truncf %15 : vector<512x64xf32> to vector<512x64xbf16>
    %cst = arith.constant dense<0.000000e+00> : vector<512x32xf32>
    %17 = tpu.matmul %10, %3, %cst {dimension_numbers = #tpu.dot_dimension_numbers<[1], [0], [0], [1], [0, 0, 1, 1], [], []>} : vector<512x64xbf16>, vector<64x32xbf16>, vector<512x32xf32> -> vector<512x32xf32>
    %cst_6 = arith.constant dense<0.000000e+00> : vector<512x32xf32>
    %18 = tpu.matmul %16, %3, %cst_6 {dimension_numbers = #tpu.dot_dimension_numbers<[1], [0], [0], [1], [0, 0, 1, 1], [], []>} : vector<512x64xbf16>, vector<64x32xbf16>, vector<512x32xf32> -> vector<512x32xf32>
    %c0_7 = arith.constant 0 : index
    %c0_8 = arith.constant 0 : index
    %19 = vector.load %arg4[%c0_7, %c0_8] : memref<512x16xbf16, #tpu.memory_space<vmem>>, vector<512x16xbf16>
    %c0_9 = arith.constant 0 : index
    %c0_10 = arith.constant 0 : index
    %20 = vector.load %arg6[%c0_9, %c0_10] : memref<16x32xbf16, #tpu.memory_space<vmem>>, vector<16x32xbf16>
    %cst_11 = arith.constant dense<0.000000e+00> : vector<512x32xf32>
    %21 = tpu.matmul %19, %20, %cst_11 {dimension_numbers = #tpu.dot_dimension_numbers<[1], [0], [0], [1], [0, 0, 1, 1], [], []>} : vector<512x16xbf16>, vector<16x32xbf16>, vector<512x32xf32> -> vector<512x32xf32>
    %c0_12 = arith.constant 0 : index
    %c0_13 = arith.constant 0 : index
    %22 = vector.load %arg7[%c0_12, %c0_13] : memref<1x32xf32, #tpu.memory_space<vmem>>, vector<1x32xf32>
    %23 = vector.broadcast %22 : vector<1x32xf32> to vector<512x32xf32>
    %24 = arith.addf %21, %23 : vector<512x32xf32>
    %cst_14 = arith.constant 0.000000e+00 : f32
    %25 = vector.broadcast %cst_14 : f32 to vector<512x32xf32>
    %26 = arith.maximumf %24, %25 : vector<512x32xf32>
    %27 = arith.truncf %26 : vector<512x32xf32> to vector<512x32xbf16>
    %c0_15 = arith.constant 0 : index
    %c0_16 = arith.constant 0 : index
    %28 = vector.load %arg8[%c0_15, %c0_16] : memref<32x32xbf16, #tpu.memory_space<vmem>>, vector<32x32xbf16>
    %cst_17 = arith.constant dense<0.000000e+00> : vector<512x32xf32>
    %29 = tpu.matmul %27, %28, %cst_17 {dimension_numbers = #tpu.dot_dimension_numbers<[1], [0], [0], [1], [0, 0, 1, 1], [], []>} : vector<512x32xbf16>, vector<32x32xbf16>, vector<512x32xf32> -> vector<512x32xf32>
    %c0_18 = arith.constant 0 : index
    %c0_19 = arith.constant 0 : index
    %30 = vector.load %arg9[%c0_18, %c0_19] : memref<1x32xf32, #tpu.memory_space<vmem>>, vector<1x32xf32>
    %31 = vector.broadcast %30 : vector<1x32xf32> to vector<512x32xf32>
    %32 = arith.addf %29, %31 : vector<512x32xf32>
    %33 = arith.truncf %17 : vector<512x32xf32> to vector<512x32xbf16>
    %c0_20 = arith.constant 0 : index
    %c0_21 = arith.constant 0 : index
    %34 = vector.load %arg10[%c0_20, %c0_21] : memref<32x32xbf16, #tpu.memory_space<vmem>>, vector<32x32xbf16>
    %cst_22 = arith.constant dense<0.000000e+00> : vector<512x32xf32>
    %35 = tpu.matmul %33, %34, %cst_22 {dimension_numbers = #tpu.dot_dimension_numbers<[1], [0], [0], [1], [0, 0, 1, 1], [], []>} : vector<512x32xbf16>, vector<32x32xbf16>, vector<512x32xf32> -> vector<512x32xf32>
    %36 = arith.truncf %18 : vector<512x32xf32> to vector<512x32xbf16>
    %c0_23 = arith.constant 0 : index
    %c0_24 = arith.constant 0 : index
    %37 = vector.load %arg11[%c0_23, %c0_24] : memref<32x32xbf16, #tpu.memory_space<vmem>>, vector<32x32xbf16>
    %cst_25 = arith.constant dense<0.000000e+00> : vector<512x32xf32>
    %38 = tpu.matmul %36, %37, %cst_25 {dimension_numbers = #tpu.dot_dimension_numbers<[1], [0], [0], [1], [0, 0, 1, 1], [], []>} : vector<512x32xbf16>, vector<32x32xbf16>, vector<512x32xf32> -> vector<512x32xf32>
    %39 = arith.addf %35, %38 : vector<512x32xf32>
    %c0_26 = arith.constant 0 : index
    %c0_27 = arith.constant 0 : index
    %40 = vector.load %arg12[%c0_26, %c0_27] : memref<1x32xf32, #tpu.memory_space<vmem>>, vector<1x32xf32>
    %41 = vector.broadcast %40 : vector<1x32xf32> to vector<512x32xf32>
    %42 = arith.addf %39, %41 : vector<512x32xf32>
    %43 = arith.addf %32, %42 : vector<512x32xf32>
    %cst_28 = arith.constant 0.000000e+00 : f32
    %44 = vector.broadcast %cst_28 : f32 to vector<512x32xf32>
    %45 = arith.maximumf %43, %44 : vector<512x32xf32>
    %46 = arith.truncf %45 : vector<512x32xf32> to vector<512x32xbf16>
    %c0_29 = arith.constant 0 : index
    %c0_30 = arith.constant 0 : index
    %47 = vector.load %arg13[%c0_29, %c0_30] : memref<32x32xbf16, #tpu.memory_space<vmem>>, vector<32x32xbf16>
    %cst_31 = arith.constant dense<0.000000e+00> : vector<512x32xf32>
    %48 = tpu.matmul %46, %47, %cst_31 {dimension_numbers = #tpu.dot_dimension_numbers<[1], [0], [0], [1], [0, 0, 1, 1], [], []>} : vector<512x32xbf16>, vector<32x32xbf16>, vector<512x32xf32> -> vector<512x32xf32>
    %c0_32 = arith.constant 0 : index
    %c0_33 = arith.constant 0 : index
    %49 = vector.load %arg14[%c0_32, %c0_33] : memref<1x32xf32, #tpu.memory_space<vmem>>, vector<1x32xf32>
    %50 = vector.broadcast %49 : vector<1x32xf32> to vector<512x32xf32>
    %51 = arith.addf %48, %50 : vector<512x32xf32>
    %cst_34 = arith.constant 0.000000e+00 : f32
    %52 = vector.broadcast %cst_34 : f32 to vector<512x32xf32>
    %53 = arith.maximumf %51, %52 : vector<512x32xf32>
    %54 = arith.truncf %53 : vector<512x32xf32> to vector<512x32xbf16>
    %c0_35 = arith.constant 0 : index
    %c0_36 = arith.constant 0 : index
    %55 = vector.load %arg15[%c0_35, %c0_36] : memref<32x32xbf16, #tpu.memory_space<vmem>>, vector<32x32xbf16>
    %cst_37 = arith.constant dense<0.000000e+00> : vector<512x32xf32>
    %56 = tpu.matmul %54, %55, %cst_37 {dimension_numbers = #tpu.dot_dimension_numbers<[1], [0], [0], [1], [0, 0, 1, 1], [], []>} : vector<512x32xbf16>, vector<32x32xbf16>, vector<512x32xf32> -> vector<512x32xf32>
    %c0_38 = arith.constant 0 : index
    %c0_39 = arith.constant 0 : index
    %57 = vector.load %arg16[%c0_38, %c0_39] : memref<1x32xf32, #tpu.memory_space<vmem>>, vector<1x32xf32>
    %58 = vector.broadcast %57 : vector<1x32xf32> to vector<512x32xf32>
    %59 = arith.addf %56, %58 : vector<512x32xf32>
    %60 = arith.mulf %17, %59 : vector<512x32xf32>
    %61 = arith.truncf %60 : vector<512x32xf32> to vector<512x32xbf16>
    %62 = tpu.iota {dimensions = array<i32: 0>} : vector<64x512xi32>
    %c0_40 = arith.constant 0 : index
    %c0_41 = arith.constant 0 : index
    %63 = vector.load %arg3[%c0_40, %c0_41] : memref<1x512xi32, #tpu.memory_space<vmem>>, vector<1x512xi32>
    %64 = vector.broadcast %63 : vector<1x512xi32> to vector<64x512xi32>
    %65 = arith.cmpi eq, %62, %64 : vector<64x512xi32>
    %66 = arith.extui %65 : vector<64x512xi1> to vector<64x512xi32>
    %67 = arith.sitofp %66 : vector<64x512xi32> to vector<64x512xf32>
    %68 = arith.truncf %67 : vector<64x512xf32> to vector<64x512xbf16>
    %c0_42 = arith.constant 0 : index
    %c0_43 = arith.constant 0 : index
    %69 = vector.load %arg23[%c0_42, %c0_43] : memref<64x32xf32, #tpu.memory_space<vmem>>, vector<64x32xf32>
    %cst_44 = arith.constant dense<0.000000e+00> : vector<64x32xf32>
    %70 = tpu.matmul %68, %61, %cst_44 {dimension_numbers = #tpu.dot_dimension_numbers<[1], [0], [0], [1], [0, 0, 1, 1], [], []>} : vector<64x512xbf16>, vector<512x32xbf16>, vector<64x32xf32> -> vector<64x32xf32>
    %71 = arith.addf %69, %70 : vector<64x32xf32>
    %c0_45 = arith.constant 0 : index
    %c0_46 = arith.constant 0 : index
    %72 = vector.load %arg23[%c0_45, %c0_46] : memref<64x32xf32, #tpu.memory_space<vmem>>, vector<64x32xf32>
    tpu.vector_store %arg23[%c0_45, %c0_46], %71 {strides = array<i32>} : memref<64x32xf32, #tpu.memory_space<vmem>>, vector<64x32xf32>,
    %c1_i32 = arith.constant 1 : i32
    %73 = arith.cmpi eq, %arg0, %c1_i32 : i32
    %74 = arith.extui %73 : i1 to i32
    %c0_i32_47 = arith.constant 0 : i32
    %75 = arith.cmpi ne, %74, %c0_i32_47 : i32
    scf.if %75 {
      %c0_48 = arith.constant 0 : index
      %c0_49 = arith.constant 0 : index
      %76 = vector.load %arg17[%c0_48, %c0_49] : memref<32x32xbf16, #tpu.memory_space<vmem>>, vector<32x32xbf16>
      %cst_50 = arith.constant dense<0.000000e+00> : vector<64x32xf32>
      %77 = tpu.matmul %3, %76, %cst_50 {dimension_numbers = #tpu.dot_dimension_numbers<[1], [0], [0], [1], [0, 0, 1, 1], [], []>} : vector<64x32xbf16>, vector<32x32xbf16>, vector<64x32xf32> -> vector<64x32xf32>
      %c0_51 = arith.constant 0 : index
      %c0_52 = arith.constant 0 : index
      %78 = vector.load %arg23[%c0_51, %c0_52] : memref<64x32xf32, #tpu.memory_space<vmem>>, vector<64x32xf32>
      %79 = arith.truncf %78 : vector<64x32xf32> to vector<64x32xbf16>
      %c0_53 = arith.constant 0 : index
      %c0_54 = arith.constant 0 : index
      %80 = vector.load %arg18[%c0_53, %c0_54] : memref<32x32xbf16, #tpu.memory_space<vmem>>, vector<32x32xbf16>
      %cst_55 = arith.constant dense<0.000000e+00> : vector<64x32xf32>
      %81 = tpu.matmul %79, %80, %cst_55 {dimension_numbers = #tpu.dot_dimension_numbers<[1], [0], [0], [1], [0, 0, 1, 1], [], []>} : vector<64x32xbf16>, vector<32x32xbf16>, vector<64x32xf32> -> vector<64x32xf32>
      %82 = arith.addf %77, %81 : vector<64x32xf32>
      %c0_56 = arith.constant 0 : index
      %c0_57 = arith.constant 0 : index
      %83 = vector.load %arg19[%c0_56, %c0_57] : memref<1x32xf32, #tpu.memory_space<vmem>>, vector<1x32xf32>
      %84 = vector.broadcast %83 : vector<1x32xf32> to vector<64x32xf32>
      %85 = arith.addf %82, %84 : vector<64x32xf32>
      %cst_58 = arith.constant 0.000000e+00 : f32
      %86 = vector.broadcast %cst_58 : f32 to vector<64x32xf32>
      %87 = arith.maximumf %85, %86 : vector<64x32xf32>
      %88 = arith.truncf %87 : vector<64x32xf32> to vector<64x32xbf16>
      %c0_59 = arith.constant 0 : index
      %c0_60 = arith.constant 0 : index
      %89 = vector.load %arg20[%c0_59, %c0_60] : memref<32x128xbf16, #tpu.memory_space<vmem>>, vector<32x128xbf16>
      %cst_61 = arith.constant dense<0.000000e+00> : vector<64x128xf32>
      %90 = tpu.matmul %88, %89, %cst_61 {dimension_numbers = #tpu.dot_dimension_numbers<[1], [0], [0], [1], [0, 0, 1, 1], [], []>} : vector<64x32xbf16>, vector<32x128xbf16>, vector<64x128xf32> -> vector<64x128xf32>
      %c0_62 = arith.constant 0 : index
      %c0_63 = arith.constant 0 : index
      %91 = vector.load %arg21[%c0_62, %c0_63] : memref<1x128xf32, #tpu.memory_space<vmem>>, vector<1x128xf32>
      %92 = vector.broadcast %91 : vector<1x128xf32> to vector<64x128xf32>
      %93 = arith.addf %90, %92 : vector<64x128xf32>
      %c0_64 = arith.constant 0 : index
      %c0_65 = arith.constant 0 : index
      %94 = vector.load %arg22[%c0_64, %c0_65] : memref<64x128xf32, #tpu.memory_space<vmem>>, vector<64x128xf32>
      tpu.vector_store %arg22[%c0_64, %c0_65], %93 {strides = array<i32>} : memref<64x128xf32, #tpu.memory_space<vmem>>, vector<64x128xf32>,
    } else {
    }
    return
  }
  func.func @transform_0(%arg0: i32) -> (i32, i32) {
    %c0_i32 = arith.constant 0 : i32
    %c0_i32_0 = arith.constant 0 : i32
    return %arg0, %c0_i32 : i32, i32
  }
  func.func @transform_1(%arg0: i32) -> (i32, i32) {
    %c0_i32 = arith.constant 0 : i32
    %c0_i32_0 = arith.constant 0 : i32
    return %arg0, %c0_i32 : i32, i32
  }
  func.func @transform_2(%arg0: i32) -> (i32, i32) {
    %c0_i32 = arith.constant 0 : i32
    %c0_i32_0 = arith.constant 0 : i32
    return %c0_i32, %arg0 : i32, i32
  }
  func.func @transform_3(%arg0: i32) -> (i32, i32) {
    %c0_i32 = arith.constant 0 : i32
    %c0_i32_0 = arith.constant 0 : i32
    return %arg0, %c0_i32 : i32, i32
  }
  func.func @transform_4(%arg0: i32) -> (i32, i32) {
    %c0_i32 = arith.constant 0 : i32
    %c0_i32_0 = arith.constant 0 : i32
    %c0_i32_1 = arith.constant 0 : i32
    return %c0_i32, %c0_i32_0 : i32, i32
  }
  func.func @transform_5(%arg0: i32) -> (i32, i32) {
    %c0_i32 = arith.constant 0 : i32
    %c0_i32_0 = arith.constant 0 : i32
    %c0_i32_1 = arith.constant 0 : i32
    return %c0_i32, %c0_i32_0 : i32, i32
  }
  func.func @transform_6(%arg0: i32) -> (i32, i32) {
    %c0_i32 = arith.constant 0 : i32
    %c0_i32_0 = arith.constant 0 : i32
    %c0_i32_1 = arith.constant 0 : i32
    return %c0_i32, %c0_i32_0 : i32, i32
  }
  func.func @transform_7(%arg0: i32) -> (i32, i32) {
    %c0_i32 = arith.constant 0 : i32
    %c0_i32_0 = arith.constant 0 : i32
    %c0_i32_1 = arith.constant 0 : i32
    return %c0_i32, %c0_i32_0 : i32, i32
  }
  func.func @transform_8(%arg0: i32) -> (i32, i32) {
    %c0_i32 = arith.constant 0 : i32
    %c0_i32_0 = arith.constant 0 : i32
    %c0_i32_1 = arith.constant 0 : i32
    return %c0_i32, %c0_i32_0 : i32, i32
  }
  func.func @transform_9(%arg0: i32) -> (i32, i32) {
    %c0_i32 = arith.constant 0 : i32
    %c0_i32_0 = arith.constant 0 : i32
    %c0_i32_1 = arith.constant 0 : i32
    return %c0_i32, %c0_i32_0 : i32, i32
  }
  func.func @transform_10(%arg0: i32) -> (i32, i32) {
    %c0_i32 = arith.constant 0 : i32
    %c0_i32_0 = arith.constant 0 : i32
    %c0_i32_1 = arith.constant 0 : i32
    return %c0_i32, %c0_i32_0 : i32, i32
  }
  func.func @transform_11(%arg0: i32) -> (i32, i32) {
    %c0_i32 = arith.constant 0 : i32
    %c0_i32_0 = arith.constant 0 : i32
    %c0_i32_1 = arith.constant 0 : i32
    return %c0_i32, %c0_i32_0 : i32, i32
  }
  func.func @transform_12(%arg0: i32) -> (i32, i32) {
    %c0_i32 = arith.constant 0 : i32
    %c0_i32_0 = arith.constant 0 : i32
    %c0_i32_1 = arith.constant 0 : i32
    return %c0_i32, %c0_i32_0 : i32, i32
  }
  func.func @transform_13(%arg0: i32) -> (i32, i32) {
    %c0_i32 = arith.constant 0 : i32
    %c0_i32_0 = arith.constant 0 : i32
    %c0_i32_1 = arith.constant 0 : i32
    return %c0_i32, %c0_i32_0 : i32, i32
  }
  func.func @transform_14(%arg0: i32) -> (i32, i32) {
    %c0_i32 = arith.constant 0 : i32
    %c0_i32_0 = arith.constant 0 : i32
    %c0_i32_1 = arith.constant 0 : i32
    return %c0_i32, %c0_i32_0 : i32, i32
  }
  func.func @transform_15(%arg0: i32) -> (i32, i32) {
    %c0_i32 = arith.constant 0 : i32
    %c0_i32_0 = arith.constant 0 : i32
    %c0_i32_1 = arith.constant 0 : i32
    return %c0_i32, %c0_i32_0 : i32, i32
  }
  func.func @transform_16(%arg0: i32) -> (i32, i32) {
    %c0_i32 = arith.constant 0 : i32
    %c0_i32_0 = arith.constant 0 : i32
    %c0_i32_1 = arith.constant 0 : i32
    return %c0_i32, %c0_i32_0 : i32, i32
  }
  func.func @transform_17(%arg0: i32) -> (i32, i32) {
    %c0_i32 = arith.constant 0 : i32
    %c0_i32_0 = arith.constant 0 : i32
    %c0_i32_1 = arith.constant 0 : i32
    return %c0_i32, %c0_i32_0 : i32, i32
  }
  func.func @transform_18(%arg0: i32) -> (i32, i32) {
    %c0_i32 = arith.constant 0 : i32
    %c0_i32_0 = arith.constant 0 : i32
    %c0_i32_1 = arith.constant 0 : i32
    return %c0_i32, %c0_i32_0 : i32, i32
  }
  func.func @transform_19(%arg0: i32) -> (i32, i32) {
    %c0_i32 = arith.constant 0 : i32
    %c0_i32_0 = arith.constant 0 : i32
    %c0_i32_1 = arith.constant 0 : i32
    return %c0_i32, %c0_i32_0 : i32, i32
  }
  func.func @transform_20(%arg0: i32) -> (i32, i32) {
    %c0_i32 = arith.constant 0 : i32
    %c0_i32_0 = arith.constant 0 : i32
    %c0_i32_1 = arith.constant 0 : i32
    return %c0_i32, %c0_i32_0 : i32, i32
  }
  func.func @transform_21(%arg0: i32) -> (i32, i32) {
    %c0_i32 = arith.constant 0 : i32
    %c0_i32_0 = arith.constant 0 : i32
    %c0_i32_1 = arith.constant 0 : i32
    return %c0_i32, %c0_i32_0 : i32, i32
  }
}

</mosaic_0001>

<bundles_post_ra>
// kernel: smooth_conv_forward.1
= control target key start
LH: loop header
LB: loop body
LE: loop exit
PB: predicated region body
PF: predicated region fallthrough
CT: control target
= control target key end

     0   :  { %s8860_s0 = inlined_call_operand.vmem [shape: s32[1024,1], index: 0, kind: input, shape index: {}]   ;;  %s8861_s1 = inlined_call_operand.vmem [shape: s32[1024,1], index: 1, kind: input, shape index: {}]   ;;  %s8862_s2 = inlined_call_operand.vmem [shape: s32[1,1024], index: 2, kind: input, shape index: {}]   ;;  %s8863_s3 = inlined_call_operand.vmem [shape: bf16[1024,16], index: 3, kind: input, shape index: {}]   ;;  %s8864_s4 = inlined_call_operand.vmem [shape: bf16[64,32], index: 4, kind: input, shape index: {}]   ;;  %s8865_s5 = inlined_call_operand.vmem [shape: bf16[16,32], index: 5, kind: input, shape index: {}]   ;;  %s8866_s6 = inlined_call_operand.vmem [shape: f32[1,32], index: 6, kind: input, shape index: {}]   ;;  %s8867_s7 = inlined_call_operand.vmem [shape: bf16[32,32], index: 7, kind: input, shape index: {}]   ;;  %s8868_s8 = inlined_call_operand.vmem [shape: f32[1,32], index: 8, kind: input, shape index: {}]   ;;  %s8869_s9 = inlined_call_operand.vmem [shape: bf16[32,32], index: 9, kind: input, shape index: {}]   ;;  %s8870_s10 = inlined_call_operand.vmem [shape: bf16[32,32], index: 10, kind: input, shape index: {}]   ;;  %s8871_s11 = inlined_call_operand.vmem [shape: f32[1,32], index: 11, kind: input, shape index: {}]   ;;  %s8872_s12 = inlined_call_operand.vmem [shape: bf16[32,32], index: 12, kind: input, shape index: {}]   ;;  %s8873_s13 = inlined_call_operand.vmem [shape: f32[1,32], index: 13, kind: input, shape index: {}]   ;;  %s8874_s14 = inlined_call_operand.vmem [shape: bf16[32,32], index: 14, kind: input, shape index: {}]   ;;  %s8875_s15 = inlined_call_operand.vmem [shape: f32[1,32], index: 15, kind: input, shape index: {}]   ;;  %s8876_s16 = inlined_call_operand.vmem [shape: bf16[32,32], index: 16, kind: input, shape index: {}]   ;;  %s8877_s17 = inlined_call_operand.vmem [shape: bf16[32,32], index: 17, kind: input, shape index: {}]   ;;  %s8878_s18 = inlined_call_operand.vmem [shape: f32[1,32], index: 18, kind: input, shape index: {}]   ;;  %s8879_s19 = inlined_call_operand.vmem [shape: bf16[32,128], index: 19, kind: input, shape index: {}]   ;;  %s8880_s20 = inlined_call_operand.vmem [shape: f32[1,128], index: 20, kind: input, shape index: {}]   ;;  %s8881_s21 = inlined_call_operand.vmem [shape: f32[64,128], index: 21, kind: output, shape index: {}]  }
   0x1   :  { %8954 = sst [smem:[#allocation112_spill]] %s8860_s0 }
   0x2   :  { %8955 = sst [smem:[#allocation113_spill]] %s8861_s1 }
   0x3   :  { %8956 = sst [smem:[#allocation114_spill]] %s8862_s2  ;;  %s6192_s2 = smov 0  }
   0x4   :  { %8957 = sst [smem:[#allocation115_spill]] %s8863_s3 }
   0x5   :  { %8958 = sst [smem:[#allocation116_spill]] %s8864_s4 }
   0x6   :  { %8959 = sst [smem:[#allocation117_spill]] %s8865_s5 }
   0x7   :  { %8960 = sst [smem:[#allocation118_spill]] %s8876_s16 }
   0x8   :  { %8961 = sst [smem:[#allocation119_spill]] %s8877_s17 }
   0x9   :  { %8962 = sst [smem:[#allocation120_spill]] %s8878_s18 }
   0xa   :  { %8963 = sst [smem:[#allocation121_spill]] %s8879_s19 }
   0xb   :  { %8964 = sst [smem:[#allocation122_spill]] %s8880_s20 }
   0xc   :  { %8965 = sst [smem:[#allocation123_spill]] %s8881_s21 }
   0xd LB: > { %8966 = sst [smem:[#allocation3_spill]] %s6076_s2  ;;  %s6198_s25 = sadd.s32 4294967295, %s6076_s2   ;;  %s6076_s2 = sphi %s6192_s2, %s31_s2  }
   0xe   : > { %p5299_p0 = scmp.ge.s32.totalorder %s6076_s2, 1  ;;  %p615_p1 = scmp.lt.s32.totalorder %s6076_s2, 3 }
  0x10   : > { %p616_p2 = pnand %p5299_p0, %p615_p1 }
  0x12   : > { %619 = sbr.rel (%p616_p2) target bundleno = 2189 (0x88d), region = 104 }
  0x17   : > { %s5300_s26 = sshll.u32 %s6198_s25, 6  ;;  %s5304_s27 = sshll.u32 %s6198_s25, 2 }
  0x18   : > { %p685_p3 = scmp.lt.s32.totalorder %s5300_s26, 127  ;;  %p697_p4 = scmp.lt.s32.totalorder %s5304_s27, 7 }
  0x19   : > { %s8967_s4 = sld [smem:[#allocation112_spill]]  ;;  %p5307_p5 = scmp.ne.s32.totalorder %s6198_s25, 0 }
  0x1a   : > { %s9301_s26 = smov (!%p685_p3, %s5300_s26), 127  ;;  %s9303_s27 = smov (!%p697_p4, %s5304_s27), 7 }
  0x1b   : > { %s5301_s3 = sshll.u32 %s9301_s26, 3  ;;  %s5306_s28 = sshll.u32 %s9301_s26, 2 }
  0x1c   : > { %s8968_s23 = sld [smem:[#allocation113_spill]] }
  0x1d   : > { %s8969_s21 = sld [smem:[#allocation114_spill]] }
  0x1e   : > { %s8970_s16 = sld [smem:[#allocation115_spill]] }
  0x1f   : > { %s6209_s30 = scalar_lea.vmem %s8967_s4, %s5301_s3 }
  0x20   : > { %711 = sbr.rel (%p5307_p5) target bundleno = 46 (0x2e), region = 108 }
  0x22   : > { %s6214_s1 = scalar_lea.vmem %s8968_s23, %s5301_s3 }
  0x23   : > { %s699_s20 = scalar_lea.vmem %s8969_s21, %s9303_s27 }
  0x24   : > { %s6223_s17 = scalar_lea.vmem %s8970_s16, %s5306_s28 }
  0x25   : > { %vm712_vm0 = vcmask 261120   ;;  %v6078_v0 = vmov 0.0  }
  0x26   : > { %713 = vst.msk [vmem:[#allocation2] sm:$0xff] %vm712_vm0, %v6078_v0 }
  0x27   : > { %714 = vst.msk [vmem:[#allocation2 + $0x8] sm:$0xff] %vm712_vm0, %v6078_v0 }
  0x28   : > { %715 = vst.msk [vmem:[#allocation2 + $0x10] sm:$0xff] %vm712_vm0, %v6078_v0 }
  0x29   : > { %716 = vst.msk [vmem:[#allocation2 + $0x18] sm:$0xff] %vm712_vm0, %v6078_v0 }
  0x2a   : > { %717 = vst.msk [vmem:[#allocation2 + $0x20] sm:$0xff] %vm712_vm0, %v6078_v0 }
  0x2b   : > { %718 = vst.msk [vmem:[#allocation2 + $0x28] sm:$0xff] %vm712_vm0, %v6078_v0 }
  0x2c   : > { %719 = vst.msk [vmem:[#allocation2 + $0x30] sm:$0xff] %vm712_vm0, %v6078_v0 }
  0x2d   : > { %720 = vst.msk [vmem:[#allocation2 + $0x38] sm:$0xff] %vm712_vm0, %v6078_v0 }
  0x2e PF: > { %v735_v1 = vld [vmem:[%s6209_s30 + $0x20] sm:$0xff]  ;;  %v733_v2 = vld [vmem:[%s6209_s30 + $0x10] sm:$0xff]  ;;  %v6079_v4 = vmov 0   ;;  %s8971_s19 = sld [smem:[#allocation117_spill]]  ;;  %vm2482_vm1 = vcmask 130048   ;;  %v736_v7 = vld [vmem:[%s6209_s30 + $0x28] sm:$0xff]  ;;  %v8888_v63 = vlaneseq }
  0x2f   : > { %v731_v3 = vld [vmem:[%s6209_s30] sm:$0xff]  ;;  %6056 = vset.pattern.permute.xlu2 %v6079_v4  ;;  %6055 = vset.pattern.permute.xlu1 %v6079_v4  ;;  %v734_v8 = vld [vmem:[%s6209_s30 + $0x18] sm:$0xff]  ;;  %v732_v9 = vld [vmem:[%s6209_s30 + $0x8] sm:$0xff]  ;;  %s8972_s26 = sld [smem:[#allocation116_spill]]  ;;  %vm1715_vm4 = vcmask 523264   ;;  %vm2864_vm9 = vcmask 261120  }
  0x30   : > { %6054 = vset.pattern.permute.xlu0 %v6079_v4  ;;  %808 = vperm.xlu2 %6056, %v735_v1   ;;  %v5987_v6 = vld [vmem:[%s6223_s17] sm:$0xff]  ;;  %v738_v11 = vld [vmem:[%s6209_s30 + $0x38] sm:$0xff]  ;;  %v737_v12 = vld [vmem:[%s6209_s30 + $0x30] sm:$0xff]  ;;  %p5944_p6 = scmp.ne.s32.totalorder %s6198_s25, 1 }
  0x31   : > { %802 = vperm.xlu1 %6055, %v733_v2   ;;  %796 = vperm.xlu0 %6054, %v731_v3   ;;  %v739_v10 = vld [vmem:[%s6209_s30 + $0x40] sm:$0xff]  ;;  %v5988_v13 = vld [vmem:[%s6223_s17 + $0x8] sm:$0xff]  ;;  %v742_v14 = vld [vmem:[%s6209_s30 + $0x58] sm:$0xff]  ;;  %s9289_s28 = sld [smem:[#allocation119_spill]] (!%p5944_p6) }
  0x32   : > { %v741_v15 = vld [vmem:[%s6209_s30 + $0x50] sm:$0xff]  ;;  %v740_v16 = vld [vmem:[%s6209_s30 + $0x48] sm:$0xff]  ;;  %v743_v19 = vld [vmem:[%s6209_s30 + $0x60] sm:$0xff]  ;;  %s9290_s0 = sld [smem:[#allocation118_spill]] (!%p5944_p6) }
  0x33   : > { %v745_v17 = vld [vmem:[%s6209_s30 + $0x70] sm:$0xff]  ;;  %v744_v18 = vld [vmem:[%s6209_s30 + $0x68] sm:$0xff]  ;;  %v747_v22 = vld [vmem:[%s6209_s30 + $0x80] sm:$0xff]  ;;  %s9295_s16 = sld [smem:[#allocation121_spill]] (!%p5944_p6) }
  0x34   : > { %v6019_v5 = vld [vmem:[%s8971_s19] sm:$0xff]  ;;  %v5989_v20 = vld [vmem:[%s6223_s17 + $0x10] sm:$0xff]  ;;  %v748_v21 = vld [vmem:[%s6209_s30 + $0x88] sm:$0xff]  ;;  %s9298_s29 = sld [smem:[#allocation123_spill]] (!%p5944_p6) }
  0x35   : > { %2586 = vmatpush.bf16.msra.mxu2 %v6019_v5  ;;  %v746_v23 = vld [vmem:[%s6209_s30 + $0x78] sm:$0xff]  ;;  %v749_v24 = vld [vmem:[%s6209_s30 + $0x90] sm:$0xff]  ;;  %v1212_v25 = vld [vmem:[%s6214_s1 + $0x8] sm:$0xff]  ;;  %v6332_v5 = vand.u32 127, %v8888_v63 }
  0x36   : > { %v1211_v26 = vld [vmem:[%s6214_s1] sm:$0xff]  ;;  %v5990_v27 = vld [vmem:[%s6223_s17 + $0x18] sm:$0xff]  ;;  %v1213_v29 = vld [vmem:[%s6214_s1 + $0x10] sm:$0xff] }
  0x37   : > { %v1214_v28 = vld [vmem:[%s6214_s1 + $0x18] sm:$0xff]  ;;  %v1215_v31 = vld [vmem:[%s6214_s1 + $0x20] sm:$0xff]  ;;  %v752_v32 = vld [vmem:[%s6209_s30 + $0xa8] sm:$0xff] }
  0x38   : > { %5648 = vmatmul.msk.bf16.vlgmr.msra.gmra.mxu2 %vm2482_vm1, %v5987_v6  ;;  %811 = vperm.xlu2 %6056, %v736_v7   ;;  %v750_v30 = vld [vmem:[%s6209_s30 + $0x98] sm:$0xff]  ;;  %v751_v33 = vld [vmem:[%s6209_s30 + $0xa0] sm:$0xff]  ;;  %v753_v36 = vld [vmem:[%s6209_s30 + $0xb0] sm:$0xff] }
  0x39   : > { %805 = vperm.xlu1 %6055, %v734_v8   ;;  %799 = vperm.xlu0 %6054, %v732_v9   ;;  %v5991_v34 = vld [vmem:[%s6223_s17 + $0x20] sm:$0xff]  ;;  %v754_v35 = vld [vmem:[%s6209_s30 + $0xb8] sm:$0xff]  ;;  %v1216_v37 = vld [vmem:[%s6214_s1 + $0x28] sm:$0xff] }
  0x3a   : > { %v755_v38 = vld [vmem:[%s6209_s30 + $0xc0] sm:$0xff]  ;;  %v1218_v39 = vld [vmem:[%s6214_s1 + $0x38] sm:$0xff]  ;;  %v1217_v40 = vld [vmem:[%s6214_s1 + $0x30] sm:$0xff] }
  0x3b   : > { %v6275_v41 = vld [vmem:[%s8972_s26 + $0x18] sm:$0xff]  ;;  %v5992_v42 = vld [vmem:[%s6223_s17 + $0x28] sm:$0xff]  ;;  %v6283_v43 = vld [vmem:[%s8972_s26 + $0x10] sm:$0xff] }
  0x3c   : > { %8973 = vst [vmem:[#allocation4_spill] sm:$0xff] %v6275_v41  ;;  %1816 = vmatpush.bf16.msra.mxu0 %v6275_v41  ;;  %2081 = vmatpush.bf16.msra.mxu1 %v6275_v41  ;;  %v1220_v44 = vld [vmem:[%s6214_s1 + $0x48] sm:$0xff]  ;;  %v1219_v45 = vld [vmem:[%s6214_s1 + $0x40] sm:$0xff]  ;;  %v1221_v50 = vld [vmem:[%s6214_s1 + $0x50] sm:$0xff] }
  0x3d   : > { %8974 = vst [vmem:[#allocation5_spill] sm:$0xff] %v6283_v43  ;;  %v756_v46 = vld [vmem:[%s6209_s30 + $0xc8] sm:$0xff]  ;;  %v6303_v49 = vld [vmem:[%s8972_s26] sm:$0xff]  ;;  %v758_v51 = vld [vmem:[%s6209_s30 + $0xd8] sm:$0xff] }
  0x3e   : > { %v6294_v47 = vld [vmem:[%s8972_s26 + $0x8] sm:$0xff]  ;;  %8976 = vst [vmem:[#allocation7_spill] sm:$0xff] %v6303_v49  ;;  %v757_v52 = vld [vmem:[%s6209_s30 + $0xd0] sm:$0xff]  ;;  %v759_v56 = vld [vmem:[%s6209_s30 + $0xe0] sm:$0xff] }
  0x3f   : > { %8975 = vst [vmem:[#allocation6_spill] sm:$0xff] %v6294_v47  ;;  %v5993_v53 = vld [vmem:[%s6223_s17 + $0x30] sm:$0xff]  ;;  %v760_v55 = vld [vmem:[%s6209_s30 + $0xe8] sm:$0xff]  ;;  %v1222_v57 = vld [vmem:[%s6214_s1 + $0x58] sm:$0xff] }
  0x40   : > { %820 = vperm.xlu2 %6056, %v739_v10   ;;  %1817 = vmatpush.bf16.msra.mxu0 %v6283_v43  ;;  %v761_v59 = vld [vmem:[%s6209_s30 + $0xf0] sm:$0xff]  ;;  %v1224_v60 = vld [vmem:[%s6214_s1 + $0x68] sm:$0xff]  ;;  %v1223_v61 = vld [vmem:[%s6214_s1 + $0x60] sm:$0xff]  ;;  %v8890_v10 = vmov 0.0  }
  0x41   : > { %817 = vperm.xlu1 %6055, %v738_v11   ;;  %814 = vperm.xlu0 %6054, %v737_v12   ;;  %v6021_v62 = vld [vmem:[%s8867_s7 + $0x8] sm:$0xff]  ;;  %v5994_v0 = vld [vmem:[%s6223_s17 + $0x38] sm:$0xff]  ;;  %v6020_v2 = vld [vmem:[%s8867_s7] sm:$0xff] }
  0x42   : > { %2082 = vmatpush.bf16.msra.mxu1 %v6283_v43  ;;  %2967 = vmatpush.bf16.msra.mxu3 %v6021_v62  ;;  %v1226_v6 = vld [vmem:[%s6214_s1 + $0x78] sm:$0xff]  ;;  %v1225_v7 = vld [vmem:[%s6214_s1 + $0x70] sm:$0xff]  ;;  %v1268_v43 = vld [vmem:[%s6214_s1 + $0x1c8] sm:$0xff] }
  0x43   : > { %v762_v8 = vld [vmem:[%s6209_s30 + $0xf8] sm:$0xff]  ;;  %v1265_v41 = vld [vmem:[%s6214_s1 + $0x1b0] sm:$0xff] }
  0x44   : > { %1818 = vmatpush.bf16.msra.mxu0 %v6294_v47 }
  0x46   : > { %2083 = vmatpush.bf16.msra.mxu1 %v6294_v47  ;;  %2968 = vmatpush.bf16.msra.mxu3 %v6020_v2 }
  0x48   : > { %5649 = vmatmul.msk.bf16.gmra.mxu2 %vm2482_vm1, %v5988_v13  ;;  %829 = vperm.xlu2 %6056, %v742_v14  }
  0x49   : > { %826 = vperm.xlu1 %6055, %v741_v15   ;;  %823 = vperm.xlu0 %6054, %v740_v16   ;;  %v1227_v15 = vld [vmem:[%s6214_s1 + $0x80] sm:$0xff] }
  0x4a   : > { %1819 = vmatpush.bf16.msra.mxu0 %v6303_v49  ;;  %2084 = vmatpush.bf16.msra.mxu1 %v6303_v49  ;;  %v1267_v49 = vld [vmem:[%s6214_s1 + $0x1c0] sm:$0xff] }
  0x50   : > { %838 = vperm.xlu2 %6056, %v745_v17   ;;  %v764_v17 = vld [vmem:[%s6209_s30 + $0x108] sm:$0xff] }
  0x51   : > { %835 = vperm.xlu1 %6055, %v744_v18   ;;  %832 = vperm.xlu0 %6054, %v743_v19   ;;  %v763_v18 = vld [vmem:[%s6209_s30 + $0x100] sm:$0xff] }
  0x52   : > { %v5995_v19 = vld [vmem:[%s6223_s17 + $0x40] sm:$0xff] }
  0x58   : > { %5650 = vmatmul.msk.bf16.gmra.mxu2 %vm2482_vm1, %v5989_v20  ;;  %847 = vperm.xlu2 %6056, %v748_v21  }
  0x59   : > { %844 = vperm.xlu1 %6055, %v747_v22   ;;  %841 = vperm.xlu0 %6054, %v746_v23   ;;  %v766_v23 = vld [vmem:[%s6209_s30 + $0x118] sm:$0xff] }
  0x60   : > { %850 = vperm.xlu2 %6056, %v749_v24   ;;  %v765_v24 = vld [vmem:[%s6209_s30 + $0x110] sm:$0xff] }
  0x61   : > { %1279 = vperm.xlu1 %6055, %v1212_v25   ;;  %1276 = vperm.xlu0 %6054, %v1211_v26   ;;  %v1228_v25 = vld [vmem:[%s6214_s1 + $0x88] sm:$0xff] }
  0x68   : > { %5651 = vmatmul.msk.bf16.gmra.mxu2 %vm2482_vm1, %v5990_v27  ;;  %1285 = vperm.xlu2 %6056, %v1214_v28  }
  0x69   : > { %1282 = vperm.xlu1 %6055, %v1213_v29   ;;  %853 = vperm.xlu0 %6054, %v750_v30   ;;  %v6366_v30 = vld [vmem:[%s8866_s6] ss:$0 sm:$0xff] }
  0x70   : > { %1288 = vperm.xlu2 %6056, %v1215_v31  }
  0x71   : > { %859 = vperm.xlu1 %6055, %v752_v32   ;;  %856 = vperm.xlu0 %6054, %v751_v33  }
  0x78   : > { %5652 = vmatmul.msk.bf16.gmra.mxu2 %vm2482_vm1, %v5991_v34  ;;  %865 = vperm.xlu2 %6056, %v754_v35   ;;  %v767_v34 = vld [vmem:[%s6209_s30 + $0x120] sm:$0xff]  ;;  %v1230_v35 = vld [vmem:[%s6214_s1 + $0x98] sm:$0xff] }
  0x79   : > { %862 = vperm.xlu1 %6055, %v753_v36   ;;  %1291 = vperm.xlu0 %6054, %v1216_v37   ;;  %v1229_v36 = vld [vmem:[%s6214_s1 + $0x90] sm:$0xff] }
  0x80   : > { %868 = vperm.xlu2 %6056, %v755_v38  }
  0x81   : > { %1297 = vperm.xlu1 %6055, %v1218_v39   ;;  %1294 = vperm.xlu0 %6054, %v1217_v40   ;;  %v5996_v40 = vld [vmem:[%s6223_s17 + $0x48] sm:$0xff] }
  0x88   : > { %5653 = vmatmul.msk.bf16.gmra.mxu2 %vm2482_vm1, %v5992_v42  ;;  %1303 = vperm.xlu2 %6056, %v1220_v44  }
  0x89   : > { %1300 = vperm.xlu1 %6055, %v1219_v45   ;;  %871 = vperm.xlu0 %6054, %v756_v46  }
  0x8a   : > { %v6296_v48 = vpop.permute.xlu2 %808 }
  0x8b   : > { %vm991_vm10 = vcmp.eq.s32.totalorder %v6332_v5, %v6296_v48 }
  0x8c   : > { %v5312_v48 = vsel %vm991_vm10, 1.0, %v8890_v10 }
  0x90   : > { %1306 = vperm.xlu2 %6056, %v1221_v50  }
  0x91   : > { %877 = vperm.xlu1 %6055, %v758_v51   ;;  %874 = vperm.xlu0 %6054, %v757_v52  }
  0x92   : > { %v6311_v54 = vpop.permute.xlu2 %811 }
  0x93   : > { %vm992_vm11 = vcmp.eq.s32.totalorder %v6332_v5, %v6311_v54 }
  0x98   : > { %5654 = vmatmul.msk.bf16.gmra.mxu2 %vm2482_vm1, %v5993_v53  ;;  %883 = vperm.xlu2 %6056, %v760_v55   ;;  %v1232_v55 = vld [vmem:[%s6214_s1 + $0xa8] sm:$0xff] }
  0x99   : > { %880 = vperm.xlu1 %6055, %v759_v56   ;;  %1309 = vperm.xlu0 %6054, %v1222_v57   ;;  %v1231_v57 = vld [vmem:[%s6214_s1 + $0xa0] sm:$0xff] }
  0x9a   : > { %v6317_v58 = vpop.permute.xlu2 %820 }
  0xa0   : > { %886 = vperm.xlu2 %6056, %v761_v59   ;;  %v768_v59 = vld [vmem:[%s6209_s30 + $0x128] sm:$0xff] }
  0xa1   : > { %1315 = vperm.xlu1 %6055, %v1224_v60   ;;  %1312 = vperm.xlu0 %6054, %v1223_v61   ;;  %v5313_v61 = vsel %vm992_vm11, 1.0, %v8890_v10 }
  0xa2   : > { %v6326_v1 = vpop.permute.xlu2 %829 }
  0xa3   : > { %v803_v3 = vpop.permute.xlu1 %802  ;;  %v797_v4 = vpop.permute.xlu0 %796 }
  0xa4   : > { %vm987_vm2 = vcmp.eq.s32.totalorder %v6332_v5, %v797_v4  ;;  %vm989_vm5 = vcmp.eq.s32.totalorder %v6332_v5, %v803_v3  ;;  %v1181_v4 = vpack.c.bf16 %v5313_v61, %v5312_v48 }
  0xa5   : > { %v5308_v11 = vsel %vm987_vm2, 1.0, %v8890_v10  ;;  %v5310_v27 = vsel %vm989_vm5, 1.0, %v8890_v10 }
  0xa8   : > { %5655 = vmatmul.msk.bf16.gmra.mxu2 %vm2482_vm1, %v5994_v0  ;;  %1321 = vperm.xlu2 %6056, %v1226_v6  }
  0xa9   : > { %1318 = vperm.xlu1 %6055, %v1225_v7   ;;  %889 = vperm.xlu0 %6054, %v762_v8   ;;  %v1233_v8 = vld [vmem:[%s6214_s1 + $0xb0] sm:$0xff] }
  0xaa   : > { %v6339_v9 = vpop.permute.xlu2 %838 }
  0xab   : > { %v806_v12 = vpop.permute.xlu1 %805  ;;  %v800_v13 = vpop.permute.xlu0 %799  ;;  %vm1001_vm12 = vcmp.eq.s32.totalorder %v6332_v5, %v6339_v9 }
  0xac   : > { %vm988_vm3 = vcmp.eq.s32.totalorder %v6332_v5, %v800_v13  ;;  %vm990_vm6 = vcmp.eq.s32.totalorder %v6332_v5, %v806_v12  ;;  %v6408_v62 = vsel %vm1001_vm12, 1.0, %v8890_v10  ;;  %v770_v12 = vld [vmem:[%s6209_s30 + $0x138] sm:$0xff]  ;;  %v769_v13 = vld [vmem:[%s6209_s30 + $0x130] sm:$0xff] }
  0xad   : > { %v5309_v14 = vsel %vm988_vm3, 1.0, %v8890_v10  ;;  %v5311_v28 = vsel %vm990_vm6, 1.0, %v8890_v10 }
  0xae   : > { %v1179_v16 = vpack.c.bf16 %v5309_v14, %v5308_v11  ;;  %v1180_v33 = vpack.c.bf16 %v5311_v28, %v5310_v27  ;;  %v772_v28 = vld [vmem:[%s6209_s30 + $0x148] sm:$0xff] }
  0xb0   : > { %5452 = vmatmul.msk.bf16.vlgmr.msra.gmra.mxu0 %vm1715_vm4, %v1179_v16  ;;  %1324 = vperm.xlu2 %6056, %v1227_v15  }
  0xb1   : > { %895 = vperm.xlu1 %6055, %v764_v17   ;;  %892 = vperm.xlu0 %6054, %v763_v18   ;;  %v5997_v17 = vld [vmem:[%s6223_s17 + $0x50] sm:$0xff] }
  0xb2   : > { %v848_v20 = vpop.permute.xlu2 %847 }
  0xb3   : > { %v6349_v21 = vpop.permute.xlu1 %817  ;;  %v6351_v22 = vpop.permute.xlu0 %814  ;;  %vm1004_vm13 = vcmp.eq.s32.totalorder %v6332_v5, %v848_v20 }
  0xb4   : > { %v6411_v0 = vsel %vm1004_vm13, 1.0, %v8890_v10  ;;  %vm994_vm3 = vcmp.eq.s32.totalorder %v6332_v5, %v6349_v21  ;;  %vm993_vm5 = vcmp.eq.s32.totalorder %v6332_v5, %v6351_v22  ;;  %vm995_vm13 = vcmp.eq.s32.totalorder %v6332_v5, %v6317_v58 }
  0xb5   : > { %v5314_v21 = vsel %vm993_vm5, 1.0, %v8890_v10  ;;  %v5316_v58 = vsel %vm995_vm13, 1.0, %v8890_v10  ;;  %vm998_vm5 = vcmp.eq.s32.totalorder %v6332_v5, %v6326_v1 }
  0xb8   : > { %5656 = vmatmul.msk.bf16.gmra.mxu2 %vm2482_vm1, %v5995_v19  ;;  %901 = vperm.xlu2 %6056, %v766_v23  }
  0xb9   : > { %898 = vperm.xlu1 %6055, %v765_v24   ;;  %1327 = vperm.xlu0 %6054, %v1228_v25  }
  0xba   : > { %v6361_v29 = vpop.permute.xlu2 %850 }
  0xbb   : > { %v2588_v26 = vpop.f32.mrf.mxu2  ;;  %v6368_v31 = vpop.permute.xlu1 %826  ;;  %vm1005_vm6 = vcmp.eq.s32.totalorder %v6332_v5, %v6361_v29 }
  0xbc   : > { %v6370_v32 = vpop.permute.xlu0 %823  ;;  %v2589_v37 = vadd.f32 %v6366_v30, %v2588_v26 }
  0xbe   : > { %v2748_v44 = vmax.f32 %v2589_v37, 0.0  ;;  %v5315_v37 = vsel %vm994_vm3, 1.0, %v8890_v10 }
  0xbf   : > { %v1182_v29 = vpack.c.bf16 %v5315_v37, %v5314_v21 }
  0xc0   : > { %5453 = vmatmul.msk.bf16.gmra.mxu0 %vm1715_vm4, %v1180_v33  ;;  %904 = vperm.xlu2 %6056, %v767_v34   ;;  %v771_v34 = vld [vmem:[%s6209_s30 + $0x140] sm:$0xff] }
  0xc1   : > { %1333 = vperm.xlu1 %6055, %v1230_v35   ;;  %1330 = vperm.xlu0 %6054, %v1229_v36   ;;  %v1234_v35 = vld [vmem:[%s6214_s1 + $0xb8] sm:$0xff] }
  0xc2   : > { %v6379_v42 = vpop.permute.xlu2 %1285 }
  0xc3   : > { %v2590_v38 = vpop.f32.mrf.mxu2  ;;  %v836_v46 = vpop.permute.xlu1 %835 }
  0xc4   : > { %v2591_v39 = vadd.f32 %v6366_v30, %v2590_v38  ;;  %v833_v50 = vpop.permute.xlu0 %832  ;;  %vm1000_vm7 = vcmp.eq.s32.totalorder %v6332_v5, %v836_v46  ;;  %v6455_v38 = vsel %vm1005_vm6, 1.0, %v8890_v10  ;;  %vm997_vm6 = vcmp.eq.s32.totalorder %v6332_v5, %v6368_v31 }
  0xc5   : > { %vm999_vm8 = vcmp.eq.s32.totalorder %v6332_v5, %v833_v50  ;;  %v6384_v51 = vsel %vm1000_vm7, 1.0, %v8890_v10  ;;  %v1236_v50 = vld [vmem:[%s6214_s1 + $0xc8] sm:$0xff]  ;;  %v5318_v1 = vsel %vm997_vm6, 1.0, %v8890_v10 }
  0xc6   : > { %v2749_v45 = vmax.f32 %v2591_v39, 0.0  ;;  %v6387_v52 = vsel %vm999_vm8, 1.0, %v8890_v10  ;;  %vm1470_vm8 = vcmp.eq.s32.totalorder %v6332_v5, %v6379_v42  ;;  %v5998_v42 = vld [vmem:[%s6223_s17 + $0x58] sm:$0xff] }
  0xc7   : > { %v1185_v56 = vpack.c.bf16 %v6384_v51, %v6387_v52 }
  0xc8   : > { %5657 = vmatmul.msk.bf16.gmra.mxu2 %vm2482_vm1, %v5996_v40  ;;  %v2812_v53 = vpack.c.bf16 %v2749_v45, %v2748_v44  ;;  %1339 = vperm.xlu2 %6056, %v1232_v55   ;;  %v773_v45 = vld [vmem:[%s6209_s30 + $0x150] sm:$0xff] }
  0xc9   : > { %1336 = vperm.xlu1 %6055, %v1231_v57   ;;  %907 = vperm.xlu0 %6054, %v768_v59   ;;  %v5375_v59 = vsel %vm1470_vm8, 1.0, %v8890_v10 }
  0xca   : > { %5688 = vmatmul.msk.bf16.vlgmr.msra.gmra.mxu3 %vm2864_vm9, %v2812_v53  ;;  %v6405_v54 = vpop.permute.xlu2 %1288  ;;  %v1235_v53 = vld [vmem:[%s6214_s1 + $0xc0] sm:$0xff] }
  0xcb   : > { %v2593_v60 = vpop.f32.mrf.mxu2  ;;  %v845_v2 = vpop.permute.xlu1 %844 }
  0xcc   : > { %v842_v3 = vpop.permute.xlu0 %841  ;;  %vm1003_vm14 = vcmp.eq.s32.totalorder %v6332_v5, %v845_v2  ;;  %v2594_v14 = vadd.f32 %v6366_v30, %v2593_v60 }
  0xcd   : > { %vm1002_vm15 = vcmp.eq.s32.totalorder %v6332_v5, %v842_v3  ;;  %v6416_v6 = vsel %vm1003_vm14, 1.0, %v8890_v10  ;;  %vm996_vm14 = vcmp.eq.s32.totalorder %v6332_v5, %v6370_v32 }
  0xce   : > { %v6419_v7 = vsel %vm1002_vm15, 1.0, %v8890_v10  ;;  %v1187_v9 = vpack.c.bf16 %v6411_v0, %v6416_v6  ;;  %v2750_v19 = vmax.f32 %v2594_v14, 0.0  ;;  %v5317_v32 = vsel %vm996_vm14, 1.0, %v8890_v10 }
  0xcf   : > { %v1186_v11 = vpack.c.bf16 %v6419_v7, %v6408_v62 }
  0xd0   : > { %5454 = vmatmul.msk.bf16.gmra.mxu0 %vm1715_vm4, %v1181_v4  ;;  %1342 = vperm.xlu2 %6056, %v1233_v8  }
  0xd1   : > { %913 = vperm.xlu1 %6055, %v770_v12   ;;  %910 = vperm.xlu0 %6054, %v769_v13  }
  0xd2   : > { %v6432_v18 = vpop.permute.xlu2 %865 }
  0xd3   : > { %v2595_v15 = vpop.f32.mrf.mxu2  ;;  %v1280_v23 = vpop.permute.xlu1 %1279  ;;  %vm1010_vm15 = vcmp.eq.s32.totalorder %v6332_v5, %v6432_v18  ;;  %v1183_v18 = vpack.c.bf16 %v5317_v32, %v5316_v58  ;;  %v1241_v58 = vld [vmem:[%s6214_s1 + $0xf0] sm:$0xff] }
  0xd4   : > { %v2596_v16 = vadd.f32 %v6366_v30, %v2595_v15  ;;  %v1277_v24 = vpop.permute.xlu0 %1276  ;;  %vm1468_vm0 = vcmp.eq.s32.totalorder %v6332_v5, %v1280_v23 }
  0xd5   : > { %vm1467_vm2 = vcmp.eq.s32.totalorder %v6332_v5, %v1277_v24  ;;  %v5373_v25 = vsel %vm1468_vm0, 1.0, %v8890_v10 }
  0xd6   : > { %v2751_v20 = vmax.f32 %v2596_v16, 0.0  ;;  %v5372_v26 = vsel %vm1467_vm2, 1.0, %v8890_v10  ;;  %v1238_v16 = vld [vmem:[%s6214_s1 + $0xd8] sm:$0xff]  ;;  %vm1471_vm2 = vcmp.eq.s32.totalorder %v6332_v5, %v6405_v54 }
  0xd7   : > { %v1659_v33 = vpack.c.bf16 %v5373_v25, %v5372_v26  ;;  %v6504_v25 = vsel %vm1010_vm15, 1.0, %v8890_v10 }
  0xd8   : > { %5658 = vmatmul.msk.bf16.gmra.mxu2 %vm2482_vm1, %v5997_v17  ;;  %v2813_v27 = vpack.c.bf16 %v2751_v20, %v2750_v19  ;;  %919 = vperm.xlu2 %6056, %v772_v28   ;;  %v1237_v19 = vld [vmem:[%s6214_s1 + $0xd0] sm:$0xff]  ;;  %v774_v20 = vld [vmem:[%s6209_s30 + $0x158] sm:$0xff] }
  0xd9   : > { %5484 = vmatmul.msk.bf16.vlgmr.msra.gmra.mxu1 %vm1715_vm4, %v1659_v33  ;;  %916 = vperm.xlu1 %6055, %v771_v34   ;;  %v1239_v33 = vld [vmem:[%s6214_s1 + $0xe0] sm:$0xff] }
  0xda   : > { %5689 = vmatmul.msk.bf16.gmra.mxu3 %vm2864_vm9, %v2813_v27  ;;  %1345 = vperm.xlu0 %6054, %v1234_v35   ;;  %v6452_v22 = vpop.permute.xlu2 %868  ;;  %v776_v35 = vld [vmem:[%s6209_s30 + $0x168] sm:$0xff] }
  0xdb   : > { %v2598_v36 = vpop.f32.mrf.mxu2  ;;  %v1283_v39 = vpop.permute.xlu1 %1282 }
  0xdc   : > { %v854_v40 = vpop.permute.xlu0 %853  ;;  %vm1469_vm10 = vcmp.eq.s32.totalorder %v6332_v5, %v1283_v39  ;;  %v2599_v55 = vadd.f32 %v6366_v30, %v2598_v36  ;;  %v775_v36 = vld [vmem:[%s6209_s30 + $0x160] sm:$0xff]  ;;  %v5376_v39 = vsel %vm1471_vm2, 1.0, %v8890_v10 }
  0xdd   : > { %vm1006_vm7 = vcmp.eq.s32.totalorder %v6332_v5, %v854_v40  ;;  %v5374_v60 = vsel %vm1469_vm10, 1.0, %v8890_v10 }
  0xde   : > { %v6459_v44 = vsel %vm1006_vm7, 1.0, %v8890_v10  ;;  %v2752_v2 = vmax.f32 %v2599_v55, 0.0  ;;  %v1660_v12 = vpack.c.bf16 %v5375_v59, %v5374_v60  ;;  %vm1011_vm7 = vcmp.eq.s32.totalorder %v6332_v5, %v6452_v22 }
  0xdf   : > { %v1188_v46 = vpack.c.bf16 %v6459_v44, %v6455_v38 }
  0xe0   : > { %5455 = vmatmul.msk.bf16.gmra.mxu0 %vm1715_vm4, %v1182_v29  ;;  %922 = vperm.xlu2 %6056, %v773_v45   ;;  %v5999_v29 = vld [vmem:[%s6223_s17 + $0x60] sm:$0xff] }
  0xe1   : > { %1351 = vperm.xlu1 %6055, %v1236_v50  }
  0xe2   : > { %1348 = vperm.xlu0 %6054, %v1235_v53   ;;  %v6475_v61 = vpop.permute.xlu2 %1303 }
  0xe3   : > { %v2600_v57 = vpop.f32.mrf.mxu2  ;;  %v860_v4 = vpop.permute.xlu1 %859 }
  0xe4   : > { %v2601_v48 = vadd.f32 %v6366_v30, %v2600_v57  ;;  %v857_v8 = vpop.permute.xlu0 %856  ;;  %vm1008_vm11 = vcmp.eq.s32.totalorder %v6332_v5, %v860_v4  ;;  %v5319_v4 = vsel %vm998_vm5, 1.0, %v8890_v10 }
  0xe5   : > { %vm1007_vm12 = vcmp.eq.s32.totalorder %v6332_v5, %v857_v8  ;;  %v6480_v13 = vsel %vm1008_vm11, 1.0, %v8890_v10  ;;  %v6543_v8 = vsel %vm1011_vm7, 1.0, %v8890_v10  ;;  %v1184_v22 = vpack.c.bf16 %v5319_v4, %v5318_v1 }
  0xe6   : > { %v2753_v3 = vmax.f32 %v2601_v48, 0.0  ;;  %v6483_v14 = vsel %vm1007_vm12, 1.0, %v8890_v10  ;;  %v778_v48 = vld [vmem:[%s6209_s30 + $0x178] sm:$0xff] }
  0xe7   : > { %v1189_v17 = vpack.c.bf16 %v6480_v13, %v6483_v14 }
  0xe8   : > { %5659 = vmatmul.msk.bf16.gmra.mxu2 %vm2482_vm1, %v5998_v42  ;;  %v2814_v15 = vpack.c.bf16 %v2753_v3, %v2752_v2  ;;  %1357 = vperm.xlu2 %6056, %v1238_v16   ;;  %v777_v42 = vld [vmem:[%s6209_s30 + $0x170] sm:$0xff]  ;;  %v1240_v2 = vld [vmem:[%s6214_s1 + $0xe8] sm:$0xff] }
  0xe9   : > { %5485 = vmatmul.msk.bf16.gmra.mxu1 %vm1715_vm4, %v1660_v12  ;;  %1354 = vperm.xlu1 %6055, %v1237_v19   ;;  %v779_v19 = vld [vmem:[%s6209_s30 + $0x180] sm:$0xff] }
  0xea   : > { %5690 = vmatmul.msk.bf16.gmra.mxu3 %vm2864_vm9, %v2814_v15  ;;  %925 = vperm.xlu0 %6054, %v774_v20   ;;  %v6501_v24 = vpop.permute.xlu2 %1306 }
  0xeb   : > { %v2603_v23 = vpop.f32.mrf.mxu2  ;;  %v863_v26 = vpop.permute.xlu1 %862  ;;  %vm1477_vm6 = vcmp.eq.s32.totalorder %v6332_v5, %v6501_v24 }
  0xec   : > { %v1292_v27 = vpop.permute.xlu0 %1291  ;;  %vm1009_vm0 = vcmp.eq.s32.totalorder %v6332_v5, %v863_v26  ;;  %v2604_v37 = vadd.f32 %v6366_v30, %v2603_v23  ;;  %v1242_v23 = vld [vmem:[%s6214_s1 + $0xf8] sm:$0xff] }
  0xed   : > { %v6508_v28 = vsel %vm1009_vm0, 1.0, %v8890_v10  ;;  %vm1472_vm3 = vcmp.eq.s32.totalorder %v6332_v5, %v1292_v27  ;;  %vm1476_vm0 = vcmp.eq.s32.totalorder %v6332_v5, %v6475_v61 }
  0xee   : > { %v1190_v34 = vpack.c.bf16 %v6504_v25, %v6508_v28  ;;  %v5377_v40 = vsel %vm1472_vm3, 1.0, %v8890_v10  ;;  %v2754_v50 = vmax.f32 %v2604_v37, 0.0  ;;  %v5381_v61 = vsel %vm1476_vm0, 1.0, %v8890_v10 }
  0xef   : > { %v1661_v59 = vpack.c.bf16 %v5377_v40, %v5376_v39 }
  0xf0   : > { %5456 = vmatmul.msk.bf16.gmra.mxu0 %vm1715_vm4, %v1183_v18  ;;  %1360 = vperm.xlu2 %6056, %v1239_v33  }
  0xf1   : > { %931 = vperm.xlu1 %6055, %v776_v35   ;;  %v6000_v35 = vld [vmem:[%s6223_s17 + $0x68] sm:$0xff] }
  0xf2   : > { %928 = vperm.xlu0 %6054, %v775_v36   ;;  %v6524_v45 = vpop.permute.xlu2 %883 }
  0xf3   : > { %v2605_v21 = vpop.f32.mrf.mxu2  ;;  %v1298_v55 = vpop.permute.xlu1 %1297  ;;  %vm1016_vm14 = vcmp.eq.s32.totalorder %v6332_v5, %v6524_v45  ;;  %v1245_v45 = vld [vmem:[%s6214_s1 + $0x110] sm:$0xff] }
  0xf4   : > { %v2606_v54 = vadd.f32 %v6366_v30, %v2605_v21  ;;  %v1295_v57 = vpop.permute.xlu0 %1294  ;;  %vm1474_vm10 = vcmp.eq.s32.totalorder %v6332_v5, %v1298_v55  ;;  %v1244_v55 = vld [vmem:[%s6214_s1 + $0x108] sm:$0xff] }
  0xf5   : > { %vm1473_vm11 = vcmp.eq.s32.totalorder %v6332_v5, %v1295_v57  ;;  %v5379_v27 = vsel %vm1474_vm10, 1.0, %v8890_v10 }
  0xf6   : > { %v2755_v53 = vmax.f32 %v2606_v54, 0.0  ;;  %v5378_v18 = vsel %vm1473_vm11, 1.0, %v8890_v10 }
  0xf7   : > { %v1662_v54 = vpack.c.bf16 %v5379_v27, %v5378_v18 }
  0xf8   : > { %5660 = vmatmul.msk.bf16.gmra.mxu2 %vm2482_vm1, %v5999_v29  ;;  %v2815_v60 = vpack.c.bf16 %v2755_v53, %v2754_v50  ;;  %937 = vperm.xlu2 %6056, %v778_v48  }
  0xf9   : > { %5486 = vmatmul.msk.bf16.gmra.mxu1 %vm1715_vm4, %v1661_v59  ;;  %934 = vperm.xlu1 %6055, %v777_v42   ;;  %v1243_v59 = vld [vmem:[%s6214_s1 + $0x100] sm:$0xff] }
  0xfa   : > { %5691 = vmatmul.msk.bf16.gmra.mxu3 %vm2864_vm9, %v2815_v60  ;;  %1363 = vperm.xlu0 %6054, %v1240_v2   ;;  %v6540_v31 = vpop.permute.xlu2 %886  ;;  %v780_v60 = vld [vmem:[%s6209_s30 + $0x188] sm:$0xff]  ;;  %v6585_v2 = vsel %vm1016_vm14, 1.0, %v8890_v10 }
  0xfb   : > { %v2608_v3 = vpop.f32.mrf.mxu2  ;;  %v1301_v12 = vpop.permute.xlu1 %1300  ;;  %vm1017_vm3 = vcmp.eq.s32.totalorder %v6332_v5, %v6540_v31 }
  0xfc   : > { %v872_v15 = vpop.permute.xlu0 %871  ;;  %v2609_v32 = vadd.f32 %v6366_v30, %v2608_v3  ;;  %vm1475_vm2 = vcmp.eq.s32.totalorder %v6332_v5, %v1301_v12 }
  0xfd   : > { %vm1012_vm8 = vcmp.eq.s32.totalorder %v6332_v5, %v872_v15  ;;  %v5380_v12 = vsel %vm1475_vm2, 1.0, %v8890_v10  ;;  %v1261_v15 = vld [vmem:[%s6214_s1 + $0x190] sm:$0xff] }
  0xfe   : > { %v6547_v16 = vsel %vm1012_vm8, 1.0, %v8890_v10  ;;  %v2756_v37 = vmax.f32 %v2609_v32, 0.0 }
 0x100   : > { %5457 = vmatmul.msk.bf16.gmra.mxu0 %vm1715_vm4, %v1184_v22  ;;  %940 = vperm.xlu2 %6056, %v779_v19   ;;  %v782_v22 = vld [vmem:[%s6209_s30 + $0x198] sm:$0xff]  ;;  %v781_v19 = vld [vmem:[%s6209_s30 + $0x190] sm:$0xff] }
 0x101   : > { %1369 = vperm.xlu1 %6055, %v1242_v23  }
 0x102   : > { %1366 = vperm.xlu0 %6054, %v1241_v58   ;;  %v6562_v36 = vpop.permute.xlu2 %1321 }
 0x103   : > { %v2610_v26 = vpop.f32.mrf.mxu2  ;;  %v878_v39 = vpop.permute.xlu1 %877  ;;  %vm1482_vm2 = vcmp.eq.s32.totalorder %v6332_v5, %v6562_v36 }
 0x104   : > { %v2611_v33 = vadd.f32 %v6366_v30, %v2610_v26  ;;  %v875_v40 = vpop.permute.xlu0 %874  ;;  %vm1014_vm12 = vcmp.eq.s32.totalorder %v6332_v5, %v878_v39  ;;  %v6001_v26 = vld [vmem:[%s6223_s17 + $0x70] sm:$0xff]  ;;  %v1246_v39 = vld [vmem:[%s6214_s1 + $0x118] sm:$0xff] }
 0x105   : > { %vm1013_vm13 = vcmp.eq.s32.totalorder %v6332_v5, %v875_v40  ;;  %v6567_v29 = vsel %vm1014_vm12, 1.0, %v8890_v10 }
 0x106   : > { %v2757_v21 = vmax.f32 %v2611_v33, 0.0  ;;  %v6570_v50 = vsel %vm1013_vm13, 1.0, %v8890_v10  ;;  %v1663_v33 = vpack.c.bf16 %v5381_v61, %v5380_v12 }
 0x108   : > { %5661 = vmatmul.msk.bf16.gmra.mxu2 %vm2482_vm1, %v6000_v35  ;;  %v2816_v53 = vpack.c.bf16 %v2757_v21, %v2756_v37  ;;  %1375 = vperm.xlu2 %6056, %v1244_v55   ;;  %v784_v37 = vld [vmem:[%s6209_s30 + $0x1a8] sm:$0xff]  ;;  %v783_v21 = vld [vmem:[%s6209_s30 + $0x1a0] sm:$0xff] }
 0x109   : > { %5487 = vmatmul.msk.bf16.gmra.mxu1 %vm1715_vm4, %v1662_v54  ;;  %1372 = vperm.xlu1 %6055, %v1243_v59  }
 0x10a   : > { %5692 = vmatmul.msk.bf16.gmra.mxu3 %vm2864_vm9, %v2816_v53  ;;  %943 = vperm.xlu0 %6054, %v780_v60   ;;  %v6582_v42 = vpop.permute.xlu2 %1324  ;;  %v6625_v53 = vsel %vm1017_vm3, 1.0, %v8890_v10  ;;  %v785_v60 = vld [vmem:[%s6209_s30 + $0x1b0] sm:$0xff] }
 0x10b   : > { %v2613_v48 = vpop.f32.mrf.mxu2  ;;  %v881_v3 = vpop.permute.xlu1 %880 }
 0x10c   : > { %v1310_v4 = vpop.permute.xlu0 %1309  ;;  %vm1015_vm15 = vcmp.eq.s32.totalorder %v6332_v5, %v881_v3  ;;  %v2614_v23 = vadd.f32 %v6366_v30, %v2613_v48  ;;  %v1248_v3 = vld [vmem:[%s6214_s1 + $0x128] sm:$0xff]  ;;  %v1258_v48 = vld [vmem:[%s6214_s1 + $0x178] sm:$0xff] }
 0x10d   : > { %v6589_v1 = vsel %vm1015_vm15, 1.0, %v8890_v10  ;;  %vm1478_vm7 = vcmp.eq.s32.totalorder %v6332_v5, %v1310_v4 }
 0x10e   : > { %v2758_v18 = vmax.f32 %v2614_v23, 0.0  ;;  %v5382_v23 = vsel %vm1477_vm6, 1.0, %v8890_v10  ;;  %v5383_v24 = vsel %vm1478_vm7, 1.0, %v8890_v10 }
 0x110   : > { %5458 = vmatmul.msk.bf16.gmra.mxu0 %vm1715_vm4, %v1185_v56  ;;  %1378 = vperm.xlu2 %6056, %v1245_v45   ;;  %v1247_v45 = vld [vmem:[%s6214_s1 + $0x120] sm:$0xff] }
 0x111   : > { %949 = vperm.xlu1 %6055, %v782_v22  }
 0x112   : > { %946 = vperm.xlu0 %6054, %v781_v19   ;;  %v6608_v27 = vpop.permute.xlu2 %901 }
 0x113   : > { %v2615_v58 = vpop.f32.mrf.mxu2  ;;  %v6610_v52 = vpop.permute.xlu1 %1315  ;;  %vm1022_vm11 = vcmp.eq.s32.totalorder %v6332_v5, %v6608_v27 }
 0x114   : > { %v2616_v32 = vadd.f32 %v6366_v30, %v2615_v58  ;;  %v6612_v56 = vpop.permute.xlu0 %1312  ;;  %v6002_v58 = vld [vmem:[%s6223_s17 + $0x78] sm:$0xff]  ;;  %vm1480_vm13 = vcmp.eq.s32.totalorder %v6332_v5, %v6610_v52 }
 0x115   : > { %vm1479_vm14 = vcmp.eq.s32.totalorder %v6332_v5, %v6612_v56  ;;  %v5385_v52 = vsel %vm1480_vm13, 1.0, %v8890_v10 }
 0x116   : > { %v2759_v51 = vmax.f32 %v2616_v32, 0.0  ;;  %v1664_v32 = vpack.c.bf16 %v5383_v24, %v5382_v23  ;;  %v788_v23 = vld [vmem:[%s6209_s30 + $0x1c8] sm:$0xff]  ;;  %v787_v24 = vld [vmem:[%s6209_s30 + $0x1c0] sm:$0xff]  ;;  %v5384_v56 = vsel %vm1479_vm14, 1.0, %v8890_v10 }
 0x118   : > { %5662 = vmatmul.msk.bf16.gmra.mxu2 %vm2482_vm1, %v6001_v26  ;;  %v2817_v35 = vpack.c.bf16 %v2759_v51, %v2758_v18  ;;  %955 = vperm.xlu2 %6056, %v784_v37   ;;  %v1249_v37 = vld [vmem:[%s6214_s1 + $0x130] sm:$0xff] }
 0x119   : > { %5488 = vmatmul.msk.bf16.gmra.mxu1 %vm1715_vm4, %v1663_v33  ;;  %952 = vperm.xlu1 %6055, %v783_v21   ;;  %v1250_v33 = vld [vmem:[%s6214_s1 + $0x138] sm:$0xff] }
 0x11a   : > { %5693 = vmatmul.msk.bf16.gmra.mxu3 %vm2864_vm9, %v2817_v35  ;;  %1381 = vperm.xlu0 %6054, %v1246_v39   ;;  %v6622_v54 = vpop.permute.xlu2 %904  ;;  %v786_v21 = vld [vmem:[%s6209_s30 + $0x1b8] sm:$0xff]  ;;  %v1259_v35 = vld [vmem:[%s6214_s1 + $0x180] sm:$0xff] }
 0x11b   : > { %v2618_v40 = vpop.f32.mrf.mxu2  ;;  %v6627_v55 = vpop.permute.xlu1 %1318  ;;  %vm1023_vm15 = vcmp.eq.s32.totalorder %v6332_v5, %v6622_v54 }
 0x11c   : > { %v890_v59 = vpop.permute.xlu0 %889  ;;  %v2619_v22 = vadd.f32 %v6366_v30, %v2618_v40  ;;  %vm1481_vm3 = vcmp.eq.s32.totalorder %v6332_v5, %v6627_v55 }
 0x11d   : > { %vm1018_vm5 = vcmp.eq.s32.totalorder %v6332_v5, %v890_v59  ;;  %v6673_v59 = vsel %vm1022_vm11, 1.0, %v8890_v10  ;;  %v5386_v36 = vsel %vm1481_vm3, 1.0, %v8890_v10 }
 0x11e   : > { %v6631_v31 = vsel %vm1018_vm5, 1.0, %v8890_v10  ;;  %v2760_v12 = vmax.f32 %v2619_v22, 0.0  ;;  %v1251_v22 = vld [vmem:[%s6214_s1 + $0x140] sm:$0xff] }
 0x120   : > { %5459 = vmatmul.msk.bf16.gmra.mxu0 %vm1715_vm4, %v1186_v11  ;;  %958 = vperm.xlu2 %6056, %v785_v60  }
 0x121   : > { %1387 = vperm.xlu1 %6055, %v1248_v3  }
 0x122   : > { %1384 = vperm.xlu0 %6054, %v1247_v45   ;;  %v6650_v61 = vpop.permute.xlu2 %1339 }
 0x123   : > { %v2620_v19 = vpop.f32.mrf.mxu2  ;;  %v896_v7 = vpop.permute.xlu1 %895 }
 0x124   : > { %v2621_v4 = vadd.f32 %v6366_v30, %v2620_v19  ;;  %v893_v11 = vpop.permute.xlu0 %892  ;;  %vm1020_vm8 = vcmp.eq.s32.totalorder %v6332_v5, %v896_v7 }
 0x125   : > { %vm1019_vm10 = vcmp.eq.s32.totalorder %v6332_v5, %v893_v11  ;;  %v6655_v26 = vsel %vm1020_vm8, 1.0, %v8890_v10 }
 0x126   : > { %v2761_v62 = vmax.f32 %v2621_v4, 0.0  ;;  %v6658_v18 = vsel %vm1019_vm10, 1.0, %v8890_v10  ;;  %vm1483_vm10 = vcmp.eq.s32.totalorder %v6332_v5, %v6582_v42 }
 0x127   : > { %v5388_v42 = vsel %vm1483_vm10, 1.0, %v8890_v10 }
 0x128   : > { %5663 = vmatmul.msk.bf16.gmra.mxu2 %vm2482_vm1, %v6002_v58  ;;  %v2818_v51 = vpack.c.bf16 %v2761_v62, %v2760_v12  ;;  %1393 = vperm.xlu2 %6056, %v1250_v33   ;;  %v6003_v62 = vld [vmem:[%s6223_s17 + $0x80] sm:$0xff] }
 0x129   : > { %5489 = vmatmul.msk.bf16.gmra.mxu1 %vm1715_vm4, %v1664_v32  ;;  %1390 = vperm.xlu1 %6055, %v1249_v37   ;;  %v1665_v32 = vpack.c.bf16 %v5385_v52, %v5384_v56  ;;  %v790_v37 = vld [vmem:[%s6209_s30 + $0x1d8] sm:$0xff]  ;;  %v791_v52 = vld [vmem:[%s6209_s30 + $0x1e0] sm:$0xff]  ;;  %v1260_v56 = vld [vmem:[%s6214_s1 + $0x188] sm:$0xff] }
 0x12a   : > { %5694 = vmatmul.msk.bf16.gmra.mxu3 %vm2864_vm9, %v2818_v51  ;;  %961 = vperm.xlu0 %6054, %v786_v21   ;;  %v6670_v40 = vpop.permute.xlu2 %1342  ;;  %v789_v21 = vld [vmem:[%s6209_s30 + $0x1d0] sm:$0xff] }
 0x12b   : > { %v2623_v39 = vpop.f32.mrf.mxu2  ;;  %v899_v60 = vpop.permute.xlu1 %898 }
 0x12c   : > { %v6675_v3 = vpop.permute.xlu0 %1327  ;;  %vm1021_vm12 = vcmp.eq.s32.totalorder %v6332_v5, %v899_v60  ;;  %v2624_v4 = vadd.f32 %v6366_v30, %v2623_v39  ;;  %v1252_v39 = vld [vmem:[%s6214_s1 + $0x148] sm:$0xff] }
 0x12d   : > { %v6679_v27 = vsel %vm1021_vm12, 1.0, %v8890_v10  ;;  %v6681_v45 = vpop.f32.mrf.mxu0  ;;  %vm1484_vm11 = vcmp.eq.s32.totalorder %v6332_v5, %v6675_v3 }
 0x12e   : > { %8977 = vst [vmem:[#allocation8_spill] sm:$0xff] %v6681_v45  ;;  %v2762_v11 = vmax.f32 %v2624_v4, 0.0  ;;  %v5389_v3 = vsel %vm1484_vm11, 1.0, %v8890_v10  ;;  %vm1489_vm11 = vcmp.eq.s32.totalorder %v6332_v5, %v6670_v40 }
 0x12f   : > { %v1667_v19 = vpack.c.bf16 %v5389_v3, %v5388_v42 }
 0x130   : > { %5460 = vmatmul.msk.bf16.gmra.mxu0 %vm1715_vm4, %v1187_v9  ;;  %1396 = vperm.xlu2 %6056, %v1251_v22  }
 0x131   : > { %967 = vperm.xlu1 %6055, %v788_v23   ;;  %v6720_v23 = vsel %vm1023_vm15, 1.0, %v8890_v10 }
 0x132   : > { %964 = vperm.xlu0 %6054, %v787_v24   ;;  %v6701_v7 = vpop.permute.xlu2 %919 }
 0x133   : > { %v2625_v58 = vpop.f32.mrf.mxu2  ;;  %v6703_v6 = vpop.permute.xlu1 %1333  ;;  %vm1028_vm7 = vcmp.eq.s32.totalorder %v6332_v5, %v6701_v7 }
 0x134   : > { %v2626_v12 = vadd.f32 %v6366_v30, %v2625_v58  ;;  %v6705_v9 = vpop.permute.xlu0 %1330  ;;  %vm1486_vm14 = vcmp.eq.s32.totalorder %v6332_v5, %v6703_v6 }
 0x135   : > { %v6707_v51 = vpop.f32.mrf.mxu0  ;;  %vm1485_vm15 = vcmp.eq.s32.totalorder %v6332_v5, %v6705_v9  ;;  %v5391_v6 = vsel %vm1486_vm14, 1.0, %v8890_v10 }
 0x136   : > { %v2763_v0 = vmax.f32 %v2626_v12, 0.0  ;;  %8978 = vst [vmem:[#allocation9_spill] sm:$0xff] %v6707_v51  ;;  %v1254_v12 = vld [vmem:[%s6214_s1 + $0x158] sm:$0xff]  ;;  %v5390_v20 = vsel %vm1485_vm15, 1.0, %v8890_v10 }
 0x138   : > { %5664 = vmatmul.msk.bf16.gmra.mxu2 %vm2482_vm1, %v6003_v62  ;;  %v2819_v33 = vpack.c.bf16 %v2763_v0, %v2762_v11  ;;  %973 = vperm.xlu2 %6056, %v790_v37   ;;  %v1253_v62 = vld [vmem:[%s6214_s1 + $0x150] sm:$0xff] }
 0x139   : > { %5490 = vmatmul.msk.bf16.gmra.mxu1 %vm1715_vm4, %v1665_v32  ;;  %970 = vperm.xlu1 %6055, %v789_v21   ;;  %v5387_v32 = vsel %vm1482_vm2, 1.0, %v8890_v10 }
 0x13a   : > { %5695 = vmatmul.msk.bf16.gmra.mxu3 %vm2864_vm9, %v2819_v33  ;;  %1399 = vperm.xlu0 %6054, %v1252_v39   ;;  %v6717_v22 = vpop.permute.xlu2 %922  ;;  %v6004_v33 = vld [vmem:[%s6223_s17 + $0x88] sm:$0xff]  ;;  %v1666_v39 = vpack.c.bf16 %v5387_v32, %v5386_v36 }
 0x13b   : > { %v2628_v60 = vpop.f32.mrf.mxu2  ;;  %v6722_v24 = vpop.permute.xlu1 %1336  ;;  %v792_v32 = vld [vmem:[%s6209_s30 + $0x1e8] sm:$0xff]  ;;  %vm1029_vm12 = vcmp.eq.s32.totalorder %v6332_v5, %v6717_v22 }
 0x13c   : > { %v908_v4 = vpop.permute.xlu0 %907  ;;  %v2629_v11 = vadd.f32 %v6366_v30, %v2628_v60 }
 0x13d   : > { %vm1024_vm0 = vcmp.eq.s32.totalorder %v6332_v5, %v908_v4  ;;  %v6728_v58 = vpop.f32.mrf.mxu0 }
 0x13e   : > { %v6726_v54 = vsel %vm1024_vm0, 1.0, %v8890_v10  ;;  %8979 = vst [vmem:[#allocation10_spill] sm:$0xff] %v6728_v58  ;;  %v2764_v21 = vmax.f32 %v2629_v11, 0.0 }
 0x140   : > { %5461 = vmatmul.msk.bf16.gmra.mxu0 %vm1715_vm4, %v1188_v46  ;;  %976 = vperm.xlu2 %6056, %v791_v52  }
 0x141   : > { %1405 = vperm.xlu1 %6055, %v1254_v12  }
 0x142   : > { %1402 = vperm.xlu0 %6054, %v1253_v62   ;;  %v6748_v37 = vpop.permute.xlu2 %1357  ;;  %v1256_v62 = vld [vmem:[%s6214_s1 + $0x168] sm:$0xff] }
 0x143   : > { %v2630_v0 = vpop.f32.mrf.mxu2  ;;  %v914_v44 = vpop.permute.xlu1 %913 }
 0x144   : > { %v2631_v55 = vadd.f32 %v6366_v30, %v2630_v0  ;;  %v911_v46 = vpop.permute.xlu0 %910  ;;  %vm1026_vm5 = vcmp.eq.s32.totalorder %v6332_v5, %v914_v44  ;;  %v1255_v0 = vld [vmem:[%s6214_s1 + $0x160] sm:$0xff] }
 0x145   : > { %vm1025_vm6 = vcmp.eq.s32.totalorder %v6332_v5, %v911_v46  ;;  %v6753_v60 = vsel %vm1026_vm5, 1.0, %v8890_v10  ;;  %v6758_v52 = vpop.f32.mrf.mxu0 }
 0x146   : > { %v2765_v38 = vmax.f32 %v2631_v55, 0.0  ;;  %v6756_v4 = vsel %vm1025_vm6, 1.0, %v8890_v10  ;;  %8980 = vst [vmem:[#allocation11_spill] sm:$0xff] %v6758_v52  ;;  %vm1488_vm6 = vcmp.eq.s32.totalorder %v6332_v5, %v6650_v61 }
 0x148   : > { %5665 = vmatmul.msk.bf16.gmra.mxu2 %vm2482_vm1, %v6004_v33  ;;  %v2820_v12 = vpack.c.bf16 %v2765_v38, %v2764_v21  ;;  %1411 = vperm.xlu2 %6056, %v1256_v62   ;;  %v6775_v21 = vsel %vm1028_vm7, 1.0, %v8890_v10  ;;  %v794_v62 = vld [vmem:[%s6209_s30 + $0x1f8] sm:$0xff]  ;;  %vm1487_vm7 = vcmp.eq.s32.totalorder %v6332_v5, %v6722_v24 }
 0x149   : > { %5491 = vmatmul.msk.bf16.gmra.mxu1 %vm1715_vm4, %v1666_v39  ;;  %1408 = vperm.xlu1 %6055, %v1255_v0   ;;  %v1257_v39 = vld [vmem:[%s6214_s1 + $0x170] sm:$0xff] }
 0x14a   : > { %5696 = vmatmul.msk.bf16.gmra.mxu3 %vm2864_vm9, %v2820_v12  ;;  %979 = vperm.xlu0 %6054, %v792_v32   ;;  %v6772_v33 = vpop.permute.xlu2 %1360  ;;  %v793_v0 = vld [vmem:[%s6209_s30 + $0x1f0] sm:$0xff] }
 0x14b   : > { %v2633_v36 = vpop.f32.mrf.mxu2  ;;  %v917_v38 = vpop.permute.xlu1 %916 }
 0x14c   : > { %v6777_v44 = vpop.permute.xlu0 %1345  ;;  %vm1027_vm8 = vcmp.eq.s32.totalorder %v6332_v5, %v917_v38  ;;  %v2634_v32 = vadd.f32 %v6366_v30, %v2633_v36  ;;  %v6005_v36 = vld [vmem:[%s6223_s17 + $0x90] sm:$0xff] }
 0x14d   : > { %v6770_v55 = vpop.f32.mrf.mxu3  ;;  %v6781_v7 = vsel %vm1027_vm8, 1.0, %v8890_v10  ;;  %v6783_v46 = vpop.f32.mrf.mxu0 }
 0x14e   : > { %8981 = vst [vmem:[#allocation12_spill] sm:$0xff] %v6770_v55  ;;  %v2766_v11 = vmax.f32 %v2634_v32, 0.0 }
 0x14f   : > { %8982 = vst [vmem:[#allocation13_spill] sm:$0xff] %v6783_v46 }
 0x150   : > { %5462 = vmatmul.msk.bf16.gmra.mxu0 %vm1715_vm4, %v1189_v17  ;;  %1414 = vperm.xlu2 %6056, %v1257_v39  }
 0x151   : > { %985 = vperm.xlu1 %6055, %v794_v62  }
 0x152   : > { %982 = vperm.xlu0 %6054, %v793_v0   ;;  %v6809_v39 = vpop.permute.xlu2 %937 }
 0x153   : > { %v2635_v38 = vpop.f32.mrf.mxu2  ;;  %v6805_v14 = vpop.permute.xlu1 %1351  ;;  %vm1034_vm3 = vcmp.eq.s32.totalorder %v6332_v5, %v6809_v39 }
 0x154   : > { %v2636_v63 = vadd.f32 %v6366_v30, %v2635_v38  ;;  %v6807_v17 = vpop.permute.xlu0 %1348 }
 0x155   : > { %v6801_v12 = vpop.f32.mrf.mxu3  ;;  %v6811_v38 = vpop.f32.mrf.mxu0 }
 0x156   : > { %8983 = vst [vmem:[#allocation14_spill] sm:$0xff] %v6801_v12  ;;  %v2767_v13 = vmax.f32 %v2636_v63, 0.0  ;;  %v6813_v62 = vpop.f32.mrf.mxu1  ;;  %v1272_v12 = vld [vmem:[%s6214_s1 + $0x1e8] sm:$0xff] }
 0x157   : > { %8984 = vst [vmem:[#allocation15_spill] sm:$0xff] %v6811_v38 }
 0x158   : > { %5666 = vmatmul.msk.bf16.gmra.mxu2 %vm2482_vm1, %v6005_v36  ;;  %v2821_v0 = vpack.c.bf16 %v2767_v13, %v2766_v11  ;;  %1423 = vperm.xlu2 %6056, %v1260_v56   ;;  %v6826_v11 = vsel %vm1029_vm12, 1.0, %v8890_v10  ;;  %v6006_v13 = vld [vmem:[%s6223_s17 + $0x98] sm:$0xff]  ;;  %vm1490_vm12 = vcmp.eq.s32.totalorder %v6332_v5, %v6777_v44 }
 0x159   : > { %5492 = vmatmul.msk.bf16.gmra.mxu1 %vm1715_vm4, %v1667_v19  ;;  %1420 = vperm.xlu1 %6055, %v1259_v35   ;;  %v1263_v35 = vld [vmem:[%s6214_s1 + $0x1a0] sm:$0xff] }
 0x15a   : > { %5697 = vmatmul.msk.bf16.gmra.mxu3 %vm2864_vm9, %v2821_v0  ;;  %1417 = vperm.xlu0 %6054, %v1258_v48   ;;  %v6839_v48 = vpop.permute.xlu2 %940  ;;  %v1262_v0 = vld [vmem:[%s6214_s1 + $0x198] sm:$0xff] }
 0x15b   : > { %v2638_v63 = vpop.f32.mrf.mxu2  ;;  %v6828_v36 = vpop.permute.xlu1 %1354  ;;  %vm1035_vm8 = vcmp.eq.s32.totalorder %v6332_v5, %v6839_v48 }
 0x15c   : > { %v926_v42 = vpop.permute.xlu0 %925 }
 0x15d   : > { %v6823_v32 = vpop.f32.mrf.mxu3  ;;  %vm1030_vm13 = vcmp.eq.s32.totalorder %v6332_v5, %v926_v42  ;;  %v6834_v19 = vpop.f32.mrf.mxu0  ;;  %v2639_v42 = vadd.f32 %v6366_v30, %v2638_v63 }
 0x15e   : > { %8985 = vst [vmem:[#allocation16_spill] sm:$0xff] %v6823_v32  ;;  %v6832_v22 = vsel %vm1030_vm13, 1.0, %v8890_v10  ;;  %v6836_v3 = vpop.f32.mrf.mxu1 }
 0x15f   : > { %8986 = vst [vmem:[#allocation17_spill] sm:$0xff] %v6834_v19  ;;  %v2768_v9 = vmax.f32 %v2639_v42, 0.0  ;;  %v1668_v42 = vpack.c.bf16 %v5391_v6, %v5390_v20  ;;  %v8990_v6 = vmov 0.0  }
 0x160   : > { %5463 = vmatmul.msk.bf16.gmra.mxu0 %vm1715_vm4, %v1190_v34  ;;  %1432 = vperm.xlu2 %6056, %v1263_v35   ;;  %v5393_v24 = vsel %vm1488_vm6, 1.0, %v8990_v6  ;;  %v5395_v40 = vsel %vm1490_vm12, 1.0, %v8990_v6 }
 0x161   : > { %1429 = vperm.xlu1 %6055, %v1262_v0  }
 0x162   : > { %1426 = vperm.xlu0 %6054, %v1261_v15  }
 0x163   : > { %v2640_v57 = vpop.f32.mrf.mxu2  ;;  %v932_v28 = vpop.permute.xlu1 %931 }
 0x164   : > { %v2641_v56 = vadd.f32 %v6366_v30, %v2640_v57  ;;  %v929_v34 = vpop.permute.xlu0 %928  ;;  %vm1032_vm0 = vcmp.eq.s32.totalorder %v6332_v5, %v932_v28 }
 0x165   : > { %v6858_v63 = vpop.f32.mrf.mxu3  ;;  %vm1031_vm2 = vcmp.eq.s32.totalorder %v6332_v5, %v929_v34  ;;  %v6865_v30 = vsel %vm1032_vm0, 1.0, %v8890_v10  ;;  %v6870_v15 = vpop.f32.mrf.mxu0  ;;  %v1264_v34 = vld [vmem:[%s6214_s1 + $0x1a8] sm:$0xff] }
 0x166   : > { %8987 = vst [vmem:[#allocation18_spill] sm:$0xff] %v6858_v63  ;;  %v2769_v25 = vmax.f32 %v2641_v56, 0.0  ;;  %v6868_v57 = vsel %vm1031_vm2, 1.0, %v8890_v10  ;;  %v6872_v35 = vpop.f32.mrf.mxu1  ;;  %v1266_v56 = vld [vmem:[%s6214_s1 + $0x1b8] sm:$0xff]  ;;  %v6883_v10 = vpop.permute.xlu2 %1375  ;;  %vm1492_vm2 = vcmp.eq.s32.totalorder %v6332_v5, %v6805_v14 }
 0x167   : > { %8988 = vst [vmem:[#allocation19_spill] sm:$0xff] %v6870_v15  ;;  %v5397_v14 = vsel %vm1492_vm2, 1.0, %v8990_v6 }
 0x168   : > { %5667 = vmatmul.msk.bf16.gmra.mxu2 %vm2482_vm1, %v6006_v13  ;;  %v2822_v0 = vpack.c.bf16 %v2769_v25, %v2768_v9  ;;  %1441 = vperm.xlu2 %6056, %v1266_v56   ;;  %v6889_v9 = vsel %vm1034_vm3, 1.0, %v8990_v6  ;;  %v8992_v56 = vpack.c.bf16 %v6547_v16, %v6543_v8  ;;  %v5392_v8 = vsel %vm1487_vm7, 1.0, %v8990_v6 }
 0x169   : > { %5493 = vmatmul.msk.bf16.gmra.mxu1 %vm1715_vm4, %v1668_v42  ;;  %1438 = vperm.xlu1 %6055, %v1265_v41   ;;  %v1269_v41 = vld [vmem:[%s6214_s1 + $0x1d0] sm:$0xff]  ;;  %v1669_v55 = vpack.c.bf16 %v5393_v24, %v5392_v8  ;;  %v6952_v8 = vsel %vm1035_vm8, 1.0, %v8990_v6  ;;  %vm1491_vm3 = vcmp.eq.s32.totalorder %v6332_v5, %v6807_v17  ;;  %vm1494_vm7 = vcmp.eq.s32.totalorder %v6332_v5, %v6748_v37 }
 0x16a   : > { %5698 = vmatmul.msk.bf16.gmra.mxu3 %vm2864_vm9, %v2822_v0  ;;  %1435 = vperm.xlu0 %6054, %v1264_v34   ;;  %vm1493_vm8 = vcmp.eq.s32.totalorder %v6332_v5, %v6828_v36 }
 0x16b   : > { %v2643_v13 = vpop.f32.mrf.mxu2  ;;  %v935_v25 = vpop.permute.xlu1 %934 }
 0x16c   : > { %v6891_v0 = vpop.permute.xlu0 %1363  ;;  %vm1033_vm5 = vcmp.eq.s32.totalorder %v6332_v5, %v935_v25  ;;  %v6911_v25 = vld [vmem:[%s8866_s6] ss:$0 sm:$0xff] }
 0x16d   : > { %v6886_v20 = vpop.f32.mrf.mxu3  ;;  %v6895_v39 = vsel %vm1033_vm5, 1.0, %v8990_v6  ;;  %v6897_v42 = vpop.f32.mrf.mxu0  ;;  %v2644_v47 = vadd.f32 %v6911_v25, %v2643_v13  ;;  %v6007_v13 = vld [vmem:[%s6223_s17 + $0xa0] sm:$0xff] }
 0x16e   : > { %8989 = vst [vmem:[#allocation20_spill] sm:$0xff] %v6886_v20  ;;  %v6899_v28 = vpop.f32.mrf.mxu1  ;;  %v6924_v63 = vpop.permute.xlu2 %1378 }
 0x16f   : > { %8991 = vst [vmem:[#allocation21_spill] sm:$0xff] %v6897_v42  ;;  %v2770_v16 = vmax.f32 %v2644_v47, 0.0  ;;  %v1270_v42 = vld [vmem:[%s6214_s1 + $0x1d8] sm:$0xff] }
 0x170   : > { %5464 = vmatmul.msk.bf16.gmra.mxu0 %vm1715_vm4, %v8992_v56  ;;  %1450 = vperm.xlu2 %6056, %v1269_v41  }
 0x171   : > { %1447 = vperm.xlu1 %6055, %v1268_v43  }
 0x172   : > { %1444 = vperm.xlu0 %6054, %v1267_v49  }
 0x173   : > { %v2645_v34 = vpop.f32.mrf.mxu2  ;;  %v6930_v32 = vpop.permute.xlu1 %1369 }
 0x174   : > { %v2646_v20 = vadd.f32 %v6911_v25, %v2645_v34  ;;  %v6932_v41 = vpop.permute.xlu0 %1366 }
 0x175   : > { %v6926_v61 = vpop.f32.mrf.mxu3  ;;  %v6934_v34 = vpop.f32.mrf.mxu0 }
 0x176   : > { %8993 = vst [vmem:[#allocation22_spill] sm:$0xff] %v6926_v61  ;;  %v2771_v56 = vmax.f32 %v2646_v20, 0.0  ;;  %v6936_v43 = vpop.f32.mrf.mxu1  ;;  %v1271_v61 = vld [vmem:[%s6214_s1 + $0x1e0] sm:$0xff] }
 0x177   : > { %8994 = vst [vmem:[#allocation23_spill] sm:$0xff] %v6934_v34 }
 0x178   : > { %5668 = vmatmul.msk.bf16.gmra.mxu2 %vm2482_vm1, %v6007_v13  ;;  %v2823_v49 = vpack.c.bf16 %v2771_v56, %v2770_v16  ;;  %1459 = vperm.xlu2 %6056, %v1272_v12   ;;  %v1274_v56 = vld [vmem:[%s6214_s1 + $0x1f8] sm:$0xff]  ;;  %v6008_v16 = vld [vmem:[%s6223_s17 + $0xa8] sm:$0xff] }
 0x179   : > { %5494 = vmatmul.msk.bf16.gmra.mxu1 %vm1715_vm4, %v1669_v55  ;;  %1456 = vperm.xlu1 %6055, %v1271_v61   ;;  %v956_v55 = vpop.permute.xlu2 %955 }
 0x17a   : > { %5699 = vmatmul.msk.bf16.gmra.mxu3 %vm2864_vm9, %v2823_v49  ;;  %1453 = vperm.xlu0 %6054, %v1270_v42   ;;  %v1273_v49 = vld [vmem:[%s6214_s1 + $0x1f0] sm:$0xff]  ;;  %vm1040_vm15 = vcmp.eq.s32.totalorder %v6332_v5, %v956_v55  ;;  %s9296_s1 = sld [smem:[#allocation120_spill]] (!%p5944_p6) }
 0x17b   : > { %v2648_v47 = vpop.f32.mrf.mxu2  ;;  %v6948_v13 = vpop.permute.xlu1 %1372 }
 0x17c   : > { %v944_v24 = vpop.permute.xlu0 %943 }
 0x17d   : > { %v6946_v20 = vpop.f32.mrf.mxu3  ;;  %vm1036_vm10 = vcmp.eq.s32.totalorder %v6332_v5, %v944_v24  ;;  %v6961_v42 = vpop.f32.mrf.mxu0  ;;  %v2649_v24 = vadd.f32 %v6911_v25, %v2648_v47  ;;  %v5394_v47 = vsel %vm1489_vm11, 1.0, %v8990_v6 }
 0x17e   : > { %8995 = vst [vmem:[#allocation24_spill] sm:$0xff] %v6946_v20  ;;  %v6955_v12 = vsel %vm1036_vm10, 1.0, %v8990_v6  ;;  %v6957_v61 = vpop.f32.mrf.mxu1  ;;  %v8997_v20 = vpack.c.bf16 %v6567_v29, %v6570_v50 }
 0x17f   : > { %8996 = vst [vmem:[#allocation25_spill] sm:$0xff] %v6961_v42  ;;  %v2772_v15 = vmax.f32 %v2649_v24, 0.0 }
 0x180   : > { %5465 = vmatmul.msk.bf16.gmra.mxu0 %vm1715_vm4, %v8997_v20 }
 0x181   : > { %1465 = vperm.xlu1 %6055, %v1274_v56   ;;  %v1670_v56 = vpack.c.bf16 %v5395_v40, %v5394_v47 }
 0x182   : > { %1462 = vperm.xlu0 %6054, %v1273_v49   ;;  %v959_v49 = vpop.permute.xlu2 %958 }
 0x183   : > { %v2650_v48 = vpop.f32.mrf.mxu2  ;;  %v950_v44 = vpop.permute.xlu1 %949  ;;  %vm1041_vm5 = vcmp.eq.s32.totalorder %v6332_v5, %v959_v49  ;;  %v6010_v49 = vld [vmem:[%s6223_s17 + $0xb8] sm:$0xff] }
 0x184   : > { %v2651_v42 = vadd.f32 %v6911_v25, %v2650_v48  ;;  %v947_v38 = vpop.permute.xlu0 %946  ;;  %vm1038_vm13 = vcmp.eq.s32.totalorder %v6332_v5, %v950_v44 }
 0x185   : > { %v6978_v34 = vpop.f32.mrf.mxu3  ;;  %vm1037_vm14 = vcmp.eq.s32.totalorder %v6332_v5, %v947_v38  ;;  %v6985_v50 = vsel %vm1038_vm13, 1.0, %v8990_v6  ;;  %v6996_v24 = vpop.f32.mrf.mxu0 }
 0x186   : > { %8998 = vst [vmem:[#allocation26_spill] sm:$0xff] %v6978_v34  ;;  %v2773_v19 = vmax.f32 %v2651_v42, 0.0  ;;  %v6988_v20 = vsel %vm1037_vm14, 1.0, %v8990_v6  ;;  %v6990_v48 = vpop.f32.mrf.mxu1  ;;  %v6009_v34 = vld [vmem:[%s6223_s17 + $0xb0] sm:$0xff]  ;;  %vm1495_vm14 = vcmp.eq.s32.totalorder %v6332_v5, %v6772_v33 }
 0x187   : > { %8999 = vst [vmem:[#allocation27_spill] sm:$0xff] %v6996_v24  ;;  %v5396_v24 = vsel %vm1491_vm3, 1.0, %v8990_v6  ;;  %vm1498_vm3 = vcmp.eq.s32.totalorder %v6332_v5, %v6930_v32 }
 0x188   : > { %v2824_v29 = vpack.c.bf16 %v2773_v19, %v2772_v15  ;;  %5669 = vmatmul.msk.bf16.gmra.mxu2 %vm2482_vm1, %v6008_v16  ;;  %v7006_v16 = vsel %vm1040_vm15, 1.0, %v8990_v6  ;;  %vm1496_vm15 = vcmp.eq.s32.totalorder %v6332_v5, %v6891_v0 }
 0x189   : > { %5495 = vmatmul.msk.bf16.gmra.mxu1 %vm1715_vm4, %v1670_v56  ;;  %v5401_v33 = vsel %vm1496_vm15, 1.0, %v8990_v6 }
 0x18a   : > { %5700 = vmatmul.msk.bf16.gmra.mxu3 %vm2864_vm9, %v2824_v29 }
 0x18b   : > { %v2653_v38 = vpop.f32.mrf.mxu2  ;;  %v953_v15 = vpop.permute.xlu1 %952 }
 0x18c   : > { %v7002_v44 = vpop.permute.xlu0 %1381  ;;  %vm1039_vm0 = vcmp.eq.s32.totalorder %v6332_v5, %v953_v15  ;;  %v2654_v56 = vadd.f32 %v6911_v25, %v2653_v38  ;;  %v9001_v15 = vpack.c.bf16 %v6585_v2, %v6589_v1 }
 0x18d   : > { %v7000_v19 = vpop.f32.mrf.mxu3  ;;  %v7009_v47 = vsel %vm1039_vm0, 1.0, %v8990_v6  ;;  %v7030_v55 = vpop.f32.mrf.mxu0 }
 0x18e   : > { %9000 = vst [vmem:[#allocation28_spill] sm:$0xff] %v7000_v19  ;;  %v7011_v40 = vpop.f32.mrf.mxu1  ;;  %v7026_v19 = vpop.permute.xlu2 %1393  ;;  %v2774_v17 = vmax.f32 %v2654_v56, 0.0 }
 0x18f   : > { %9002 = vst [vmem:[#allocation29_spill] sm:$0xff] %v7030_v55 }
 0x190   : > { %5466 = vmatmul.msk.bf16.gmra.mxu0 %vm1715_vm4, %v9001_v15 }
 0x193   : > { %v2655_v42 = vpop.f32.mrf.mxu2  ;;  %v7036_v52 = vpop.permute.xlu1 %1387 }
 0x194   : > { %v2656_v29 = vadd.f32 %v6911_v25, %v2655_v42  ;;  %v7038_v2 = vpop.permute.xlu0 %1384  ;;  %v1671_v42 = vpack.c.bf16 %v5397_v14, %v5396_v24 }
 0x195   : > { %v7032_v38 = vpop.f32.mrf.mxu3  ;;  %v7050_v58 = vpop.f32.mrf.mxu0 }
 0x196   : > { %9003 = vst [vmem:[#allocation30_spill] sm:$0xff] %v7032_v38  ;;  %v2775_v46 = vmax.f32 %v2656_v29, 0.0  ;;  %v7040_v15 = vpop.f32.mrf.mxu1 }
 0x197   : > { %9004 = vst [vmem:[#allocation31_spill] sm:$0xff] %v7040_v15 }
 0x198   : > { %v2825_v1 = vpack.c.bf16 %v2775_v46, %v2774_v17  ;;  %5670 = vmatmul.msk.bf16.gmra.mxu2 %vm2482_vm1, %v6009_v34  ;;  %9006 = vst [vmem:[#allocation33_spill] sm:$0xff] %v7050_v58  ;;  %v7054_v46 = vsel %vm1041_vm5, 1.0, %v8990_v6  ;;  %v7056_v34 = vpop.permute.xlu2 %1396  ;;  %v5399_v17 = vsel %vm1494_vm7, 1.0, %v8990_v6  ;;  %vm1497_vm5 = vcmp.eq.s32.totalorder %v6332_v5, %v6932_v41 }
 0x199   : > { %5496 = vmatmul.msk.bf16.gmra.mxu1 %vm1715_vm4, %v1671_v42  ;;  %v9007_v42 = vpack.c.bf16 %v6631_v31, %v6625_v53 }
 0x19a   : > { %5701 = vmatmul.msk.bf16.gmra.mxu3 %vm2864_vm9, %v2825_v1 }
 0x19b   : > { %v2658_v38 = vpop.f32.mrf.mxu2  ;;  %v7048_v29 = vpop.permute.xlu1 %1390 }
 0x19c   : > { %v962_v56 = vpop.permute.xlu0 %961  ;;  %v2659_v1 = vadd.f32 %v6911_v25, %v2658_v38  ;;  %v5398_v38 = vsel %vm1493_vm8, 1.0, %v8990_v6  ;;  %vm1499_vm8 = vcmp.eq.s32.totalorder %v6332_v5, %v6948_v13  ;;  %vm1505_vm15 = vcmp.eq.s32.totalorder %v6332_v5, %v7048_v29 }
 0x19d   : > { %v7046_v55 = vpop.f32.mrf.mxu3  ;;  %vm1042_vm6 = vcmp.eq.s32.totalorder %v6332_v5, %v962_v56 }
 0x19e   : > { %9005 = vst [vmem:[#allocation32_spill] sm:$0xff] %v7046_v55  ;;  %v7059_v24 = vsel %vm1042_vm6, 1.0, %v8990_v6  ;;  %v7061_v14 = vpop.f32.mrf.mxu1  ;;  %v2776_v51 = vmax.f32 %v2659_v1, 0.0  ;;  %v7093_v1 = vpop.f32.mrf.mxu0 }
 0x19f   : > { %9010 = vst [vmem:[#allocation36_spill] sm:$0xff] %v7093_v1  ;;  %v6011_v1 = vld [vmem:[%s6223_s17 + $0xc0] sm:$0xff] }
 0x1a0   : > { %5467 = vmatmul.msk.bf16.gmra.mxu0 %vm1715_vm4, %v9007_v42 }
 0x1a3   : > { %v2660_v56 = vpop.f32.mrf.mxu2  ;;  %v968_v45 = vpop.permute.xlu1 %967 }
 0x1a4   : > { %v2661_v55 = vadd.f32 %v6911_v25, %v2660_v56  ;;  %v965_v15 = vpop.permute.xlu0 %964  ;;  %vm1044_vm10 = vcmp.eq.s32.totalorder %v6332_v5, %v968_v45  ;;  %v1672_v56 = vpack.c.bf16 %v5399_v17, %v5398_v38  ;;  %v974_v45 = vpop.permute.xlu2 %973 }
 0x1a5   : > { %v7078_v58 = vpop.f32.mrf.mxu3  ;;  %vm1043_vm11 = vcmp.eq.s32.totalorder %v6332_v5, %v965_v15  ;;  %v7085_v31 = vsel %vm1044_vm10, 1.0, %v8990_v6  ;;  %vm1046_vm12 = vcmp.eq.s32.totalorder %v6332_v5, %v974_v45  ;;  %vm1500_vm10 = vcmp.eq.s32.totalorder %v6332_v5, %v6883_v10 }
 0x1a6   : > { %9008 = vst [vmem:[#allocation34_spill] sm:$0xff] %v7078_v58  ;;  %v2777_v37 = vmax.f32 %v2661_v55, 0.0  ;;  %v7088_v36 = vsel %vm1043_vm11, 1.0, %v8990_v6  ;;  %v7090_v42 = vpop.f32.mrf.mxu1  ;;  %v9015_v55 = vpack.c.bf16 %v6655_v26, %v6658_v18  ;;  %v5405_v13 = vsel %vm1500_vm10, 1.0, %v8990_v6 }
 0x1a7   : > { %9009 = vst [vmem:[#allocation35_spill] sm:$0xff] %v7090_v42  ;;  %vm1502_vm11 = vcmp.eq.s32.totalorder %v6332_v5, %v7002_v44 }
 0x1a8   : > { %v2826_v53 = vpack.c.bf16 %v2777_v37, %v2776_v51  ;;  %5671 = vmatmul.msk.bf16.gmra.mxu2 %vm2482_vm1, %v6010_v49  ;;  %v7106_v49 = vsel %vm1046_vm12, 1.0, %v8990_v6  ;;  %vm1501_vm12 = vcmp.eq.s32.totalorder %v6332_v5, %v6924_v63 }
 0x1a9   : > { %5497 = vmatmul.msk.bf16.gmra.mxu1 %vm1715_vm4, %v1672_v56 }
 0x1aa   : > { %5702 = vmatmul.msk.bf16.gmra.mxu3 %vm2864_vm9, %v2826_v53 }
 0x1ab   : > { %v2663_v51 = vpop.f32.mrf.mxu2  ;;  %v971_v37 = vpop.permute.xlu1 %970 }
 0x1ac   : > { %v7102_v58 = vpop.permute.xlu0 %1399  ;;  %vm1045_vm13 = vcmp.eq.s32.totalorder %v6332_v5, %v971_v37  ;;  %v2664_v45 = vadd.f32 %v6911_v25, %v2663_v51  ;;  %v7122_v37 = vpop.f32.mrf.mxu0  ;;  %v5400_v51 = vsel %vm1495_vm14, 1.0, %v8990_v6  ;;  %vm1503_vm14 = vcmp.eq.s32.totalorder %v6332_v5, %v7038_v2 }
 0x1ad   : > { %v7100_v15 = vpop.f32.mrf.mxu3  ;;  %v7109_v17 = vsel %vm1045_vm13, 1.0, %v8990_v6  ;;  %9014 = vst [vmem:[#allocation40_spill] sm:$0xff] %v7122_v37  ;;  %v1673_v18 = vpack.c.bf16 %v5401_v33, %v5400_v51  ;;  %v6012_v51 = vld [vmem:[%s6223_s17 + $0xc8] sm:$0xff]  ;;  %v5403_v33 = vsel %vm1498_vm3, 1.0, %v8990_v6  ;;  %vm1504_vm13 = vcmp.eq.s32.totalorder %v6332_v5, %v7036_v52 }
 0x1ae   : > { %9011 = vst [vmem:[#allocation37_spill] sm:$0xff] %v7100_v15  ;;  %v7111_v38 = vpop.f32.mrf.mxu1  ;;  %v2778_v42 = vmax.f32 %v2664_v45, 0.0  ;;  %vm1507_vm3 = vcmp.eq.s32.totalorder %v6332_v5, %v7056_v34 }
 0x1af   : > { %9012 = vst [vmem:[#allocation38_spill] sm:$0xff] %v7109_v17 }
 0x1b0   : > { %9013 = vst [vmem:[#allocation39_spill] sm:$0xff] %v7111_v38  ;;  %5468 = vmatmul.msk.bf16.gmra.mxu0 %vm1715_vm4, %v9015_v55  ;;  %v977_v55 = vpop.permute.xlu2 %976 }
 0x1b1   : > { %vm1047_vm0 = vcmp.eq.s32.totalorder %v6332_v5, %v977_v55  ;;  %v9022_v55 = vpack.c.bf16 %v6673_v59, %v6679_v27 }
 0x1b3   : > { %v2665_v15 = vpop.f32.mrf.mxu2  ;;  %v7134_v0 = vpop.permute.xlu1 %1405 }
 0x1b4   : > { %v2666_v53 = vadd.f32 %v6911_v25, %v2665_v15  ;;  %v7136_v37 = vpop.permute.xlu0 %1402  ;;  %v7144_v45 = vpop.f32.mrf.mxu0 }
 0x1b5   : > { %v7130_v56 = vpop.f32.mrf.mxu3  ;;  %9018 = vst [vmem:[#allocation43_spill] sm:$0xff] %v7144_v45 }
 0x1b6   : > { %9016 = vst [vmem:[#allocation41_spill] sm:$0xff] %v7130_v56  ;;  %v2779_v38 = vmax.f32 %v2666_v53, 0.0  ;;  %v7138_v26 = vpop.f32.mrf.mxu1 }
 0x1b7   : > { %9017 = vst [vmem:[#allocation42_spill] sm:$0xff] %v7138_v26 }
 0x1b8   : > { %v2827_v17 = vpack.c.bf16 %v2779_v38, %v2778_v42  ;;  %5672 = vmatmul.msk.bf16.gmra.mxu2 %vm2482_vm1, %v6011_v1  ;;  %v7152_v1 = vsel %vm1047_vm0, 1.0, %v8990_v6  ;;  %vm1506_vm0 = vcmp.eq.s32.totalorder %v6332_v5, %v7026_v19 }
 0x1b9   : > { %5498 = vmatmul.msk.bf16.gmra.mxu1 %vm1715_vm4, %v1673_v18  ;;  %9020 = vst [vmem:[#allocation45_spill] sm:$0xff] %v7152_v1 }
 0x1ba   : > { %5703 = vmatmul.msk.bf16.gmra.mxu3 %vm2864_vm9, %v2827_v17 }
 0x1bb   : > { %v2668_v15 = vpop.f32.mrf.mxu2  ;;  %v7148_v56 = vpop.permute.xlu1 %1408 }
 0x1bc   : > { %v980_v42 = vpop.permute.xlu0 %979  ;;  %v2669_v18 = vadd.f32 %v6911_v25, %v2668_v15  ;;  %v5402_v15 = vsel %vm1497_vm5, 1.0, %v8990_v6  ;;  %v7178_v41 = vpop.f32.mrf.mxu0  ;;  %vm1510_vm5 = vcmp.eq.s32.totalorder %v6332_v5, %v7134_v0 }
 0x1bd   : > { %v7146_v53 = vpop.f32.mrf.mxu3  ;;  %vm1048_vm2 = vcmp.eq.s32.totalorder %v6332_v5, %v980_v42  ;;  %9024 = vst [vmem:[#allocation48_spill] sm:$0xff] %v7178_v41 }
 0x1be   : > { %9019 = vst [vmem:[#allocation44_spill] sm:$0xff] %v7146_v53  ;;  %v7155_v17 = vsel %vm1048_vm2, 1.0, %v8990_v6  ;;  %v7157_v38 = vpop.f32.mrf.mxu1  ;;  %v2780_v26 = vmax.f32 %v2669_v18, 0.0  ;;  %vm1508_vm2 = vcmp.eq.s32.totalorder %v6332_v5, %v7102_v58 }
 0x1bf   : > { %9021 = vst [vmem:[#allocation46_spill] sm:$0xff] %v7157_v38  ;;  %v5413_v58 = vsel %vm1508_vm2, 1.0, %v8990_v6 }
 0x1c0   : > { %5469 = vmatmul.msk.bf16.gmra.mxu0 %vm1715_vm4, %v9022_v55 }
 0x1c3   : > { %v2670_v42 = vpop.f32.mrf.mxu2  ;;  %v986_v38 = vpop.permute.xlu1 %985 }
 0x1c4   : > { %v2671_v53 = vadd.f32 %v6911_v25, %v2670_v42  ;;  %v983_v1 = vpop.permute.xlu0 %982  ;;  %vm1050_vm6 = vcmp.eq.s32.totalorder %v6332_v5, %v986_v38 }
 0x1c5   : > { %v7174_v45 = vpop.f32.mrf.mxu3  ;;  %vm1049_vm7 = vcmp.eq.s32.totalorder %v6332_v5, %v983_v1  ;;  %v7183_v27 = vsel %vm1050_vm6, 1.0, %v8990_v6  ;;  %vm1509_vm6 = vcmp.eq.s32.totalorder %v6332_v5, %v7136_v37 }
 0x1c6   : > { %9023 = vst [vmem:[#allocation47_spill] sm:$0xff] %v7174_v45  ;;  %v2781_v32 = vmax.f32 %v2671_v53, 0.0  ;;  %v7186_v55 = vsel %vm1049_vm7, 1.0, %v8990_v6  ;;  %v7188_v42 = vpop.f32.mrf.mxu1  ;;  %v1674_v53 = vpack.c.bf16 %v5403_v33, %v5402_v15  ;;  %v9027_v33 = vpack.c.bf16 %v6726_v54, %v6720_v23 }
 0x1c7   : > { %v5404_v45 = vsel %vm1499_vm8, 1.0, %v8990_v6 }
 0x1c8   : > { %v2828_v59 = vpack.c.bf16 %v2781_v32, %v2780_v26  ;;  %5673 = vmatmul.msk.bf16.gmra.mxu2 %vm2482_vm1, %v6012_v51  ;;  %v7199_v32 = vpop.f32.mrf.mxu0  ;;  %v1675_v54 = vpack.c.bf16 %v5405_v13, %v5404_v45  ;;  %v9031_v45 = vpack.c.bf16 %v6753_v60, %v6756_v4 }
 0x1c9   : > { %5499 = vmatmul.msk.bf16.gmra.mxu1 %vm1715_vm4, %v1674_v53  ;;  %9026 = vst [vmem:[#allocation50_spill] sm:$0xff] %v7199_v32  ;;  %v6013_v53 = vld [vmem:[%s6223_s17 + $0xd0] sm:$0xff] }
 0x1ca   : > { %5704 = vmatmul.msk.bf16.gmra.mxu3 %vm2864_vm9, %v2828_v59 }
 0x1cb   : > { %v2673_v26 = vpop.f32.mrf.mxu2 }
 0x1cc   : > { %v2674_v51 = vadd.f32 %v6911_v25, %v2673_v26 }
 0x1cd   : > { %v7195_v1 = vpop.f32.mrf.mxu3 }
 0x1ce   : > { %9025 = vst [vmem:[#allocation49_spill] sm:$0xff] %v7195_v1  ;;  %v7197_v38 = vpop.f32.mrf.mxu1  ;;  %v2782_v26 = vmax.f32 %v2674_v51, 0.0 }
 0x1d0   : > { %5470 = vmatmul.msk.bf16.gmra.mxu0 %vm1715_vm4, %v9027_v33  ;;  %v7222_v33 = vpop.f32.mrf.mxu0 }
 0x1d1   : > { %9029 = vst [vmem:[#allocation52_spill] sm:$0xff] %v7222_v33 }
 0x1d3   : > { %v2675_v15 = vpop.f32.mrf.mxu2 }
 0x1d4   : > { %v2676_v59 = vadd.f32 %v6911_v25, %v2675_v15 }
 0x1d5   : > { %v7214_v18 = vpop.f32.mrf.mxu3 }
 0x1d6   : > { %9028 = vst [vmem:[#allocation51_spill] sm:$0xff] %v7214_v18  ;;  %v2783_v1 = vmax.f32 %v2676_v59, 0.0  ;;  %v7218_v23 = vpop.f32.mrf.mxu1 }
 0x1d8   : > { %v2829_v32 = vpack.c.bf16 %v2783_v1, %v2782_v26  ;;  %5674 = vmatmul.msk.bf16.gmra.mxu2 %vm2482_vm1, %v6013_v53  ;;  %v6014_v26 = vld [vmem:[%s6223_s17 + $0xd8] sm:$0xff]  ;;  %v7242_v13 = vpop.f32.mrf.mxu0 }
 0x1d9   : > { %5500 = vmatmul.msk.bf16.gmra.mxu1 %vm1715_vm4, %v1675_v54 }
 0x1da   : > { %5705 = vmatmul.msk.bf16.gmra.mxu3 %vm2864_vm9, %v2829_v32 }
 0x1db   : > { %v2678_v10 = vpop.f32.mrf.mxu2 }
 0x1dc   : > { %v2679_v59 = vadd.f32 %v6911_v25, %v2678_v10  ;;  %v5407_v10 = vsel %vm1502_vm11, 1.0, %v8990_v6 }
 0x1dd   : > { %v7225_v15 = vpop.f32.mrf.mxu3 }
 0x1de   : > { %9030 = vst [vmem:[#allocation53_spill] sm:$0xff] %v7225_v15  ;;  %v7227_v51 = vpop.f32.mrf.mxu1  ;;  %v2784_v1 = vmax.f32 %v2679_v59, 0.0  ;;  %v5406_v15 = vsel %vm1501_vm12, 1.0, %v8990_v6 }
 0x1e0   : > { %5471 = vmatmul.msk.bf16.gmra.mxu0 %vm1715_vm4, %v9031_v45  ;;  %v1676_v45 = vpack.c.bf16 %v5407_v10, %v5406_v15  ;;  %v9035_v15 = vpack.c.bf16 %v6775_v21, %v6781_v7 }
 0x1e3   : > { %v2680_v32 = vpop.f32.mrf.mxu2 }
 0x1e4   : > { %v2681_v53 = vadd.f32 %v6911_v25, %v2680_v32 }
 0x1e5   : > { %v7244_v54 = vpop.f32.mrf.mxu3 }
 0x1e6   : > { %9032 = vst [vmem:[#allocation54_spill] sm:$0xff] %v7244_v54  ;;  %v2785_v44 = vmax.f32 %v2681_v53, 0.0  ;;  %v7248_v4 = vpop.f32.mrf.mxu1  ;;  %v7255_v54 = vpop.f32.mrf.mxu0 }
 0x1e7   : > { %9034 = vst [vmem:[#allocation56_spill] sm:$0xff] %v7255_v54 }
 0x1e8   : > { %v2830_v60 = vpack.c.bf16 %v2785_v44, %v2784_v1  ;;  %5675 = vmatmul.msk.bf16.gmra.mxu2 %vm2482_vm1, %v6014_v26  ;;  %v6015_v44 = vld [vmem:[%s6223_s17 + $0xe0] sm:$0xff] }
 0x1e9   : > { %5501 = vmatmul.msk.bf16.gmra.mxu1 %vm1715_vm4, %v1676_v45  ;;  %v5409_v45 = vsel %vm1504_vm13, 1.0, %v8990_v6 }
 0x1ea   : > { %5706 = vmatmul.msk.bf16.gmra.mxu3 %vm2864_vm9, %v2830_v60 }
 0x1eb   : > { %v2683_v63 = vpop.f32.mrf.mxu2 }
 0x1ec   : > { %v2684_v53 = vadd.f32 %v6911_v25, %v2683_v63  ;;  %v5408_v63 = vsel %vm1503_vm14, 1.0, %v8990_v6 }
 0x1ed   : > { %v7253_v32 = vpop.f32.mrf.mxu3  ;;  %v1677_v21 = vpack.c.bf16 %v5409_v45, %v5408_v63  ;;  %v6016_v63 = vld [vmem:[%s6223_s17 + $0xe8] sm:$0xff] }
 0x1ee   : > { %9033 = vst [vmem:[#allocation55_spill] sm:$0xff] %v7253_v32  ;;  %v7257_v59 = vpop.f32.mrf.mxu1  ;;  %v2786_v1 = vmax.f32 %v2684_v53, 0.0  ;;  %v7279_v7 = vpop.f32.mrf.mxu0 }
 0x1f0   : > { %5472 = vmatmul.msk.bf16.gmra.mxu0 %vm1715_vm4, %v9035_v15 }
 0x1f3   : > { %v2685_v26 = vpop.f32.mrf.mxu2 }
 0x1f4   : > { %v2686_v10 = vadd.f32 %v6911_v25, %v2685_v26 }
 0x1f5   : > { %v7272_v60 = vpop.f32.mrf.mxu3 }
 0x1f6   : > { %9036 = vst [vmem:[#allocation57_spill] sm:$0xff] %v7272_v60  ;;  %v2787_v52 = vmax.f32 %v2686_v10, 0.0  ;;  %v7276_v18 = vpop.f32.mrf.mxu1  ;;  %v7292_v10 = vpop.f32.mrf.mxu0 }
 0x1f8   : > { %v2831_v32 = vpack.c.bf16 %v2787_v52, %v2786_v1  ;;  %5676 = vmatmul.msk.bf16.gmra.mxu2 %vm2482_vm1, %v6015_v44  ;;  %v5411_v1 = vsel %vm1506_vm0, 1.0, %v8990_v6 }
 0x1f9   : > { %5502 = vmatmul.msk.bf16.gmra.mxu1 %vm1715_vm4, %v1677_v21  ;;  %v5410_v21 = vsel %vm1505_vm15, 1.0, %v8990_v6 }
 0x1fa   : > { %5707 = vmatmul.msk.bf16.gmra.mxu3 %vm2864_vm9, %v2831_v32  ;;  %v9038_v32 = vpack.c.bf16 %v6832_v22, %v6826_v11  ;;  %v1678_v11 = vpack.c.bf16 %v5411_v1, %v5410_v21  ;;  %v6024_v21 = vld [vmem:[%s8870_s10] sm:$0xff] }
 0x1fb   : > { %v2688_v2 = vpop.f32.mrf.mxu2 }
 0x1fc   : > { %v2689_v53 = vadd.f32 %v6911_v25, %v2688_v2 }
 0x1fd   : > { %v7283_v15 = vpop.f32.mrf.mxu3 }
 0x1fe   : > { %9037 = vst [vmem:[#allocation58_spill] sm:$0xff] %v7283_v15  ;;  %v7285_v26 = vpop.f32.mrf.mxu1  ;;  %v2788_v2 = vmax.f32 %v2689_v53, 0.0  ;;  %v7311_v19 = vpop.f32.mrf.mxu0  ;;  %v6025_v53 = vld [vmem:[%s8870_s10 + $0x8] sm:$0xff] }
 0x1ff   : > { %9040 = vst [vmem:[#allocation60_spill] sm:$0xff] %v7311_v19  ;;  %3316 = vmatpush.bf16.msrb.mxu2 %v6025_v53  ;;  %v5412_v53 = vsel %vm1507_vm3, 1.0, %v8990_v6 }
 0x200   : > { %5473 = vmatmul.msk.bf16.gmra.mxu0 %vm1715_vm4, %v9038_v32 }
 0x203   : > { %v2690_v44 = vpop.f32.mrf.mxu2  ;;  %3317 = vmatpush.bf16.msrb.mxu2 %v6024_v21 }
 0x204   : > { %v2691_v45 = vadd.f32 %v6911_v25, %v2690_v44 }
 0x205   : > { %v7302_v52 = vpop.f32.mrf.mxu3 }
 0x206   : > { %9039 = vst [vmem:[#allocation59_spill] sm:$0xff] %v7302_v52  ;;  %v2789_v29 = vmax.f32 %v2691_v45, 0.0  ;;  %v7306_v60 = vpop.f32.mrf.mxu1 }
 0x208   : > { %v2832_v15 = vpack.c.bf16 %v2789_v29, %v2788_v2  ;;  %5677 = vmatmul.msk.bf16.gmra.mxu2 %vm2482_vm1, %v6016_v63  ;;  %v6017_v29 = vld [vmem:[%s6223_s17 + $0xf0] sm:$0xff] }
 0x209   : > { %5503 = vmatmul.msk.bf16.gmra.mxu1 %vm1715_vm4, %v1678_v11 }
 0x20a   : > { %5708 = vmatmul.msk.bf16.gmra.mxu3 %vm2864_vm9, %v2832_v15  ;;  %v9042_v15 = vpack.c.bf16 %v6865_v30, %v6868_v57  ;;  %v7339_v57 = vpop.f32.mrf.mxu0 }
 0x20b   : > { %v2693_v22 = vpop.f32.mrf.mxu2  ;;  %9044 = vst [vmem:[#allocation63_spill] sm:$0xff] %v7339_v57 }
 0x20c   : > { %v2694_v1 = vadd.f32 %v6911_v25, %v2693_v22 }
 0x20d   : > { %v7313_v32 = vpop.f32.mrf.mxu3 }
 0x20e   : > { %9041 = vst [vmem:[#allocation61_spill] sm:$0xff] %v7313_v32  ;;  %v7318_v44 = vpop.f32.mrf.mxu1  ;;  %v2790_v22 = vmax.f32 %v2694_v1, 0.0 }
 0x210   : > { %5474 = vmatmul.msk.bf16.gmra.mxu0 %vm1715_vm4, %v9042_v15 }
 0x213   : > { %v2695_v63 = vpop.f32.mrf.mxu2 }
 0x214   : > { %v2696_v2 = vadd.f32 %v6911_v25, %v2695_v63  ;;  %v1679_v63 = vpack.c.bf16 %v5413_v58, %v5412_v53 }
 0x215   : > { %v7336_v11 = vpop.f32.mrf.mxu3 }
 0x216   : > { %9043 = vst [vmem:[#allocation62_spill] sm:$0xff] %v7336_v11  ;;  %v2791_v30 = vmax.f32 %v2696_v2, 0.0  ;;  %v7342_v45 = vpop.f32.mrf.mxu1  ;;  %v7351_v2 = vpop.f32.mrf.mxu0 }
 0x217   : > { %9046 = vst [vmem:[#allocation65_spill] sm:$0xff] %v7351_v2 }
 0x218   : > { %v2833_v15 = vpack.c.bf16 %v2791_v30, %v2790_v22  ;;  %5678 = vmatmul.msk.bf16.gmra.mxu2 %vm2482_vm1, %v6017_v29  ;;  %v9047_v29 = vpack.c.bf16 %v6889_v9, %v6895_v39  ;;  %v5415_v22 = vsel %vm1510_vm5, 1.0, %v8990_v6 }
 0x219   : > { %5504 = vmatmul.msk.bf16.gmra.mxu1 %vm1715_vm4, %v1679_v63 }
 0x21a   : > { %5709 = vmatmul.msk.bf16.gmra.mxu3 %vm2864_vm9, %v2833_v15  ;;  %v6018_v15 = vld [vmem:[%s6223_s17 + $0xf8] sm:$0xff] }
 0x21b   : > { %v2698_v34 = vpop.f32.mrf.mxu2 }
 0x21c   : > { %v2699_v30 = vadd.f32 %v6911_v25, %v2698_v34  ;;  %v5414_v34 = vsel %vm1509_vm6, 1.0, %v8990_v6 }
 0x21d   : > { %v7347_v21 = vpop.f32.mrf.mxu3  ;;  %v1680_v9 = vpack.c.bf16 %v5415_v22, %v5414_v34 }
 0x21e   : > { %9045 = vst [vmem:[#allocation64_spill] sm:$0xff] %v7347_v21  ;;  %v7349_v1 = vpop.f32.mrf.mxu1  ;;  %v2792_v21 = vmax.f32 %v2699_v30, 0.0  ;;  %v7374_v39 = vpop.f32.mrf.mxu0 }
 0x21f   : > { %9049 = vst [vmem:[#allocation67_spill] sm:$0xff] %v7374_v39 }
 0x220   : > { %5475 = vmatmul.msk.bf16.gmra.mxu0 %vm1715_vm4, %v9047_v29 }
 0x223   : > { %v2700_v58 = vpop.f32.mrf.mxu2 }
 0x224   : > { %v2701_v53 = vadd.f32 %v6911_v25, %v2700_v58 }
 0x225   : > { %v7366_v63 = vpop.f32.mrf.mxu3 }
 0x226   : > { %9048 = vst [vmem:[#allocation66_spill] sm:$0xff] %v7366_v63  ;;  %v2793_v0 = vmax.f32 %v2701_v53, 0.0  ;;  %v7370_v32 = vpop.f32.mrf.mxu1  ;;  %v7392_v34 = vpop.f32.mrf.mxu0 }
 0x227   : > { %9052 = vst [vmem:[#allocation69_spill] sm:$0xff] %v7392_v34 }
 0x228   : > { %v2834_v11 = vpack.c.bf16 %v2793_v0, %v2792_v21  ;;  %5679 = vmatmul.msk.bf16.gmra.mxu2 %vm2482_vm1, %v6018_v15  ;;  %v1412_v21 = vpop.permute.xlu2 %1411  ;;  %vm1511_vm1 = vcmp.eq.s32.totalorder %v6332_v5, %v7148_v56 }
 0x229   : > { %5505 = vmatmul.msk.bf16.gmra.mxu1 %vm1715_vm4, %v1680_v9  ;;  %vm1512_vm7 = vcmp.eq.s32.totalorder %v6332_v5, %v1412_v21  ;;  %v5416_v9 = vsel %vm1511_vm1, 1.0, %v8990_v6 }
 0x22a   : > { %5710 = vmatmul.msk.bf16.gmra.mxu3 %vm2864_vm9, %v2834_v11  ;;  %v9051_v11 = vpack.c.bf16 %v6955_v12, %v6952_v8  ;;  %v5417_v56 = vsel %vm1512_vm7, 1.0, %v8990_v6  ;;  %v9054_v8 = vpack.c.bf16 %v6836_v3, %v6813_v62  ;;  %v9057_v3 = vpack.c.bf16 %v6985_v50, %v6988_v20 }
 0x22b   : > { %v2703_v37 = vpop.f32.mrf.mxu2  ;;  %v1681_v12 = vpack.c.bf16 %v5417_v56, %v5416_v9  ;;  %v9059_v50 = vpack.c.bf16 %v6899_v28, %v6872_v35 }
 0x22c   : > { %v2704_v53 = vadd.f32 %v6911_v25, %v2703_v37 }
 0x22d   : > { %v7377_v29 = vpop.f32.mrf.mxu3 }
 0x22e   : > { %9050 = vst [vmem:[#allocation68_spill] sm:$0xff] %v7377_v29  ;;  %v7379_v58 = vpop.f32.mrf.mxu1  ;;  %v2794_v37 = vmax.f32 %v2704_v53, 0.0  ;;  %v7408_v53 = vpop.f32.mrf.mxu0 }
 0x22f   : > { %9056 = vst [vmem:[#allocation72_spill] sm:$0xff] %v7408_v53 }
 0x230   : > { %5476 = vmatmul.msk.bf16.gmra.mxu0 %vm1715_vm4, %v9051_v11 }
 0x233   : > { %v2705_v22 = vpop.f32.mrf.mxu2 }
 0x234   : > { %v2706_v15 = vadd.f32 %v6911_v25, %v2705_v22  ;;  %v1418_v22 = vpop.permute.xlu0 %1417 }
 0x235   : > { %v7394_v0 = vpop.f32.mrf.mxu3  ;;  %vm1514_vm8 = vcmp.eq.s32.totalorder %v6332_v5, %v1418_v22 }
 0x236   : > { %9053 = vst [vmem:[#allocation70_spill] sm:$0xff] %v7394_v0  ;;  %v2795_v30 = vmax.f32 %v2706_v15, 0.0  ;;  %v7398_v63 = vpop.f32.mrf.mxu1 }
 0x238   : > { %v2835_v29 = vpack.c.bf16 %v2795_v30, %v2794_v37  ;;  %5728 = vmatmul.msk.bf16.vlgmr.msrb.gmra.mxu2 %vm2864_vm9, %v9054_v8  ;;  %v1415_v37 = vpop.permute.xlu2 %1414  ;;  %v5419_v8 = vsel %vm1514_vm8, 1.0, %v8990_v6 }
 0x239   : > { %5506 = vmatmul.msk.bf16.gmra.mxu1 %vm1715_vm4, %v1681_v12  ;;  %vm1513_vm10 = vcmp.eq.s32.totalorder %v6332_v5, %v1415_v37 }
 0x23a   : > { %5711 = vmatmul.msk.bf16.gmra.mxu3 %vm2864_vm9, %v2835_v29 }
 0x23b   : > { %v2708_v21 = vpop.f32.mrf.mxu2 }
 0x23c   : > { %v2709_v62 = vadd.f32 %v6911_v25, %v2708_v21  ;;  %v5418_v21 = vsel %vm1513_vm10, 1.0, %v8990_v6 }
 0x23d   : > { %v7406_v11 = vpop.f32.mrf.mxu3  ;;  %v1682_v20 = vpack.c.bf16 %v5419_v8, %v5418_v21 }
 0x23e   : > { %9055 = vst [vmem:[#allocation71_spill] sm:$0xff] %v7406_v11  ;;  %v7410_v15 = vpop.f32.mrf.mxu1  ;;  %v2796_v12 = vmax.f32 %v2709_v62, 0.0 }
 0x240   : > { %5477 = vmatmul.msk.bf16.gmra.mxu0 %vm1715_vm4, %v9057_v3  ;;  %v7432_v3 = vpop.f32.mrf.mxu0 }
 0x243   : > { %v2710_v29 = vpop.f32.mrf.mxu2 }
 0x244   : > { %v2711_v9 = vadd.f32 %v6911_v25, %v2710_v29  ;;  %v1421_v29 = vpop.permute.xlu1 %1420 }
 0x245   : > { %v7422_v56 = vpop.f32.mrf.mxu3  ;;  %vm1515_vm11 = vcmp.eq.s32.totalorder %v6332_v5, %v1421_v29 }
 0x246   : > { %9058 = vst [vmem:[#allocation73_spill] sm:$0xff] %v7422_v56  ;;  %v2797_v30 = vmax.f32 %v2711_v9, 0.0  ;;  %v7426_v22 = vpop.f32.mrf.mxu1 }
 0x248   : > { %v2836_v11 = vpack.c.bf16 %v2797_v30, %v2796_v12  ;;  %5729 = vmatmul.msk.bf16.gmra.mxu2 %vm2864_vm9, %v9059_v50  ;;  %v1424_v12 = vpop.permute.xlu2 %1423  ;;  %v7444_v28 = vpop.f32.mrf.mxu0 }
 0x249   : > { %5507 = vmatmul.msk.bf16.gmra.mxu1 %vm1715_vm4, %v1682_v20  ;;  %vm1516_vm12 = vcmp.eq.s32.totalorder %v6332_v5, %v1424_v12  ;;  %v5420_v20 = vsel %vm1515_vm11, 1.0, %v8990_v6 }
 0x24a   : > { %5712 = vmatmul.msk.bf16.gmra.mxu3 %vm2864_vm9, %v2836_v11  ;;  %v9061_v11 = vpack.c.bf16 %v7006_v16, %v7009_v47  ;;  %v5421_v29 = vsel %vm1516_vm12, 1.0, %v8990_v6  ;;  %v9063_v16 = vpack.c.bf16 %v6957_v61, %v6936_v43  ;;  %v9066_v61 = vpack.c.bf16 %v7059_v24, %v7054_v46 }
 0x24b   : > { %v2713_v37 = vpop.f32.mrf.mxu2  ;;  %v1683_v47 = vpack.c.bf16 %v5421_v29, %v5420_v20  ;;  %v9069_v46 = vpack.c.bf16 %v7011_v40, %v6990_v48  ;;  %v9072_v40 = vpack.c.bf16 %v7085_v31, %v7088_v36  ;;  %v9074_v31 = vld [vmem:[#allocation31_spill] sm:$0xff] }
 0x24c   : > { %v2714_v35 = vadd.f32 %v6911_v25, %v2713_v37  ;;  %v9075_v36 = vpack.c.bf16 %v7061_v14, %v9074_v31 }
 0x24d   : > { %v7436_v62 = vpop.f32.mrf.mxu3 }
 0x24e   : > { %9060 = vst [vmem:[#allocation74_spill] sm:$0xff] %v7436_v62  ;;  %v7438_v9 = vpop.f32.mrf.mxu1  ;;  %v2798_v30 = vmax.f32 %v2714_v35, 0.0 }
 0x250   : > { %5478 = vmatmul.msk.bf16.gmra.mxu0 %vm1715_vm4, %v9061_v11  ;;  %v7464_v11 = vpop.f32.mrf.mxu0 }
 0x251   : > { %9064 = vst [vmem:[#allocation76_spill] sm:$0xff] %v7464_v11 }
 0x253   : > { %v2715_v8 = vpop.f32.mrf.mxu2 }
 0x254   : > { %v2716_v21 = vadd.f32 %v6911_v25, %v2715_v8  ;;  %v1430_v8 = vpop.permute.xlu1 %1429 }
 0x255   : > { %v7452_v50 = vpop.f32.mrf.mxu3  ;;  %vm1518_vm13 = vcmp.eq.s32.totalorder %v6332_v5, %v1430_v8 }
 0x256   : > { %9062 = vst [vmem:[#allocation75_spill] sm:$0xff] %v7452_v50  ;;  %v2799_v37 = vmax.f32 %v2716_v21, 0.0  ;;  %v7456_v56 = vpop.f32.mrf.mxu1  ;;  %v1427_v21 = vpop.permute.xlu0 %1426 }
 0x257   : > { %vm1517_vm14 = vcmp.eq.s32.totalorder %v6332_v5, %v1427_v21 }
 0x258   : > { %v2837_v62 = vpack.c.bf16 %v2799_v37, %v2798_v30  ;;  %5730 = vmatmul.msk.bf16.gmra.mxu2 %vm2864_vm9, %v9063_v16  ;;  %v5423_v16 = vsel %vm1518_vm13, 1.0, %v8990_v6 }
 0x259   : > { %5508 = vmatmul.msk.bf16.gmra.mxu1 %vm1715_vm4, %v1683_v47  ;;  %v5422_v47 = vsel %vm1517_vm14, 1.0, %v8990_v6 }
 0x25a   : > { %5713 = vmatmul.msk.bf16.gmra.mxu3 %vm2864_vm9, %v2837_v62  ;;  %v1684_v24 = vpack.c.bf16 %v5423_v16, %v5422_v47 }
 0x25b   : > { %v2718_v12 = vpop.f32.mrf.mxu2 }
 0x25c   : > { %v2719_v43 = vadd.f32 %v6911_v25, %v2718_v12 }
 0x25d   : > { %v7466_v35 = vpop.f32.mrf.mxu3 }
 0x25e   : > { %9065 = vst [vmem:[#allocation77_spill] sm:$0xff] %v7466_v35  ;;  %v7468_v30 = vpop.f32.mrf.mxu1  ;;  %v2800_v37 = vmax.f32 %v2719_v43, 0.0  ;;  %v7484_v35 = vpop.f32.mrf.mxu0 }
 0x25f   : > { %9068 = vst [vmem:[#allocation79_spill] sm:$0xff] %v7484_v35  ;;  %v1436_v43 = vpop.permute.xlu0 %1435 }
 0x260   : > { %5479 = vmatmul.msk.bf16.gmra.mxu0 %vm1715_vm4, %v9066_v61  ;;  %vm1520_vm15 = vcmp.eq.s32.totalorder %v6332_v5, %v1436_v43 }
 0x263   : > { %v2720_v62 = vpop.f32.mrf.mxu2 }
 0x264   : > { %v2721_v20 = vadd.f32 %v6911_v25, %v2720_v62 }
 0x265   : > { %v7480_v29 = vpop.f32.mrf.mxu3 }
 0x266   : > { %9067 = vst [vmem:[#allocation78_spill] sm:$0xff] %v7480_v29  ;;  %v2801_v12 = vmax.f32 %v2721_v20, 0.0  ;;  %v7486_v21 = vpop.f32.mrf.mxu1  ;;  %v7498_v29 = vpop.f32.mrf.mxu0 }
 0x267   : > { %9071 = vst [vmem:[#allocation81_spill] sm:$0xff] %v7498_v29 }
 0x268   : > { %v2838_v8 = vpack.c.bf16 %v2801_v12, %v2800_v37  ;;  %5731 = vmatmul.msk.bf16.gmra.mxu2 %vm2864_vm9, %v9069_v46  ;;  %v1433_v12 = vpop.permute.xlu2 %1432  ;;  %v5425_v46 = vsel %vm1520_vm15, 1.0, %v8990_v6 }
 0x269   : > { %5509 = vmatmul.msk.bf16.gmra.mxu1 %vm1715_vm4, %v1684_v24  ;;  %vm1519_vm0 = vcmp.eq.s32.totalorder %v6332_v5, %v1433_v12 }
 0x26a   : > { %5714 = vmatmul.msk.bf16.gmra.mxu3 %vm2864_vm9, %v2838_v8 }
 0x26b   : > { %v2723_v61 = vpop.f32.mrf.mxu2 }
 0x26c   : > { %v2724_v48 = vadd.f32 %v6911_v25, %v2723_v61  ;;  %v5424_v61 = vsel %vm1519_vm0, 1.0, %v8990_v6 }
 0x26d   : > { %v7494_v62 = vpop.f32.mrf.mxu3 }
 0x26e   : > { %9070 = vst [vmem:[#allocation80_spill] sm:$0xff] %v7494_v62  ;;  %v7496_v20 = vpop.f32.mrf.mxu1  ;;  %v2802_v24 = vmax.f32 %v2724_v48, 0.0  ;;  %v7521_v12 = vpop.f32.mrf.mxu0 }
 0x26f   : > { %9076 = vst [vmem:[#allocation31_spill] sm:$0xff] %v7521_v12 }
 0x270   : > { %5480 = vmatmul.msk.bf16.gmra.mxu0 %vm1715_vm4, %v9072_v40  ;;  %v1685_v40 = vpack.c.bf16 %v5425_v46, %v5424_v61 }
 0x273   : > { %v2725_v16 = vpop.f32.mrf.mxu2 }
 0x274   : > { %v2726_v47 = vadd.f32 %v6911_v25, %v2725_v16 }
 0x275   : > { %v7510_v8 = vpop.f32.mrf.mxu3 }
 0x276   : > { %9073 = vst [vmem:[#allocation82_spill] sm:$0xff] %v7510_v8  ;;  %v2803_v37 = vmax.f32 %v2726_v47, 0.0  ;;  %v7514_v43 = vpop.f32.mrf.mxu1  ;;  %v1439_v47 = vpop.permute.xlu1 %1438 }
 0x277   : > { %vm1521_vm2 = vcmp.eq.s32.totalorder %v6332_v5, %v1439_v47 }
 0x278   : > { %v2839_v62 = vpack.c.bf16 %v2803_v37, %v2802_v24  ;;  %5732 = vmatmul.msk.bf16.gmra.mxu2 %vm2864_vm9, %v9075_v36  ;;  %v1442_v24 = vpop.permute.xlu2 %1441  ;;  %v7538_v36 = vpop.f32.mrf.mxu0  ;;  %v5426_v37 = vsel %vm1521_vm2, 1.0, %v8990_v6 }
 0x279   : > { %5510 = vmatmul.msk.bf16.gmra.mxu1 %vm1715_vm4, %v1685_v40  ;;  %vm1522_vm3 = vcmp.eq.s32.totalorder %v6332_v5, %v1442_v24 }
 0x27a   : > { %5715 = vmatmul.msk.bf16.gmra.mxu3 %vm2864_vm9, %v2839_v62  ;;  %v9078_v62 = vld [vmem:[#allocation38_spill] sm:$0xff]  ;;  %v5427_v47 = vsel %vm1522_vm3, 1.0, %v8990_v6 }
 0x27b   : > { %v2728_v16 = vpop.f32.mrf.mxu2  ;;  %v9079_v46 = vpack.c.bf16 %v7106_v49, %v9078_v62  ;;  %9080 = vst [vmem:[#allocation38_spill] sm:$0xff] %v7538_v36  ;;  %v9082_v49 = vld [vmem:[#allocation39_spill] sm:$0xff]  ;;  %v9090_v36 = vld [vmem:[#allocation46_spill] sm:$0xff] }
 0x27c   : > { %v2729_v14 = vadd.f32 %v6911_v25, %v2728_v16  ;;  %v9083_v62 = vld [vmem:[#allocation35_spill] sm:$0xff] }
 0x27d   : > { %v7524_v48 = vpop.f32.mrf.mxu3 }
 0x27e   : > { %9077 = vst [vmem:[#allocation83_spill] sm:$0xff] %v7524_v48  ;;  %v7526_v8 = vpop.f32.mrf.mxu1  ;;  %v2804_v48 = vmax.f32 %v2729_v14, 0.0  ;;  %v6023_v14 = vld [vmem:[%s8869_s9 + $0x8] sm:$0xff] }
 0x27f   : > { %3593 = vmatpush.bf16.msrb.mxu3 %v6023_v14 }
 0x280   : > { %5481 = vmatmul.msk.bf16.gmra.mxu0 %vm1715_vm4, %v9079_v46  ;;  %v9084_v46 = vpack.c.bf16 %v9082_v49, %v9083_v62  ;;  %v9087_v49 = vld [vmem:[#allocation45_spill] sm:$0xff] }
 0x281   : > { %v9088_v62 = vpack.c.bf16 %v7155_v17, %v9087_v49 }
 0x283   : > { %v2730_v61 = vpop.f32.mrf.mxu2 }
 0x284   : > { %v2731_v31 = vadd.f32 %v6911_v25, %v2730_v61  ;;  %v1686_v25 = vpack.c.bf16 %v5427_v47, %v5426_v37 }
 0x285   : > { %v7540_v40 = vpop.f32.mrf.mxu3 }
 0x286   : > { %9081 = vst [vmem:[#allocation84_spill] sm:$0xff] %v7540_v40  ;;  %v2805_v16 = vmax.f32 %v2731_v31, 0.0  ;;  %v7544_v0 = vpop.f32.mrf.mxu1  ;;  %v7557_v31 = vpop.f32.mrf.mxu0 }
 0x287   : > { %9086 = vst [vmem:[#allocation35_spill] sm:$0xff] %v7557_v31 }
 0x288   : > { %v2840_v50 = vpack.c.bf16 %v2805_v16, %v2804_v48  ;;  %5733 = vmatmul.msk.bf16.gmra.mxu2 %vm2864_vm9, %v9084_v46  ;;  %v1448_v48 = vpop.permute.xlu1 %1447  ;;  %v1445_v16 = vpop.permute.xlu0 %1444 }
 0x289   : > { %5511 = vmatmul.msk.bf16.gmra.mxu1 %vm1715_vm4, %v1686_v25  ;;  %vm1524_vm5 = vcmp.eq.s32.totalorder %v6332_v5, %v1448_v48  ;;  %vm1523_vm6 = vcmp.eq.s32.totalorder %v6332_v5, %v1445_v16  ;;  %v9091_v48 = vld [vmem:[#allocation42_spill] sm:$0xff] }
 0x28a   : > { %5716 = vmatmul.msk.bf16.gmra.mxu3 %vm2864_vm9, %v2840_v50  ;;  %v6063_v50 = vld [vmem:[%s8866_s6] ss:$0 sm:$0xff]  ;;  %v5429_v37 = vsel %vm1524_vm5, 1.0, %v8990_v6  ;;  %v9092_v12 = vpack.c.bf16 %v9090_v36, %v9091_v48 }
 0x28b   : > { %v2733_v24 = vpop.f32.mrf.mxu2 }
 0x28c   : > { %v2734_v47 = vadd.f32 %v6063_v50, %v2733_v24 }
 0x28d   : > { %v7552_v61 = vpop.f32.mrf.mxu3 }
 0x28e   : > { %9085 = vst [vmem:[#allocation39_spill] sm:$0xff] %v7552_v61  ;;  %v7559_v40 = vpop.f32.mrf.mxu1  ;;  %v5428_v61 = vsel %vm1523_vm6, 1.0, %v8990_v6  ;;  %v2806_v52 = vmax.f32 %v2734_v47, 0.0  ;;  %v7580_v17 = vpop.f32.mrf.mxu0 }
 0x28f   : > { %v1687_v16 = vpack.c.bf16 %v5429_v37, %v5428_v61  ;;  %v6022_v37 = vld [vmem:[%s8869_s9] sm:$0xff] }
 0x290   : > { %5482 = vmatmul.msk.bf16.gmra.mxu0 %vm1715_vm4, %v9088_v62  ;;  %3594 = vmatpush.bf16.msrb.mxu3 %v6022_v37 }
 0x293   : > { %v2735_v46 = vpop.f32.mrf.mxu2 }
 0x294   : > { %v2736_v25 = vadd.f32 %v6063_v50, %v2735_v46  ;;  %v1454_v46 = vpop.permute.xlu0 %1453 }
 0x295   : > { %v7572_v14 = vpop.f32.mrf.mxu3  ;;  %vm1526_vm1 = vcmp.eq.s32.totalorder %v6332_v5, %v1454_v46 }
 0x296   : > { %9089 = vst [vmem:[#allocation45_spill] sm:$0xff] %v7572_v14  ;;  %v2807_v31 = vmax.f32 %v2736_v25, 0.0  ;;  %v1451_v14 = vpop.permute.xlu2 %1450  ;;  %v5431_v25 = vsel %vm1526_vm1, 1.0, %v8990_v6 }
 0x297   : > { %vm1525_vm7 = vcmp.eq.s32.totalorder %v6332_v5, %v1451_v14 }
 0x298   : > { %v2841_v24 = vpack.c.bf16 %v2807_v31, %v2806_v52  ;;  %5734 = vmatmul.msk.bf16.gmra.mxu2 %vm2864_vm9, %v9092_v12  ;;  %v7587_v52 = vpop.f32.mrf.mxu0  ;;  %v9094_v12 = vpack.c.bf16 %v7183_v27, %v7186_v55  ;;  %v9096_v55 = vpack.c.bf16 %v7197_v38, %v7188_v42 }
 0x299   : > { %5512 = vmatmul.msk.bf16.gmra.mxu1 %vm1715_vm4, %v1687_v16  ;;  %v5430_v16 = vsel %vm1525_vm7, 1.0, %v8990_v6 }
 0x29a   : > { %5717 = vmatmul.msk.bf16.gmra.mxu3 %vm2864_vm9, %v2841_v24  ;;  %v1688_v14 = vpack.c.bf16 %v5431_v25, %v5430_v16 }
 0x29b   : > { %v2738_v49 = vpop.f32.mrf.mxu2 }
 0x29c   : > { %v2739_v47 = vadd.f32 %v6063_v50, %v2738_v49 }
 0x29d   : > { %v7584_v62 = vpop.f32.mrf.mxu3 }
 0x29e   : > { %9093 = vst [vmem:[#allocation46_spill] sm:$0xff] %v7584_v62  ;;  %v2808_v24 = vmax.f32 %v2739_v47, 0.0  ;;  %v1460_v47 = vpop.permute.xlu2 %1459 }
 0x29f   : > { %vm1528_vm10 = vcmp.eq.s32.totalorder %v6332_v5, %v1460_v47 }
 0x2a0   : > { %5483 = vmatmul.msk.bf16.gmra.mxu0 %vm1715_vm4, %v9094_v12  ;;  %v1457_v12 = vpop.permute.xlu1 %1456 }
 0x2a1   : > { %vm1527_vm8 = vcmp.eq.s32.totalorder %v6332_v5, %v1457_v12  ;;  %v1463_v12 = vpop.permute.xlu0 %1462 }
 0x2a2   : > { %v5432_v38 = vsel %vm1527_vm8, 1.0, %v8990_v6  ;;  %vm1529_vm12 = vcmp.eq.s32.totalorder %v6332_v5, %v1463_v12 }
 0x2a3   : > { %v2740_v36 = vpop.f32.mrf.mxu2 }
 0x2a4   : > { %v2741_v61 = vadd.f32 %v6063_v50, %v2740_v36 }
 0x2a5   : > { %v7594_v31 = vpop.f32.mrf.mxu3 }
 0x2a6   : > { %9095 = vst [vmem:[#allocation42_spill] sm:$0xff] %v7594_v31  ;;  %v2809_v48 = vmax.f32 %v2741_v61, 0.0 }
 0x2a8   : > { %v2842_v27 = vpack.c.bf16 %v2809_v48, %v2808_v24  ;;  %5735 = vmatmul.msk.bf16.gmra.mxu2 %vm2864_vm9, %v9096_v55  ;;  %v5433_v48 = vsel %vm1528_vm10, 1.0, %v8990_v6 }
 0x2a9   : > { %5513 = vmatmul.msk.bf16.gmra.mxu1 %vm1715_vm4, %v1688_v14  ;;  %v1689_v55 = vpack.c.bf16 %v5433_v48, %v5432_v38 }
 0x2aa   : > { %5718 = vmatmul.msk.bf16.gmra.mxu3 %vm2864_vm9, %v2842_v27  ;;  %v9099_v27 = vpack.c.bf16 %v7227_v51, %v7218_v23 }
 0x2ab   : > { %v2743_v49 = vpop.f32.mrf.mxu2 }
 0x2ac   : > { %v2744_v36 = vadd.f32 %v6063_v50, %v2743_v49  ;;  %v1466_v49 = vpop.permute.xlu1 %1465 }
 0x2ad   : > { %v7607_v46 = vpop.f32.mrf.mxu3  ;;  %vm1530_vm11 = vcmp.eq.s32.totalorder %v6332_v5, %v1466_v49 }
 0x2ae   : > { %9097 = vst [vmem:[#allocation85_spill] sm:$0xff] %v7607_v46  ;;  %v2810_v25 = vmax.f32 %v2744_v36, 0.0  ;;  %v5435_v51 = vsel %vm1530_vm11, 1.0, %v8990_v6  ;;  %v5434_v36 = vsel %vm1529_vm12, 1.0, %v8990_v6  ;;  %v9123_v46 = vld [vmem:[#allocation23_spill] sm:$0xff] }
 0x2b3   : > { %v2745_v61 = vpop.f32.mrf.mxu2 }
 0x2b4   : > { %v2746_v37 = vadd.f32 %v6063_v50, %v2745_v61  ;;  %v9102_v61 = vld [vmem:[#allocation8_spill] sm:$0xff] }
 0x2b5   : > { %v7611_v42 = vpop.f32.mrf.mxu3 }
 0x2b6   : > { %9098 = vst [vmem:[#allocation86_spill] sm:$0xff] %v7611_v42  ;;  %v2811_v24 = vmax.f32 %v2746_v37, 0.0  ;;  %v9103_v37 = vld [vmem:[#allocation9_spill] sm:$0xff] }
 0x2b7   : > { %v3130_v38 = vpack.c.bf16 %v9103_v37, %v9102_v61  ;;  %v9122_v42 = vld [vmem:[#allocation21_spill] sm:$0xff] }
 0x2b8   : > { %v2843_v16 = vpack.c.bf16 %v2811_v24, %v2810_v25  ;;  %5736 = vmatmul.msk.bf16.gmra.mxu2 %vm2864_vm9, %v9099_v27  ;;  %v9104_v25 = vpack.c.bf16 %v7257_v59, %v7248_v4  ;;  %v1690_v24 = vpack.c.bf16 %v5435_v51, %v5434_v36  ;;  %v9107_v27 = vld [vmem:[#allocation10_spill] sm:$0xff]  ;;  %v9109_v4 = vpack.c.bf16 %v7285_v26, %v7276_v18 }
 0x2b9   : > { %5514 = vmatmul.msk.bf16.gmra.mxu1 %vm1715_vm4, %v1689_v55  ;;  %v9108_v55 = vld [vmem:[#allocation11_spill] sm:$0xff]  ;;  %v3134_v31 = vpack.c.bf16 %v9123_v46, %v9122_v42  ;;  %v9128_v42 = vld [vmem:[#allocation25_spill] sm:$0xff] }
 0x2ba   : > { %5719 = vmatmul.msk.bf16.gmra.mxu3 %vm2864_vm9, %v2843_v16  ;;  %v3131_v49 = vpack.c.bf16 %v9108_v55, %v9107_v27  ;;  %v9129_v46 = vld [vmem:[#allocation27_spill] sm:$0xff] }
 0x2bb   : > { %v7621_v50 = vpop.f32.mrf.mxu2 }
 0x2bd   : > { %v7623_v14 = vpop.f32.mrf.mxu3 }
 0x2be   : > { %9100 = vst [vmem:[#allocation87_spill] sm:$0xff] %v7623_v14 }
 0x2c3   : > { %v7627_v47 = vpop.f32.mrf.mxu2 }
 0x2c5   : > { %v7629_v23 = vpop.f32.mrf.mxu3 }
 0x2c6   : > { %9101 = vst [vmem:[#allocation88_spill] sm:$0xff] %v7629_v23 }
 0x2c8   : > { %5737 = vmatmul.msk.bf16.gmra.mxu2 %vm2864_vm9, %v9104_v25  ;;  %v9113_v25 = vld [vmem:[#allocation15_spill] sm:$0xff] }
 0x2c9   : > { %5515 = vmatmul.msk.bf16.gmra.mxu1 %vm1715_vm4, %v1690_v24 }
 0x2ca   : > { %5768 = vmatmul.msk.bf16.vlgmr.msrb.gmra.mxu3 %vm2864_vm9, %v3130_v38  ;;  %v9112_v38 = vld [vmem:[#allocation13_spill] sm:$0xff] }
 0x2cb   : > { %v7641_v5 = vpop.f32.mrf.mxu2  ;;  %v3132_v24 = vpack.c.bf16 %v9113_v25, %v9112_v38  ;;  %v9142_v38 = vld [vmem:[#allocation40_spill] sm:$0xff] }
 0x2cd   : > { %v7643_v48 = vpop.f32.mrf.mxu3 }
 0x2ce   : > { %9105 = vst [vmem:[#allocation89_spill] sm:$0xff] %v7643_v48  ;;  %v9118_v48 = vld [vmem:[#allocation19_spill] sm:$0xff] }
 0x2d3   : > { %v7645_v16 = vpop.f32.mrf.mxu2 }
 0x2d5   : > { %v7647_v6 = vpop.f32.mrf.mxu3 }
 0x2d6   : > { %9106 = vst [vmem:[#allocation90_spill] sm:$0xff] %v7647_v6  ;;  %v9114_v6 = vpack.c.bf16 %v7318_v44, %v7306_v60  ;;  %v9119_v60 = vpack.c.bf16 %v7349_v1, %v7342_v45  ;;  %v9124_v45 = vpack.c.bf16 %v7379_v58, %v7370_v32  ;;  %v9130_v32 = vpack.c.bf16 %v7410_v15, %v7398_v63  ;;  %v9134_v63 = vld [vmem:[#allocation29_spill] sm:$0xff] }
 0x2d7   : > { %v9135_v15 = vld [vmem:[#allocation33_spill] sm:$0xff] }
 0x2d8   : > { %5738 = vmatmul.msk.bf16.gmra.mxu2 %vm2864_vm9, %v9109_v4 }
 0x2da   : > { %5769 = vmatmul.msk.bf16.gmra.mxu3 %vm2864_vm9, %v3131_v49  ;;  %v7675_v49 = vpop.f32.mrf.mxu0 }
 0x2db   : > { %v7656_v59 = vpop.f32.mrf.mxu2 }
 0x2dd   : > { %v7658_v12 = vpop.f32.mrf.mxu3 }
 0x2de   : > { %9110 = vst [vmem:[#allocation91_spill] sm:$0xff] %v7658_v12 }
 0x2e2   : > { %v7687_v44 = vpop.f32.mrf.mxu0 }
 0x2e3   : > { %v7660_v51 = vpop.f32.mrf.mxu2 }
 0x2e5   : > { %v7662_v36 = vpop.f32.mrf.mxu3 }
 0x2e6   : > { %9111 = vst [vmem:[#allocation92_spill] sm:$0xff] %v7662_v36  ;;  %v9117_v36 = vld [vmem:[#allocation17_spill] sm:$0xff] }
 0x2e7   : > { %v3133_v23 = vpack.c.bf16 %v9118_v48, %v9117_v36  ;;  %v3135_v48 = vpack.c.bf16 %v9129_v46, %v9128_v42 }
 0x2e8   : > { %5739 = vmatmul.msk.bf16.gmra.mxu2 %vm2864_vm9, %v9114_v6 }
 0x2ea   : > { %5770 = vmatmul.msk.bf16.gmra.mxu3 %vm2864_vm9, %v3132_v24 }
 0x2eb   : > { %v7671_v18 = vpop.f32.mrf.mxu2 }
 0x2ed   : > { %v7673_v26 = vpop.f32.mrf.mxu3 }
 0x2ee   : > { %9115 = vst [vmem:[#allocation93_spill] sm:$0xff] %v7673_v26  ;;  %v7694_v26 = vpop.f32.mrf.mxu0 }
 0x2f3   : > { %v7677_v4 = vpop.f32.mrf.mxu2 }
 0x2f5   : > { %v7679_v12 = vpop.f32.mrf.mxu3 }
 0x2f6   : > { %9116 = vst [vmem:[#allocation94_spill] sm:$0xff] %v7679_v12 }
 0x2f8   : > { %5740 = vmatmul.msk.bf16.gmra.mxu2 %vm2864_vm9, %v9119_v60 }
 0x2fa   : > { %5771 = vmatmul.msk.bf16.gmra.mxu3 %vm2864_vm9, %v3133_v23  ;;  %v7709_v23 = vpop.f32.mrf.mxu0 }
 0x2fb   : > { %v7690_v6 = vpop.f32.mrf.mxu2 }
 0x2fd   : > { %v7692_v24 = vpop.f32.mrf.mxu3 }
 0x2fe   : > { %9120 = vst [vmem:[#allocation95_spill] sm:$0xff] %v7692_v24 }
 0x303   : > { %v7696_v14 = vpop.f32.mrf.mxu2 }
 0x305   : > { %v7698_v12 = vpop.f32.mrf.mxu3 }
 0x306   : > { %9121 = vst [vmem:[#allocation96_spill] sm:$0xff] %v7698_v12  ;;  %v7717_v12 = vpop.f32.mrf.mxu0 }
 0x307   : > { %9127 = vst [vmem:[#allocation99_spill] sm:$0xff] %v7717_v12 }
 0x308   : > { %5741 = vmatmul.msk.bf16.gmra.mxu2 %vm2864_vm9, %v9124_v45 }
 0x30a   : > { %5772 = vmatmul.msk.bf16.gmra.mxu3 %vm2864_vm9, %v3134_v31 }
 0x30b   : > { %v7707_v1 = vpop.f32.mrf.mxu2 }
 0x30d   : > { %v7711_v60 = vpop.f32.mrf.mxu3 }
 0x30e   : > { %9125 = vst [vmem:[#allocation97_spill] sm:$0xff] %v7711_v60  ;;  %v7730_v45 = vpop.f32.mrf.mxu0 }
 0x30f   : > { %9132 = vst [vmem:[#allocation101_spill] sm:$0xff] %v7730_v45 }
 0x313   : > { %v7713_v24 = vpop.f32.mrf.mxu2 }
 0x315   : > { %v7715_v62 = vpop.f32.mrf.mxu3 }
 0x316   : > { %9126 = vst [vmem:[#allocation98_spill] sm:$0xff] %v7715_v62  ;;  %v6027_v62 = vld [vmem:[%s8872_s12 + $0x8] sm:$0xff] }
 0x317   : > { %4106 = vmatpush.bf16.msrb.mxu0 %v6027_v62 }
 0x318   : > { %5742 = vmatmul.msk.bf16.gmra.mxu2 %vm2864_vm9, %v9130_v32  ;;  %v3136_v32 = vpack.c.bf16 %v9135_v15, %v9134_v63 }
 0x31a   : > { %5773 = vmatmul.msk.bf16.gmra.mxu3 %vm2864_vm9, %v3135_v48  ;;  %v9136_v48 = vpack.c.bf16 %v7438_v9, %v7426_v22  ;;  %v9143_v22 = vpack.c.bf16 %v7468_v30, %v7456_v56  ;;  %v6026_v9 = vld [vmem:[%s8872_s12] sm:$0xff]  ;;  %v9147_v30 = vld [vmem:[#allocation43_spill] sm:$0xff] }
 0x31b   : > { %v7726_v58 = vpop.f32.mrf.mxu2  ;;  %4107 = vmatpush.bf16.msrb.mxu0 %v6026_v9 }
 0x31d   : > { %v7728_v31 = vpop.f32.mrf.mxu3 }
 0x31e   : > { %9131 = vst [vmem:[#allocation100_spill] sm:$0xff] %v7728_v31  ;;  %v7746_v31 = vpop.f32.mrf.mxu0 }
 0x31f   : > { %9137 = vst [vmem:[#allocation103_spill] sm:$0xff] %v7746_v31 }
 0x323   : > { %v7735_v60 = vpop.f32.mrf.mxu2 }
 0x325   : > { %v7737_v42 = vpop.f32.mrf.mxu3 }
 0x326   : > { %9133 = vst [vmem:[#allocation102_spill] sm:$0xff] %v7737_v42  ;;  %v7752_v62 = vpop.f32.mrf.mxu0  ;;  %v9141_v42 = vld [vmem:[#allocation36_spill] sm:$0xff] }
 0x327   : > { %9139 = vst [vmem:[#allocation105_spill] sm:$0xff] %v7752_v62  ;;  %v3137_v63 = vpack.c.bf16 %v9142_v38, %v9141_v42 }
 0x328   : > { %5743 = vmatmul.msk.bf16.gmra.mxu2 %vm2864_vm9, %v9136_v48 }
 0x32a   : > { %5774 = vmatmul.msk.bf16.gmra.mxu3 %vm2864_vm9, %v3136_v32  ;;  %v7768_v32 = vpop.f32.mrf.mxu1 }
 0x32b   : > { %v7750_v36 = vpop.f32.mrf.mxu2 }
 0x32d   : > { %v7748_v46 = vpop.f32.mrf.mxu3 }
 0x32e   : > { %9138 = vst [vmem:[#allocation104_spill] sm:$0xff] %v7748_v46 }
 0x332   : > { %v7778_v56 = vpop.f32.mrf.mxu1 }
 0x333   : > { %v7758_v15 = vpop.f32.mrf.mxu2 }
 0x335   : > { %v7754_v25 = vpop.f32.mrf.mxu3 }
 0x336   : > { %9140 = vst [vmem:[#allocation106_spill] sm:$0xff] %v7754_v25  ;;  %v7772_v25 = vpop.f32.mrf.mxu0 }
 0x337   : > { %9145 = vst [vmem:[#allocation108_spill] sm:$0xff] %v7772_v25 }
 0x338   : > { %5744 = vmatmul.msk.bf16.gmra.mxu2 %vm2864_vm9, %v9143_v22  ;;  %v9148_v22 = vpack.c.bf16 %v7496_v20, %v7486_v21  ;;  %v7802_v21 = vld [vmem:[%s8868_s8] ss:$0 sm:$0xff] }
 0x33a   : > { %5775 = vmatmul.msk.bf16.gmra.mxu3 %vm2864_vm9, %v3137_v63  ;;  %v3138_v63 = vpack.c.bf16 %v7178_v41, %v9147_v30  ;;  %v7791_v55 = vpop.f32.mrf.mxu1  ;;  %v7797_v41 = vld [vmem:[%s8871_s11] ss:$0 sm:$0xff] }
 0x33b   : > { %v7774_v46 = vpop.f32.mrf.mxu2  ;;  %v9151_v30 = vld [vmem:[#allocation12_spill] sm:$0xff] }
 0x33c   : > { %v2971_v27 = vadd.f32 %v7802_v21, %v9151_v30 }
 0x33d   : > { %v7770_v48 = vpop.f32.mrf.mxu3 }
 0x33e   : > { %9144 = vst [vmem:[#allocation107_spill] sm:$0xff] %v7770_v48  ;;  %v7786_v42 = vpop.f32.mrf.mxu0 }
 0x33f   : > { %9149 = vst [vmem:[#allocation110_spill] sm:$0xff] %v7786_v42  ;;  %v9153_v42 = vld [vmem:[#allocation50_spill] sm:$0xff] }
 0x340   : > { %v3139_v25 = vpack.c.bf16 %v7222_v33, %v9153_v42 }
 0x343   : > { %v7789_v9 = vpop.f32.mrf.mxu2 }
 0x345   : > { %v7776_v38 = vpop.f32.mrf.mxu3 }
 0x346   : > { %9146 = vst [vmem:[#allocation109_spill] sm:$0xff] %v7776_v38  ;;  %v7804_v20 = vpop.f32.mrf.mxu0 }
 0x347   : > { %9150 = vst [vmem:[#allocation111_spill] sm:$0xff] %v7804_v20  ;;  %v7821_v20 = vpop.f32.mrf.mxu1 }
 0x348   : > { %5745 = vmatmul.msk.bf16.gmra.mxu2 %vm2864_vm9, %v9148_v22 }
 0x34a   : > { %5776 = vmatmul.msk.bf16.gmra.mxu3 %vm2864_vm9, %v3138_v63 }
 0x34b   : > { %v7809_v37 = vpop.f32.mrf.mxu2 }
 0x34d   : > { %v3596_v48 = vpop.f32.mrf.mxu3 }
 0x34e   : > { %v3597_v38 = vadd.f32 %v3596_v48, %v7621_v50  ;;  %v9152_v48 = vld [vmem:[#allocation14_spill] sm:$0xff]  ;;  %v7824_v45 = vpop.f32.mrf.mxu0 }
 0x34f   : > { %v2973_v61 = vadd.f32 %v7802_v21, %v9152_v48 }
 0x350   : > { %v3760_v63 = vadd.f32 %v7797_v41, %v3597_v38  ;;  %v9154_v38 = vpack.c.bf16 %v7526_v8, %v7514_v43  ;;  %v7830_v8 = vpop.f32.mrf.mxu1 }
 0x352   : > { %v3824_v62 = vadd.f32 %v3760_v63, %v2971_v27 }
 0x353   : > { %v7826_v33 = vpop.f32.mrf.mxu2 }
 0x355   : > { %v3598_v22 = vpop.f32.mrf.mxu3 }
 0x356   : > { %v3599_v50 = vadd.f32 %v3598_v22, %v7627_v47  ;;  %v3888_v47 = vmax.f32 %v3824_v62, 0.0  ;;  %v7836_v62 = vpop.f32.mrf.mxu0 }
 0x357   : > { %9156 = vst [vmem:[#allocation12_spill] sm:$0xff] %v7836_v62 }
 0x358   : > { %v3761_v31 = vadd.f32 %v7797_v41, %v3599_v50  ;;  %5746 = vmatmul.msk.bf16.gmra.mxu2 %vm2864_vm9, %v9154_v38  ;;  %v9157_v50 = vld [vmem:[#allocation18_spill] sm:$0xff] }
 0x359   : > { %v2978_v38 = vadd.f32 %v7802_v21, %v9157_v50 }
 0x35a   : > { %v3825_v30 = vadd.f32 %v3761_v31, %v2973_v61  ;;  %5777 = vmatmul.msk.bf16.gmra.mxu3 %vm2864_vm9, %v3139_v25  ;;  %v9155_v61 = vld [vmem:[#allocation16_spill] sm:$0xff] }
 0x35b   : > { %v2976_v25 = vadd.f32 %v7802_v21, %v9155_v61  ;;  %v2198_v61 = vpop.f32.mrf.mxu1 }
 0x35c   : > { %v3889_v22 = vmax.f32 %v3825_v30, 0.0 }
 0x35d   : > { %v3601_v48 = vpop.f32.mrf.mxu3 }
 0x35e   : > { %v3952_v12 = vpack.c.bf16 %v3889_v22, %v3888_v47  ;;  %v3602_v27 = vadd.f32 %v3601_v48, %v7641_v5  ;;  %v3140_v5 = vpack.c.bf16 %v7255_v54, %v7242_v13  ;;  %v9158_v47 = vpack.c.bf16 %v7559_v40, %v7544_v0  ;;  %v7847_v22 = vpop.f32.mrf.mxu2 }
 0x360   : > { %5808 = vmatmul.msk.bf16.vlgmr.msrb.gmra.mxu0 %vm2864_vm9, %v3952_v12  ;;  %v3762_v43 = vadd.f32 %v7797_v41, %v3602_v27 }
 0x362   : > { %v3826_v30 = vadd.f32 %v3762_v43, %v2976_v25  ;;  %v7852_v43 = vpop.f32.mrf.mxu0 }
 0x363   : > { %9159 = vst [vmem:[#allocation14_spill] sm:$0xff] %v7852_v43 }
 0x365   : > { %v3603_v63 = vpop.f32.mrf.mxu3 }
 0x366   : > { %v3604_v31 = vadd.f32 %v3603_v63, %v7645_v16  ;;  %v3890_v16 = vmax.f32 %v3826_v30, 0.0  ;;  %v7854_v25 = vpop.f32.mrf.mxu2 }
 0x368   : > { %v3763_v12 = vadd.f32 %v7797_v41, %v3604_v31  ;;  %5747 = vmatmul.msk.bf16.gmra.mxu2 %vm2864_vm9, %v9158_v47  ;;  %v9160_v31 = vld [vmem:[#allocation20_spill] sm:$0xff]  ;;  %v3141_v47 = vpack.c.bf16 %v7292_v10, %v7279_v7 }
 0x36a   : > { %v3827_v48 = vadd.f32 %v3763_v12, %v2978_v38  ;;  %5778 = vmatmul.msk.bf16.gmra.mxu3 %vm2864_vm9, %v3140_v5  ;;  %v2981_v38 = vadd.f32 %v7802_v21, %v9160_v31  ;;  %v3186_v5 = vpack.c.bf16 %v7778_v56, %v7768_v32  ;;  %v9161_v12 = vld [vmem:[#allocation22_spill] sm:$0xff] }
 0x36c   : > { %v3891_v27 = vmax.f32 %v3827_v48, 0.0  ;;  %v7866_v48 = vpop.f32.mrf.mxu1 }
 0x36d   : > { %v3606_v63 = vpop.f32.mrf.mxu3 }
 0x36e   : > { %v3953_v50 = vpack.c.bf16 %v3891_v27, %v3890_v16  ;;  %v3607_v54 = vadd.f32 %v3606_v63, %v7656_v59  ;;  %v2983_v59 = vadd.f32 %v7802_v21, %v9161_v12  ;;  %v7871_v63 = vpop.f32.mrf.mxu0  ;;  %v9164_v12 = vld [vmem:[#allocation24_spill] sm:$0xff] }
 0x36f   : > { %9162 = vst [vmem:[#allocation50_spill] sm:$0xff] %v7871_v63 }
 0x370   : > { %5809 = vmatmul.msk.bf16.gmra.mxu0 %vm2864_vm9, %v3953_v50  ;;  %v3764_v0 = vadd.f32 %v7797_v41, %v3607_v54  ;;  %v7873_v50 = vpop.f32.mrf.mxu2 }
 0x372   : > { %v3828_v16 = vadd.f32 %v3764_v0, %v2981_v38 }
 0x374   : > { %v3892_v32 = vmax.f32 %v3828_v16, 0.0  ;;  %v2203_v0 = vpop.f32.mrf.mxu1 }
 0x375   : > { %v3608_v40 = vpop.f32.mrf.mxu3 }
 0x376   : > { %v3609_v30 = vadd.f32 %v3608_v40, %v7660_v51 }
 0x378   : > { %v3765_v54 = vadd.f32 %v7797_v41, %v3609_v30  ;;  %5748 = vmatmul.msk.bf16.gmra.mxu2 %vm2864_vm9, %v3186_v5  ;;  %v7878_v30 = vpop.f32.mrf.mxu0 }
 0x379   : > { %9163 = vst [vmem:[#allocation16_spill] sm:$0xff] %v7878_v30 }
 0x37a   : > { %v3829_v27 = vadd.f32 %v3765_v54, %v2983_v59  ;;  %5779 = vmatmul.msk.bf16.gmra.mxu3 %vm2864_vm9, %v3141_v47  ;;  %v2986_v59 = vadd.f32 %v7802_v21, %v9164_v12  ;;  %v3187_v47 = vpack.c.bf16 %v7821_v20, %v7791_v55  ;;  %v9165_v54 = vld [vmem:[#allocation26_spill] sm:$0xff] }
 0x37c   : > { %v3893_v51 = vmax.f32 %v3829_v27, 0.0  ;;  %v2988_v27 = vadd.f32 %v7802_v21, %v9165_v54 }
 0x37d   : > { %v3611_v56 = vpop.f32.mrf.mxu3 }
 0x37e   : > { %v3954_v40 = vpack.c.bf16 %v3893_v51, %v3892_v32  ;;  %v3612_v31 = vadd.f32 %v3611_v56, %v7671_v18  ;;  %v3142_v18 = vpack.c.bf16 %v7339_v57, %v7311_v19  ;;  %v7889_v32 = vpop.f32.mrf.mxu2 }
 0x380   : > { %5810 = vmatmul.msk.bf16.gmra.mxu0 %vm2864_vm9, %v3954_v40  ;;  %v3766_v38 = vadd.f32 %v7797_v41, %v3612_v31  ;;  %v7894_v31 = vpop.f32.mrf.mxu1  ;;  %v7896_v12 = vpop.f32.mrf.mxu0 }
 0x381   : > { %9166 = vst [vmem:[#allocation18_spill] sm:$0xff] %v7896_v12 }
 0x382   : > { %v3830_v51 = vadd.f32 %v3766_v38, %v2986_v59 }
 0x384   : > { %v3894_v55 = vmax.f32 %v3830_v51, 0.0 }
 0x385   : > { %v3613_v5 = vpop.f32.mrf.mxu3 }
 0x386   : > { %v3614_v16 = vadd.f32 %v3613_v5, %v7677_v4  ;;  %v7900_v38 = vpop.f32.mrf.mxu2 }
 0x388   : > { %v3767_v56 = vadd.f32 %v7797_v41, %v3614_v16  ;;  %5749 = vmatmul.msk.bf16.gmra.mxu2 %vm2864_vm9, %v3187_v47  ;;  %v9167_v16 = vld [vmem:[#allocation28_spill] sm:$0xff]  ;;  %v2208_v51 = vpop.f32.mrf.mxu1 }
 0x38a   : > { %v3831_v40 = vadd.f32 %v3767_v56, %v2988_v27  ;;  %5780 = vmatmul.msk.bf16.gmra.mxu3 %vm2864_vm9, %v3142_v18  ;;  %v2991_v27 = vadd.f32 %v7802_v21, %v9167_v16  ;;  %v3188_v18 = vpack.c.bf16 %v2198_v61, %v7830_v8 }
 0x38c   : > { %v3895_v4 = vmax.f32 %v3831_v40, 0.0  ;;  %v9168_v40 = vld [vmem:[#allocation30_spill] sm:$0xff] }
 0x38d   : > { %v3616_v20 = vpop.f32.mrf.mxu3 }
 0x38e   : > { %v3955_v5 = vpack.c.bf16 %v3895_v4, %v3894_v55  ;;  %v3617_v54 = vadd.f32 %v3616_v20, %v7690_v6  ;;  %v2993_v55 = vadd.f32 %v7802_v21, %v9168_v40  ;;  %v3143_v6 = vpack.c.bf16 %v7374_v39, %v7351_v2  ;;  %v7916_v8 = vpop.f32.mrf.mxu2 }
 0x390   : > { %5811 = vmatmul.msk.bf16.gmra.mxu0 %vm2864_vm9, %v3955_v5  ;;  %v3768_v59 = vadd.f32 %v7797_v41, %v3617_v54  ;;  %v7913_v5 = vpop.f32.mrf.mxu0  ;;  %v7918_v40 = vpop.f32.mrf.mxu1 }
 0x391   : > { %9169 = vst [vmem:[#allocation20_spill] sm:$0xff] %v7913_v5 }
 0x392   : > { %v3832_v4 = vadd.f32 %v3768_v59, %v2991_v27 }
 0x394   : > { %v3896_v61 = vmax.f32 %v3832_v4, 0.0 }
 0x395   : > { %v3618_v47 = vpop.f32.mrf.mxu3 }
 0x396   : > { %v3619_v56 = vadd.f32 %v3618_v47, %v7696_v14  ;;  %v7928_v4 = vpop.f32.mrf.mxu2 }
 0x398   : > { %v3769_v20 = vadd.f32 %v7797_v41, %v3619_v56  ;;  %5750 = vmatmul.msk.bf16.gmra.mxu2 %vm2864_vm9, %v3188_v18  ;;  %v7922_v59 = vpop.f32.mrf.mxu0  ;;  %v9171_v56 = vld [vmem:[#allocation32_spill] sm:$0xff] }
 0x399   : > { %9170 = vst [vmem:[#allocation22_spill] sm:$0xff] %v7922_v59 }
 0x39a   : > { %v3833_v54 = vadd.f32 %v3769_v20, %v2993_v55  ;;  %5781 = vmatmul.msk.bf16.gmra.mxu3 %vm2864_vm9, %v3143_v6  ;;  %v2996_v55 = vadd.f32 %v7802_v21, %v9171_v56  ;;  %v3189_v6 = vpack.c.bf16 %v2203_v0, %v7866_v48 }
 0x39c   : > { %v3897_v14 = vmax.f32 %v3833_v54, 0.0  ;;  %v9172_v54 = vld [vmem:[#allocation34_spill] sm:$0xff] }
 0x39d   : > { %v3621_v47 = vpop.f32.mrf.mxu3 }
 0x39e   : > { %v3956_v16 = vpack.c.bf16 %v3897_v14, %v3896_v61  ;;  %v3622_v19 = vadd.f32 %v3621_v47, %v7707_v1  ;;  %v2998_v61 = vadd.f32 %v7802_v21, %v9172_v54  ;;  %v3144_v1 = vpack.c.bf16 %v7408_v53, %v7392_v34  ;;  %v7940_v57 = vpop.f32.mrf.mxu2 }
 0x3a0   : > { %5812 = vmatmul.msk.bf16.gmra.mxu0 %vm2864_vm9, %v3956_v16  ;;  %v3770_v27 = vadd.f32 %v7797_v41, %v3622_v19  ;;  %v2213_v19 = vpop.f32.mrf.mxu1  ;;  %v7938_v56 = vpop.f32.mrf.mxu0 }
 0x3a1   : > { %9173 = vst [vmem:[#allocation24_spill] sm:$0xff] %v7938_v56 }
 0x3a2   : > { %v3834_v14 = vadd.f32 %v3770_v27, %v2996_v55 }
 0x3a4   : > { %v3898_v48 = vmax.f32 %v3834_v14, 0.0  ;;  %v3190_v14 = vpack.c.bf16 %v2208_v51, %v7894_v31 }
 0x3a5   : > { %v3623_v18 = vpop.f32.mrf.mxu3 }
 0x3a6   : > { %v3624_v20 = vadd.f32 %v3623_v18, %v7713_v24 }
 0x3a8   : > { %v3771_v47 = vadd.f32 %v7797_v41, %v3624_v20  ;;  %5751 = vmatmul.msk.bf16.gmra.mxu2 %vm2864_vm9, %v3189_v6  ;;  %v2216_v27 = vpop.f32.mrf.mxu1  ;;  %v6029_v6 = vld [vmem:[%s8874_s14 + $0x8] sm:$0xff] }
 0x3a9   : > { %4487 = vmatpush.bf16.msrb.mxu1 %v6029_v6 }
 0x3aa   : > { %v3835_v16 = vadd.f32 %v3771_v47, %v2998_v61  ;;  %5782 = vmatmul.msk.bf16.gmra.mxu3 %vm2864_vm9, %v3144_v1  ;;  %v9174_v61 = vld [vmem:[#allocation37_spill] sm:$0xff] }
 0x3ab   : > { %v3001_v1 = vadd.f32 %v7802_v21, %v9174_v61 }
 0x3ac   : > { %v3899_v0 = vmax.f32 %v3835_v16, 0.0  ;;  %v7952_v16 = vpop.f32.mrf.mxu0 }
 0x3ad   : > { %v3626_v24 = vpop.f32.mrf.mxu3  ;;  %9175 = vst [vmem:[#allocation26_spill] sm:$0xff] %v7952_v16 }
 0x3ae   : > { %v3957_v18 = vpack.c.bf16 %v3899_v0, %v3898_v48  ;;  %v3627_v54 = vadd.f32 %v3626_v24, %v7726_v58  ;;  %v9176_v58 = vld [vmem:[#allocation41_spill] sm:$0xff]  ;;  %v3145_v0 = vpack.c.bf16 %v7444_v28, %v7432_v3 }
 0x3af   : > { %v3003_v48 = vadd.f32 %v7802_v21, %v9176_v58 }
 0x3b0   : > { %5813 = vmatmul.msk.bf16.gmra.mxu0 %vm2864_vm9, %v3957_v18  ;;  %v3772_v55 = vadd.f32 %v7797_v41, %v3627_v54  ;;  %v7960_v54 = vpop.f32.mrf.mxu2  ;;  %v2218_v6 = vpop.f32.mrf.mxu1 }
 0x3b2   : > { %v3836_v24 = vadd.f32 %v3772_v55, %v3001_v1 }
 0x3b4   : > { %v7965_v2 = vpop.f32.mrf.mxu0 }
 0x3b5   : > { %v3628_v20 = vpop.f32.mrf.mxu3  ;;  %9177 = vst [vmem:[#allocation28_spill] sm:$0xff] %v7965_v2 }
 0x3b6   : > { %v3629_v47 = vadd.f32 %v3628_v20, %v7735_v60  ;;  %v3900_v60 = vmax.f32 %v3836_v24, 0.0 }
 0x3b8   : > { %v3773_v18 = vadd.f32 %v7797_v41, %v3629_v47  ;;  %5752 = vmatmul.msk.bf16.gmra.mxu2 %vm2864_vm9, %v3190_v14  ;;  %v7967_v55 = vpop.f32.mrf.mxu2  ;;  %v9178_v47 = vld [vmem:[#allocation44_spill] sm:$0xff] }
 0x3ba   : > { %v3837_v61 = vadd.f32 %v3773_v18, %v3003_v48  ;;  %5783 = vmatmul.msk.bf16.gmra.mxu3 %vm2864_vm9, %v3145_v0  ;;  %v3006_v48 = vadd.f32 %v7802_v21, %v9178_v47  ;;  %v3191_v0 = vpack.c.bf16 %v2213_v19, %v7918_v40  ;;  %v9179_v18 = vld [vmem:[#allocation47_spill] sm:$0xff] }
 0x3bc   : > { %v3901_v31 = vmax.f32 %v3837_v61, 0.0  ;;  %v3008_v61 = vadd.f32 %v7802_v21, %v9179_v18 }
 0x3bd   : > { %v3631_v51 = vpop.f32.mrf.mxu3 }
 0x3be   : > { %v3958_v20 = vpack.c.bf16 %v3901_v31, %v3900_v60  ;;  %v3632_v58 = vadd.f32 %v3631_v51, %v7750_v36  ;;  %v6028_v36 = vld [vmem:[%s8874_s14] sm:$0xff]  ;;  %v3146_v60 = vpack.c.bf16 %v7484_v35, %v7464_v11  ;;  %v2221_v31 = vpop.f32.mrf.mxu1 }
 0x3bf   : > { %4488 = vmatpush.bf16.msrb.mxu1 %v6028_v36  ;;  %v9182_v36 = vld [vmem:[#allocation49_spill] sm:$0xff] }
 0x3c0   : > { %5814 = vmatmul.msk.bf16.gmra.mxu0 %vm2864_vm9, %v3958_v20  ;;  %v3774_v1 = vadd.f32 %v7797_v41, %v3632_v58  ;;  %v7986_v47 = vpop.f32.mrf.mxu2 }
 0x3c2   : > { %v3838_v51 = vadd.f32 %v3774_v1, %v3006_v48 }
 0x3c4   : > { %v3902_v19 = vmax.f32 %v3838_v51, 0.0 }
 0x3c5   : > { %v3633_v14 = vpop.f32.mrf.mxu3 }
 0x3c6   : > { %v3634_v24 = vadd.f32 %v3633_v14, %v7758_v15  ;;  %v7984_v15 = vpop.f32.mrf.mxu0  ;;  %v2223_v1 = vpop.f32.mrf.mxu1 }
 0x3c7   : > { %9180 = vst [vmem:[#allocation30_spill] sm:$0xff] %v7984_v15 }
 0x3c8   : > { %v3775_v20 = vadd.f32 %v7797_v41, %v3634_v24  ;;  %5753 = vmatmul.msk.bf16.gmra.mxu2 %vm2864_vm9, %v3191_v0 }
 0x3ca   : > { %v3839_v40 = vadd.f32 %v3775_v20, %v3008_v61  ;;  %5784 = vmatmul.msk.bf16.gmra.mxu3 %vm2864_vm9, %v3146_v60  ;;  %v3011_v61 = vadd.f32 %v7802_v21, %v9182_v36  ;;  %v3192_v60 = vpack.c.bf16 %v2218_v6, %v2216_v27  ;;  %v9183_v20 = vld [vmem:[#allocation51_spill] sm:$0xff] }
 0x3cc   : > { %v3903_v58 = vmax.f32 %v3839_v40, 0.0  ;;  %v3013_v40 = vadd.f32 %v7802_v21, %v9183_v20 }
 0x3cd   : > { %v3636_v14 = vpop.f32.mrf.mxu3 }
 0x3ce   : > { %v3959_v18 = vpack.c.bf16 %v3903_v58, %v3902_v19  ;;  %v3637_v35 = vadd.f32 %v3636_v14, %v7774_v46  ;;  %v7991_v0 = vpop.f32.mrf.mxu0  ;;  %v9184_v19 = vld [vmem:[#allocation31_spill] sm:$0xff]  ;;  %v8000_v58 = vpop.f32.mrf.mxu2 }
 0x3cf   : > { %9181 = vst [vmem:[#allocation32_spill] sm:$0xff] %v7991_v0  ;;  %v3147_v46 = vpack.c.bf16 %v9184_v19, %v7498_v29  ;;  %v2226_v36 = vpop.f32.mrf.mxu1  ;;  %v8009_v19 = vld [vmem:[%s8873_s13] ss:$0 sm:$0xff]  ;;  %v9188_v29 = vld [vmem:[#allocation35_spill] sm:$0xff] }
 0x3d0   : > { %5815 = vmatmul.msk.bf16.gmra.mxu0 %vm2864_vm9, %v3959_v18  ;;  %v3776_v48 = vadd.f32 %v7797_v41, %v3637_v35 }
 0x3d2   : > { %v3840_v14 = vadd.f32 %v3776_v48, %v3011_v61 }
 0x3d4   : > { %v3904_v27 = vmax.f32 %v3840_v14, 0.0 }
 0x3d5   : > { %v3638_v24 = vpop.f32.mrf.mxu3 }
 0x3d6   : > { %v3639_v51 = vadd.f32 %v3638_v24, %v7789_v9  ;;  %v8012_v48 = vpop.f32.mrf.mxu2 }
 0x3d8   : > { %v3777_v35 = vadd.f32 %v7797_v41, %v3639_v51  ;;  %5754 = vmatmul.msk.bf16.gmra.mxu2 %vm2864_vm9, %v3192_v60 }
 0x3da   : > { %v3841_v18 = vadd.f32 %v3777_v35, %v3013_v40  ;;  %5785 = vmatmul.msk.bf16.gmra.mxu3 %vm2864_vm9, %v3147_v46  ;;  %v9185_v46 = vld [vmem:[#allocation53_spill] sm:$0xff]  ;;  %v3193_v35 = vpack.c.bf16 %v2223_v1, %v2221_v31 }
 0x3db   : > { %v3016_v14 = vadd.f32 %v7802_v21, %v9185_v46 }
 0x3dc   : > { %v3905_v6 = vmax.f32 %v3841_v18, 0.0 }
 0x3dd   : > { %v3641_v9 = vpop.f32.mrf.mxu3  ;;  %v4109_v24 = vpop.f32.mrf.mxu0 }
 0x3de   : > { %v3960_v11 = vpack.c.bf16 %v3905_v6, %v3904_v27  ;;  %v3642_v20 = vadd.f32 %v3641_v9, %v7809_v37  ;;  %v4110_v60 = vadd.f32 %v8009_v19, %v4109_v24  ;;  %v2228_v37 = vpop.f32.mrf.mxu1  ;;  %v9186_v6 = vld [vmem:[#allocation54_spill] sm:$0xff] }
 0x3df   : > { %v9187_v9 = vld [vmem:[#allocation38_spill] sm:$0xff] }
 0x3e0   : > { %5816 = vmatmul.msk.bf16.gmra.mxu0 %vm2864_vm9, %v3960_v11  ;;  %v3778_v61 = vadd.f32 %v7797_v41, %v3642_v20  ;;  %v3018_v11 = vadd.f32 %v7802_v21, %v9186_v6  ;;  %v3148_v39 = vpack.c.bf16 %v9188_v29, %v9187_v9  ;;  %v4269_v34 = vmax.f32 %v4110_v60, 0.0 }
 0x3e2   : > { %v3842_v20 = vadd.f32 %v3778_v61, %v3016_v14 }
 0x3e4   : > { %v3906_v1 = vmax.f32 %v3842_v20, 0.0 }
 0x3e5   : > { %v3643_v51 = vpop.f32.mrf.mxu3  ;;  %v4111_v40 = vpop.f32.mrf.mxu0 }
 0x3e6   : > { %v3644_v18 = vadd.f32 %v3643_v51, %v7826_v33  ;;  %v4112_v27 = vadd.f32 %v8009_v19, %v4111_v40  ;;  %v8027_v33 = vpop.f32.mrf.mxu2  ;;  %v2231_v61 = vpop.f32.mrf.mxu1 }
 0x3e8   : > { %v3779_v24 = vadd.f32 %v7797_v41, %v3644_v18  ;;  %v4270_v53 = vmax.f32 %v4112_v27, 0.0  ;;  %5755 = vmatmul.msk.bf16.gmra.mxu2 %vm2864_vm9, %v3193_v35  ;;  %v9189_v35 = vld [vmem:[#allocation55_spill] sm:$0xff]  ;;  %v3194_v27 = vpack.c.bf16 %v2228_v37, %v2226_v36 }
 0x3e9   : > { %v3021_v18 = vadd.f32 %v7802_v21, %v9189_v35 }
 0x3ea   : > { %v3843_v46 = vadd.f32 %v3779_v24, %v3018_v11  ;;  %v4333_v31 = vpack.c.bf16 %v4270_v53, %v4269_v34  ;;  %5786 = vmatmul.msk.bf16.gmra.mxu3 %vm2864_vm9, %v3148_v39 }
 0x3ec   : > { %v3907_v51 = vmax.f32 %v3843_v46, 0.0  ;;  %5848 = vmatmul.msk.bf16.vlgmr.msrb.gmra.mxu1 %vm2864_vm9, %v4333_v31  ;;  %v9190_v46 = vld [vmem:[#allocation57_spill] sm:$0xff] }
 0x3ed   : > { %v3646_v40 = vpop.f32.mrf.mxu3  ;;  %v4114_v6 = vpop.f32.mrf.mxu0 }
 0x3ee   : > { %v3961_v29 = vpack.c.bf16 %v3907_v51, %v3906_v1  ;;  %v3647_v60 = vadd.f32 %v3646_v40, %v7847_v22  ;;  %v4115_v34 = vadd.f32 %v8009_v19, %v4114_v6  ;;  %v8036_v11 = vpop.f32.mrf.mxu2  ;;  %v3023_v22 = vadd.f32 %v7802_v21, %v9190_v46  ;;  %v2233_v36 = vpop.f32.mrf.mxu1 }
 0x3f0   : > { %5817 = vmatmul.msk.bf16.gmra.mxu0 %vm2864_vm9, %v3961_v29  ;;  %v3780_v14 = vadd.f32 %v7797_v41, %v3647_v60  ;;  %v3149_v29 = vpack.c.bf16 %v7587_v52, %v7580_v17  ;;  %v4271_v1 = vmax.f32 %v4115_v34, 0.0 }
 0x3f2   : > { %v3844_v31 = vadd.f32 %v3780_v14, %v3021_v18 }
 0x3f5   : > { %v3648_v53 = vpop.f32.mrf.mxu3  ;;  %v4116_v39 = vpop.f32.mrf.mxu0 }
 0x3f6   : > { %v3649_v20 = vadd.f32 %v3648_v53, %v7854_v25  ;;  %v4117_v24 = vadd.f32 %v8009_v19, %v4116_v39  ;;  %v3908_v25 = vmax.f32 %v3844_v31, 0.0  ;;  %v8048_v46 = vpop.f32.mrf.mxu2  ;;  %v2236_v34 = vpop.f32.mrf.mxu1  ;;  %v3195_v31 = vpack.c.bf16 %v2233_v36, %v2231_v61 }
 0x3f8   : > { %v3781_v51 = vadd.f32 %v7797_v41, %v3649_v20  ;;  %v4272_v40 = vmax.f32 %v4117_v24, 0.0  ;;  %5756 = vmatmul.msk.bf16.gmra.mxu2 %vm2864_vm9, %v3194_v27 }
 0x3fa   : > { %v3845_v37 = vadd.f32 %v3781_v51, %v3023_v22  ;;  %v4334_v6 = vpack.c.bf16 %v4272_v40, %v4271_v1  ;;  %5787 = vmatmul.msk.bf16.gmra.mxu3 %vm2864_vm9, %v3149_v29  ;;  %v9191_v22 = vld [vmem:[#allocation58_spill] sm:$0xff]  ;;  %v9192_v40 = vld [vmem:[#allocation59_spill] sm:$0xff] }
 0x3fb   : > { %v3026_v29 = vadd.f32 %v7802_v21, %v9191_v22 }
 0x3fc   : > { %v3909_v60 = vmax.f32 %v3845_v37, 0.0  ;;  %5849 = vmatmul.msk.bf16.gmra.mxu1 %vm2864_vm9, %v4334_v6  ;;  %v3150_v37 = vpack.c.bf16 %v7687_v44, %v7675_v49 }
 0x3fd   : > { %v3651_v53 = vpop.f32.mrf.mxu3  ;;  %v4119_v39 = vpop.f32.mrf.mxu0 }
 0x3fe   : > { %v3962_v35 = vpack.c.bf16 %v3909_v60, %v3908_v25  ;;  %v3652_v14 = vadd.f32 %v3651_v53, %v7873_v50  ;;  %v4120_v27 = vadd.f32 %v8009_v19, %v4119_v39  ;;  %v3028_v50 = vadd.f32 %v7802_v21, %v9192_v40  ;;  %v8064_v39 = vpop.f32.mrf.mxu2  ;;  %v9193_v40 = vld [vmem:[#allocation61_spill] sm:$0xff] }
 0x400   : > { %5818 = vmatmul.msk.bf16.gmra.mxu0 %vm2864_vm9, %v3962_v35  ;;  %v3782_v18 = vadd.f32 %v7797_v41, %v3652_v14  ;;  %v4273_v25 = vmax.f32 %v4120_v27, 0.0 }
 0x402   : > { %v3846_v6 = vadd.f32 %v3782_v18, %v3026_v29  ;;  %v2238_v18 = vpop.f32.mrf.mxu1 }
 0x405   : > { %v3653_v20 = vpop.f32.mrf.mxu3  ;;  %v4121_v24 = vpop.f32.mrf.mxu0 }
 0x406   : > { %v3654_v1 = vadd.f32 %v3653_v20, %v7889_v32  ;;  %v4122_v51 = vadd.f32 %v8009_v19, %v4121_v24  ;;  %v3910_v32 = vmax.f32 %v3846_v6, 0.0  ;;  %v8070_v22 = vpop.f32.mrf.mxu2 }
 0x408   : > { %v3783_v60 = vadd.f32 %v7797_v41, %v3654_v1  ;;  %v4274_v53 = vmax.f32 %v4122_v51, 0.0  ;;  %5757 = vmatmul.msk.bf16.gmra.mxu2 %vm2864_vm9, %v3195_v31 }
 0x40a   : > { %v3847_v61 = vadd.f32 %v3783_v60, %v3028_v50  ;;  %v4335_v36 = vpack.c.bf16 %v4274_v53, %v4273_v25  ;;  %5788 = vmatmul.msk.bf16.gmra.mxu3 %vm2864_vm9, %v3150_v37  ;;  %v3031_v50 = vadd.f32 %v7802_v21, %v9193_v40  ;;  %v3196_v37 = vpack.c.bf16 %v2238_v18, %v2236_v34  ;;  %v9194_v60 = vld [vmem:[#allocation62_spill] sm:$0xff] }
 0x40b   : > { %v3151_v53 = vpack.c.bf16 %v7709_v23, %v7694_v26 }
 0x40c   : > { %v3911_v35 = vmax.f32 %v3847_v61, 0.0  ;;  %5850 = vmatmul.msk.bf16.gmra.mxu1 %vm2864_vm9, %v4335_v36 }
 0x40d   : > { %v3656_v14 = vpop.f32.mrf.mxu3  ;;  %v4124_v20 = vpop.f32.mrf.mxu0 }
 0x40e   : > { %v3963_v24 = vpack.c.bf16 %v3911_v35, %v3910_v32  ;;  %v3657_v27 = vadd.f32 %v3656_v14, %v7900_v38  ;;  %v4125_v31 = vadd.f32 %v8009_v19, %v4124_v20  ;;  %v3033_v38 = vadd.f32 %v7802_v21, %v9194_v60  ;;  %v2241_v14 = vpop.f32.mrf.mxu1 }
 0x410   : > { %5819 = vmatmul.msk.bf16.gmra.mxu0 %vm2864_vm9, %v3963_v24  ;;  %v3784_v29 = vadd.f32 %v7797_v41, %v3657_v27  ;;  %v4275_v36 = vmax.f32 %v4125_v31, 0.0 }
 0x412   : > { %v3848_v61 = vadd.f32 %v3784_v29, %v3031_v50 }
 0x415   : > { %v3658_v1 = vpop.f32.mrf.mxu3  ;;  %v4126_v51 = vpop.f32.mrf.mxu0 }
 0x416   : > { %v3659_v6 = vadd.f32 %v3658_v1, %v7916_v8  ;;  %v4127_v25 = vadd.f32 %v8009_v19, %v4126_v51  ;;  %v3912_v8 = vmax.f32 %v3848_v61, 0.0  ;;  %v8086_v1 = vpop.f32.mrf.mxu2  ;;  %v2243_v51 = vpop.f32.mrf.mxu1 }
 0x418   : > { %v3785_v32 = vadd.f32 %v7797_v41, %v3659_v6  ;;  %v4276_v35 = vmax.f32 %v4127_v25, 0.0  ;;  %5758 = vmatmul.msk.bf16.gmra.mxu2 %vm2864_vm9, %v3196_v37  ;;  %v9195_v25 = vld [vmem:[#allocation64_spill] sm:$0xff] }
 0x419   : > { %v3036_v60 = vadd.f32 %v7802_v21, %v9195_v25 }
 0x41a   : > { %v3849_v20 = vadd.f32 %v3785_v32, %v3033_v38  ;;  %v4336_v34 = vpack.c.bf16 %v4276_v35, %v4275_v36  ;;  %5789 = vmatmul.msk.bf16.gmra.mxu3 %vm2864_vm9, %v3151_v53  ;;  %v3197_v38 = vpack.c.bf16 %v2243_v51, %v2241_v14  ;;  %v9196_v36 = vld [vmem:[#allocation66_spill] sm:$0xff]  ;;  %v9197_v32 = vld [vmem:[#allocation99_spill] sm:$0xff]  ;;  %v9198_v35 = vld [vmem:[#allocation101_spill] sm:$0xff] }
 0x41c   : > { %v3913_v24 = vmax.f32 %v3849_v20, 0.0  ;;  %5851 = vmatmul.msk.bf16.gmra.mxu1 %vm2864_vm9, %v4336_v34  ;;  %v3152_v20 = vpack.c.bf16 %v9198_v35, %v9197_v32 }
 0x41d   : > { %v3661_v18 = vpop.f32.mrf.mxu3  ;;  %v4129_v27 = vpop.f32.mrf.mxu0 }
 0x41e   : > { %v3964_v29 = vpack.c.bf16 %v3913_v24, %v3912_v8  ;;  %v3662_v31 = vadd.f32 %v3661_v18, %v7928_v4  ;;  %v4130_v50 = vadd.f32 %v8009_v19, %v4129_v27  ;;  %v3038_v4 = vadd.f32 %v7802_v21, %v9196_v36  ;;  %v8100_v34 = vpop.f32.mrf.mxu2 }
 0x420   : > { %5820 = vmatmul.msk.bf16.gmra.mxu0 %vm2864_vm9, %v3964_v29  ;;  %v3786_v40 = vadd.f32 %v7797_v41, %v3662_v31  ;;  %v4277_v24 = vmax.f32 %v4130_v50, 0.0 }
 0x422   : > { %v3850_v8 = vadd.f32 %v3786_v40, %v3036_v60 }
 0x425   : > { %v3663_v37 = vpop.f32.mrf.mxu3  ;;  %v4131_v6 = vpop.f32.mrf.mxu0 }
 0x426   : > { %v3664_v53 = vadd.f32 %v3663_v37, %v7940_v57  ;;  %v4132_v61 = vadd.f32 %v8009_v19, %v4131_v6  ;;  %v3914_v57 = vmax.f32 %v3850_v8, 0.0 }
 0x428   : > { %v3787_v18 = vadd.f32 %v7797_v41, %v3664_v53  ;;  %v4278_v27 = vmax.f32 %v4132_v61, 0.0  ;;  %5759 = vmatmul.msk.bf16.gmra.mxu2 %vm2864_vm9, %v3197_v38  ;;  %v9199_v53 = vld [vmem:[#allocation68_spill] sm:$0xff] }
 0x429   : > { %v3041_v61 = vadd.f32 %v7802_v21, %v9199_v53 }
 0x42a   : > { %v3851_v14 = vadd.f32 %v3787_v18, %v3038_v4  ;;  %v4337_v29 = vpack.c.bf16 %v4278_v27, %v4277_v24  ;;  %5790 = vmatmul.msk.bf16.gmra.mxu3 %vm2864_vm9, %v3152_v20  ;;  %v9200_v20 = vld [vmem:[#allocation70_spill] sm:$0xff]  ;;  %v9201_v24 = vld [vmem:[#allocation103_spill] sm:$0xff] }
 0x42b   : > { %v3043_v8 = vadd.f32 %v7802_v21, %v9200_v20 }
 0x42c   : > { %v3915_v31 = vmax.f32 %v3851_v14, 0.0  ;;  %5852 = vmatmul.msk.bf16.gmra.mxu1 %vm2864_vm9, %v4337_v29 }
 0x42d   : > { %v3666_v51 = vpop.f32.mrf.mxu3  ;;  %v4134_v37 = vpop.f32.mrf.mxu0 }
 0x42e   : > { %v3965_v6 = vpack.c.bf16 %v3915_v31, %v3914_v57  ;;  %v3667_v25 = vadd.f32 %v3666_v51, %v7960_v54  ;;  %v4135_v50 = vadd.f32 %v8009_v19, %v4134_v37  ;;  %v9202_v54 = vld [vmem:[#allocation105_spill] sm:$0xff] }
 0x42f   : > { %v3153_v18 = vpack.c.bf16 %v9202_v54, %v9201_v24 }
 0x430   : > { %5821 = vmatmul.msk.bf16.gmra.mxu0 %vm2864_vm9, %v3965_v6  ;;  %v3788_v40 = vadd.f32 %v7797_v41, %v3667_v25  ;;  %v4279_v14 = vmax.f32 %v4135_v50, 0.0 }
 0x432   : > { %v3852_v27 = vadd.f32 %v3788_v40, %v3041_v61 }
 0x434   : > { %v3916_v37 = vmax.f32 %v3852_v27, 0.0 }
 0x435   : > { %v3668_v60 = vpop.f32.mrf.mxu3  ;;  %v4136_v38 = vpop.f32.mrf.mxu0 }
 0x436   : > { %v3669_v36 = vadd.f32 %v3668_v60, %v7967_v55  ;;  %v4137_v4 = vadd.f32 %v8009_v19, %v4136_v38 }
 0x438   : > { %v3789_v29 = vadd.f32 %v7797_v41, %v3669_v36  ;;  %v4280_v57 = vmax.f32 %v4137_v4, 0.0  ;;  %v9203_v36 = vld [vmem:[#allocation71_spill] sm:$0xff] }
 0x439   : > { %v3046_v4 = vadd.f32 %v7802_v21, %v9203_v36 }
 0x43a   : > { %v3853_v31 = vadd.f32 %v3789_v29, %v3043_v8  ;;  %v4338_v51 = vpack.c.bf16 %v4280_v57, %v4279_v14  ;;  %5791 = vmatmul.msk.bf16.gmra.mxu3 %vm2864_vm9, %v3153_v18  ;;  %v9204_v18 = vld [vmem:[#allocation73_spill] sm:$0xff]  ;;  %v9205_v14 = vld [vmem:[#allocation108_spill] sm:$0xff] }
 0x43b   : > { %v3048_v27 = vadd.f32 %v7802_v21, %v9204_v18 }
 0x43c   : > { %v3917_v6 = vmax.f32 %v3853_v31, 0.0  ;;  %5853 = vmatmul.msk.bf16.gmra.mxu1 %vm2864_vm9, %v4338_v51 }
 0x43d   : > { %v3671_v55 = vpop.f32.mrf.mxu3  ;;  %v4139_v25 = vpop.f32.mrf.mxu0 }
 0x43e   : > { %v3966_v60 = vpack.c.bf16 %v3917_v6, %v3916_v37  ;;  %v3672_v38 = vadd.f32 %v3671_v55, %v7986_v47  ;;  %v4140_v50 = vadd.f32 %v8009_v19, %v4139_v25  ;;  %v9206_v47 = vld [vmem:[#allocation110_spill] sm:$0xff] }
 0x43f   : > { %v3154_v29 = vpack.c.bf16 %v9206_v47, %v9205_v14 }
 0x440   : > { %5822 = vmatmul.msk.bf16.gmra.mxu0 %vm2864_vm9, %v3966_v60  ;;  %v3790_v40 = vadd.f32 %v7797_v41, %v3672_v38  ;;  %v4281_v31 = vmax.f32 %v4140_v50, 0.0 }
 0x442   : > { %v3854_v57 = vadd.f32 %v3790_v40, %v3046_v4 }
 0x444   : > { %v3918_v25 = vmax.f32 %v3854_v57, 0.0 }
 0x445   : > { %v3673_v53 = vpop.f32.mrf.mxu3  ;;  %v4141_v61 = vpop.f32.mrf.mxu0 }
 0x446   : > { %v3674_v20 = vadd.f32 %v3673_v53, %v8000_v58  ;;  %v4142_v8 = vadd.f32 %v8009_v19, %v4141_v61 }
 0x448   : > { %v3791_v51 = vadd.f32 %v7797_v41, %v3674_v20  ;;  %v4282_v37 = vmax.f32 %v4142_v8, 0.0  ;;  %v9207_v20 = vld [vmem:[#allocation74_spill] sm:$0xff] }
 0x449   : > { %v3051_v8 = vadd.f32 %v7802_v21, %v9207_v20 }
 0x44a   : > { %v3855_v6 = vadd.f32 %v3791_v51, %v3048_v27  ;;  %v4339_v55 = vpack.c.bf16 %v4282_v37, %v4281_v31  ;;  %5792 = vmatmul.msk.bf16.gmra.mxu3 %vm2864_vm9, %v3154_v29  ;;  %v9208_v29 = vld [vmem:[#allocation75_spill] sm:$0xff] }
 0x44b   : > { %v3053_v57 = vadd.f32 %v7802_v21, %v9208_v29  ;;  %v9209_v31 = vld [vmem:[#allocation111_spill] sm:$0xff] }
 0x44c   : > { %v3919_v60 = vmax.f32 %v3855_v6, 0.0  ;;  %5854 = vmatmul.msk.bf16.gmra.mxu1 %vm2864_vm9, %v4339_v55 }
 0x44d   : > { %v3676_v58 = vpop.f32.mrf.mxu3  ;;  %v4144_v38 = vpop.f32.mrf.mxu0 }
 0x44e   : > { %v3967_v53 = vpack.c.bf16 %v3919_v60, %v3918_v25  ;;  %v3677_v61 = vadd.f32 %v3676_v58, %v8012_v48  ;;  %v4145_v50 = vadd.f32 %v8009_v19, %v4144_v38  ;;  %v3155_v48 = vpack.c.bf16 %v7824_v45, %v9209_v31 }
 0x450   : > { %5823 = vmatmul.msk.bf16.gmra.mxu0 %vm2864_vm9, %v3967_v53  ;;  %v3792_v40 = vadd.f32 %v7797_v41, %v3677_v61  ;;  %v4283_v37 = vmax.f32 %v4145_v50, 0.0  ;;  %v8151_v61 = vpop.f32.mrf.mxu2 }
 0x452   : > { %v3856_v51 = vadd.f32 %v3792_v40, %v3051_v8 }
 0x454   : > { %v3920_v58 = vmax.f32 %v3856_v51, 0.0 }
 0x455   : > { %v3678_v36 = vpop.f32.mrf.mxu3  ;;  %v4146_v4 = vpop.f32.mrf.mxu0 }
 0x456   : > { %v3679_v18 = vadd.f32 %v3678_v36, %v8027_v33  ;;  %v4147_v27 = vadd.f32 %v8009_v19, %v4146_v4 }
 0x458   : > { %v3793_v6 = vadd.f32 %v7797_v41, %v3679_v18  ;;  %v4284_v55 = vmax.f32 %v4147_v27, 0.0  ;;  %v9210_v18 = vld [vmem:[#allocation77_spill] sm:$0xff] }
 0x459   : > { %v3056_v27 = vadd.f32 %v7802_v21, %v9210_v18 }
 0x45a   : > { %v3857_v25 = vadd.f32 %v3793_v6, %v3053_v57  ;;  %v4340_v60 = vpack.c.bf16 %v4284_v55, %v4283_v37  ;;  %5793 = vmatmul.msk.bf16.gmra.mxu3 %vm2864_vm9, %v3155_v48  ;;  %v9211_v48 = vld [vmem:[#allocation78_spill] sm:$0xff]  ;;  %v8165_v37 = vpop.f32.mrf.mxu2 }
 0x45b   : > { %v3058_v51 = vadd.f32 %v7802_v21, %v9211_v48 }
 0x45c   : > { %v3921_v38 = vmax.f32 %v3857_v25, 0.0  ;;  %5855 = vmatmul.msk.bf16.gmra.mxu1 %vm2864_vm9, %v4340_v60 }
 0x45d   : > { %v3681_v33 = vpop.f32.mrf.mxu3  ;;  %v4149_v53 = vpop.f32.mrf.mxu0 }
 0x45e   : > { %v3968_v36 = vpack.c.bf16 %v3921_v38, %v3920_v58  ;;  %v3682_v4 = vadd.f32 %v3681_v33, %v8036_v11  ;;  %v4150_v50 = vadd.f32 %v8009_v19, %v4149_v53  ;;  %v3156_v11 = vpack.c.bf16 %v7852_v43, %v7836_v62 }
 0x460   : > { %5824 = vmatmul.msk.bf16.gmra.mxu0 %vm2864_vm9, %v3968_v36  ;;  %v3794_v40 = vadd.f32 %v7797_v41, %v3682_v4  ;;  %v4285_v55 = vmax.f32 %v4150_v50, 0.0  ;;  %v8172_v36 = vld [vmem:[%s8875_s15] ss:$0 sm:$0xff] }
 0x462   : > { %v3858_v6 = vadd.f32 %v3794_v40, %v3056_v27  ;;  %v8178_v27 = vpop.f32.mrf.mxu2 }
 0x465   : > { %v3683_v20 = vpop.f32.mrf.mxu3  ;;  %v4151_v8 = vpop.f32.mrf.mxu0 }
 0x466   : > { %v3684_v29 = vadd.f32 %v3683_v20, %v8048_v46  ;;  %v4152_v57 = vadd.f32 %v8009_v19, %v4151_v8  ;;  %v3922_v46 = vmax.f32 %v3858_v6, 0.0  ;;  %v9213_v6 = vld [vmem:[#allocation9_spill] sm:$0xff] }
 0x468   : > { %v3795_v25 = vadd.f32 %v7797_v41, %v3684_v29  ;;  %v4286_v60 = vmax.f32 %v4152_v57, 0.0  ;;  %v9212_v57 = vld [vmem:[#allocation8_spill] sm:$0xff] }
 0x469   : > { %v4490_v58 = vpop.f32.mrf.mxu1 }
 0x46a   : > { %v3859_v38 = vadd.f32 %v3795_v25, %v3058_v51  ;;  %v4341_v33 = vpack.c.bf16 %v4286_v60, %v4285_v55  ;;  %5794 = vmatmul.msk.bf16.gmra.mxu3 %vm2864_vm9, %v3156_v11  ;;  %v4491_v20 = vadd.f32 %v8172_v36, %v4490_v58 }
 0x46c   : > { %v3923_v53 = vmax.f32 %v3859_v38, 0.0  ;;  %5856 = vmatmul.msk.bf16.gmra.mxu1 %vm2864_vm9, %v4341_v33  ;;  %v8182_v48 = vmul.f32 %v4491_v20, %v9212_v57 }
 0x46d   : > { %v3686_v4 = vpop.f32.mrf.mxu3  ;;  %v4154_v40 = vpop.f32.mrf.mxu0 }
 0x46e   : > { %v3969_v50 = vpack.c.bf16 %v3923_v53, %v3922_v46  ;;  %v3687_v8 = vadd.f32 %v3686_v4, %v8064_v39  ;;  %v4155_v11 = vadd.f32 %v8009_v19, %v4154_v40  ;;  %v9214_v39 = vld [vmem:[#allocation80_spill] sm:$0xff]  ;;  %v9215_v53 = vld [vmem:[#allocation82_spill] sm:$0xff]  ;;  %v3157_v40 = vpack.c.bf16 %v7878_v30, %v7871_v63 }
 0x46f   : > { %v3061_v58 = vadd.f32 %v7802_v21, %v9214_v39  ;;  %v3063_v4 = vadd.f32 %v7802_v21, %v9215_v53 }
 0x470   : > { %5825 = vmatmul.msk.bf16.gmra.mxu0 %vm2864_vm9, %v3969_v50  ;;  %v3796_v51 = vadd.f32 %v7797_v41, %v3687_v8  ;;  %v4287_v20 = vmax.f32 %v4155_v11, 0.0 }
 0x471   : > { %v4492_v18 = vpop.f32.mrf.mxu1 }
 0x472   : > { %v4493_v29 = vadd.f32 %v8172_v36, %v4492_v18  ;;  %v3860_v50 = vadd.f32 %v3796_v51, %v3061_v58 }
 0x474   : > { %v8187_v55 = vmul.f32 %v4493_v29, %v9213_v6 }
 0x475   : > { %v3688_v25 = vpop.f32.mrf.mxu3  ;;  %v4156_v60 = vpop.f32.mrf.mxu0 }
 0x476   : > { %v3689_v38 = vadd.f32 %v3688_v25, %v8070_v22  ;;  %v4157_v33 = vadd.f32 %v8009_v19, %v4156_v60  ;;  %v8201_v22 = vpop.f32.mrf.mxu2  ;;  %v3924_v25 = vmax.f32 %v3860_v50, 0.0 }
 0x478   : > { %v3797_v8 = vadd.f32 %v7797_v41, %v3689_v38  ;;  %v4288_v18 = vmax.f32 %v4157_v33, 0.0  ;;  %v9216_v33 = vld [vmem:[#allocation10_spill] sm:$0xff] }
 0x479   : > { %v4495_v29 = vpop.f32.mrf.mxu1 }
 0x47a   : > { %v3861_v57 = vadd.f32 %v3797_v8, %v3063_v4  ;;  %v4342_v6 = vpack.c.bf16 %v4288_v18, %v4287_v20  ;;  %5795 = vmatmul.msk.bf16.gmra.mxu3 %vm2864_vm9, %v3157_v40  ;;  %v4496_v51 = vadd.f32 %v8172_v36, %v4495_v29  ;;  %v9217_v20 = vld [vmem:[#allocation11_spill] sm:$0xff] }
 0x47b   : > { %v9218_v29 = vld [vmem:[#allocation83_spill] sm:$0xff] }
 0x47c   : > { %v3925_v60 = vmax.f32 %v3861_v57, 0.0  ;;  %5857 = vmatmul.msk.bf16.gmra.mxu1 %vm2864_vm9, %v4342_v6  ;;  %v8209_v4 = vmul.f32 %v4496_v51, %v9216_v33  ;;  %v3158_v51 = vpack.c.bf16 %v7913_v5, %v7896_v12 }
 0x47d   : > { %v3691_v39 = vpop.f32.mrf.mxu3  ;;  %v4159_v53 = vpop.f32.mrf.mxu0 }
 0x47e   : > { %v3970_v46 = vpack.c.bf16 %v3925_v60, %v3924_v25  ;;  %v3692_v11 = vadd.f32 %v3691_v39, %v8086_v1  ;;  %v4160_v50 = vadd.f32 %v8009_v19, %v4159_v53  ;;  %v3066_v1 = vadd.f32 %v7802_v21, %v9218_v29  ;;  %v8218_v6 = vpop.f32.mrf.mxu2  ;;  %v9219_v39 = vld [vmem:[#allocation84_spill] sm:$0xff] }
 0x47f   : > { %v3068_v53 = vadd.f32 %v7802_v21, %v9219_v39 }
 0x480   : > { %5826 = vmatmul.msk.bf16.gmra.mxu0 %vm2864_vm9, %v3970_v46  ;;  %v3798_v40 = vadd.f32 %v7797_v41, %v3692_v11 }
 0x481   : > { %v4497_v58 = vpop.f32.mrf.mxu1 }
 0x482   : > { %v4498_v38 = vadd.f32 %v8172_v36, %v4497_v58  ;;  %v3862_v11 = vadd.f32 %v3798_v40, %v3066_v1  ;;  %v4289_v58 = vmax.f32 %v4160_v50, 0.0 }
 0x484   : > { %v8214_v8 = vmul.f32 %v4498_v38, %v9217_v20 }
 0x485   : > { %v3693_v18 = vpop.f32.mrf.mxu3  ;;  %v4161_v57 = vpop.f32.mrf.mxu0 }
 0x486   : > { %v3694_v46 = vadd.f32 %v3693_v18, %v8100_v34  ;;  %v4162_v25 = vadd.f32 %v8009_v19, %v4161_v57  ;;  %v3926_v34 = vmax.f32 %v3862_v11, 0.0  ;;  %v8231_v39 = vpop.f32.mrf.mxu2  ;;  %v9221_v11 = vld [vmem:[#allocation15_spill] sm:$0xff] }
 0x488   : > { %v3799_v38 = vadd.f32 %v7797_v41, %v3694_v46  ;;  %v4290_v33 = vmax.f32 %v4162_v25, 0.0  ;;  %v9220_v46 = vld [vmem:[#allocation13_spill] sm:$0xff] }
 0x489   : > { %v4500_v20 = vpop.f32.mrf.mxu1 }
 0x48a   : > { %v3863_v29 = vadd.f32 %v3799_v38, %v3068_v53  ;;  %v4343_v30 = vpack.c.bf16 %v4290_v33, %v4289_v58  ;;  %5796 = vmatmul.msk.bf16.gmra.mxu3 %vm2864_vm9, %v3158_v51  ;;  %v4501_v40 = vadd.f32 %v8172_v36, %v4500_v20  ;;  %v8253_v33 = vld [vmem:[%s8868_s8] ss:$0 sm:$0xff]  ;;  %v9222_v20 = vld [vmem:[#allocation39_spill] sm:$0xff] }
 0x48c   : > { %v3927_v18 = vmax.f32 %v3863_v29, 0.0  ;;  %5858 = vmatmul.msk.bf16.gmra.mxu1 %vm2864_vm9, %v4343_v30  ;;  %v8238_v25 = vmul.f32 %v4501_v40, %v9220_v46  ;;  %v8243_v30 = vld [vmem:[%s8871_s11] ss:$0 sm:$0xff]  ;;  %v3071_v29 = vadd.f32 %v8253_v33, %v9222_v20  ;;  %v3159_v40 = vpack.c.bf16 %v7938_v56, %v7922_v59 }
 0x48d   : > { %v3696_v57 = vpop.f32.mrf.mxu3  ;;  %v4164_v60 = vpop.f32.mrf.mxu0 }
 0x48e   : > { %v3971_v21 = vpack.c.bf16 %v3927_v18, %v3926_v34  ;;  %v3697_v50 = vadd.f32 %v3696_v57, %v8151_v61  ;;  %v4165_v51 = vadd.f32 %v8009_v19, %v4164_v60  ;;  %v9223_v57 = vld [vmem:[#allocation45_spill] sm:$0xff]  ;;  %v8266_v20 = vpop.f32.mrf.mxu2 }
 0x490   : > { %5827 = vmatmul.msk.bf16.gmra.mxu0 %vm2864_vm9, %v3971_v21  ;;  %v3800_v53 = vadd.f32 %v8243_v30, %v3697_v50  ;;  %v3073_v21 = vadd.f32 %v8253_v33, %v9223_v57 }
 0x491   : > { %v4502_v41 = vpop.f32.mrf.mxu1 }
 0x492   : > { %v4503_v1 = vadd.f32 %v8172_v36, %v4502_v41  ;;  %v3864_v50 = vadd.f32 %v3800_v53, %v3071_v29  ;;  %v4291_v41 = vmax.f32 %v4165_v51, 0.0 }
 0x494   : > { %v8248_v58 = vmul.f32 %v4503_v1, %v9221_v11 }
 0x495   : > { %v3698_v61 = vpop.f32.mrf.mxu3  ;;  %v4166_v38 = vpop.f32.mrf.mxu0 }
 0x496   : > { %v3699_v34 = vadd.f32 %v3698_v61, %v8165_v37  ;;  %v4167_v18 = vadd.f32 %v8009_v19, %v4166_v38  ;;  %v3928_v38 = vmax.f32 %v3864_v50, 0.0 }
 0x498   : > { %v3801_v1 = vadd.f32 %v8243_v30, %v3699_v34  ;;  %v4292_v46 = vmax.f32 %v4167_v18, 0.0  ;;  %v8274_v18 = vpop.f32.mrf.mxu2 }
 0x499   : > { %v4505_v11 = vpop.f32.mrf.mxu1 }
 0x49a   : > { %v3865_v37 = vadd.f32 %v3801_v1, %v3073_v21  ;;  %v4344_v61 = vpack.c.bf16 %v4292_v46, %v4291_v41  ;;  %5797 = vmatmul.msk.bf16.gmra.mxu3 %vm2864_vm9, %v3159_v40  ;;  %v4506_v53 = vadd.f32 %v8172_v36, %v4505_v11  ;;  %v9224_v21 = vld [vmem:[#allocation17_spill] sm:$0xff]  ;;  %v9225_v1 = vld [vmem:[#allocation19_spill] sm:$0xff] }
 0x49c   : > { %v3929_v60 = vmax.f32 %v3865_v37, 0.0  ;;  %5859 = vmatmul.msk.bf16.gmra.mxu1 %vm2864_vm9, %v4344_v61  ;;  %v8277_v40 = vmul.f32 %v4506_v53, %v9224_v21 }
 0x49d   : > { %v3701_v57 = vpop.f32.mrf.mxu3  ;;  %v4169_v12 = vpop.f32.mrf.mxu0 }
 0x49e   : > { %v3972_v5 = vpack.c.bf16 %v3929_v60, %v3928_v38  ;;  %v3702_v51 = vadd.f32 %v3701_v57, %v8178_v27  ;;  %v4170_v41 = vadd.f32 %v8009_v19, %v4169_v12  ;;  %v9226_v27 = vld [vmem:[#allocation46_spill] sm:$0xff]  ;;  %v3160_v12 = vpack.c.bf16 %v7965_v2, %v7952_v16 }
 0x49f   : > { %v9227_v57 = vld [vmem:[#allocation42_spill] sm:$0xff] }
 0x4a0   : > { %5828 = vmatmul.msk.bf16.gmra.mxu0 %vm2864_vm9, %v3972_v5  ;;  %v3802_v50 = vadd.f32 %v8243_v30, %v3702_v51  ;;  %v3076_v5 = vadd.f32 %v8253_v33, %v9226_v27  ;;  %v3078_v53 = vadd.f32 %v8253_v33, %v9227_v57  ;;  %v3439_v59 = vpop.f32.mrf.mxu2 }
 0x4a1   : > { %v4507_v29 = vpop.f32.mrf.mxu1 }
 0x4a2   : > { %v4508_v34 = vadd.f32 %v8172_v36, %v4507_v29  ;;  %v3866_v51 = vadd.f32 %v3802_v50, %v3076_v5  ;;  %v4293_v29 = vmax.f32 %v4170_v41, 0.0 }
 0x4a4   : > { %v8282_v60 = vmul.f32 %v4508_v34, %v9225_v1 }
 0x4a5   : > { %v3703_v46 = vpop.f32.mrf.mxu3  ;;  %v4171_v11 = vpop.f32.mrf.mxu0 }
 0x4a6   : > { %v3704_v37 = vadd.f32 %v3703_v46, %v8201_v22  ;;  %v4172_v61 = vadd.f32 %v8009_v19, %v4171_v11  ;;  %v3930_v46 = vmax.f32 %v3866_v51, 0.0 }
 0x4a8   : > { %v3803_v34 = vadd.f32 %v8243_v30, %v3704_v37  ;;  %v4294_v21 = vmax.f32 %v4172_v61, 0.0 }
 0x4a9   : > { %v8295_v1 = vpop.f32.mrf.mxu1 }
 0x4aa   : > { %v3867_v27 = vadd.f32 %v3803_v34, %v3078_v53  ;;  %v4345_v22 = vpack.c.bf16 %v4294_v21, %v4293_v29  ;;  %5798 = vmatmul.msk.bf16.gmra.mxu3 %vm2864_vm9, %v3160_v12  ;;  %v9228_v12 = vld [vmem:[#allocation85_spill] sm:$0xff]  ;;  %v9229_v21 = vld [vmem:[#allocation86_spill] sm:$0xff] }
 0x4ab   : > { %v3081_v51 = vadd.f32 %v8253_v33, %v9228_v12 }
 0x4ac   : > { %v3931_v11 = vmax.f32 %v3867_v27, 0.0  ;;  %5860 = vmatmul.msk.bf16.gmra.mxu1 %vm2864_vm9, %v4345_v22 }
 0x4ad   : > { %v3706_v38 = vpop.f32.mrf.mxu3  ;;  %v4174_v57 = vpop.f32.mrf.mxu0 }
 0x4ae   : > { %v3973_v56 = vpack.c.bf16 %v3931_v11, %v3930_v46  ;;  %v3707_v50 = vadd.f32 %v3706_v38, %v8218_v6  ;;  %v4175_v37 = vadd.f32 %v8009_v19, %v4174_v57  ;;  %v3083_v6 = vadd.f32 %v8253_v33, %v9229_v21  ;;  %v3441_v38 = vpop.f32.mrf.mxu2 }
 0x4b0   : > { %5829 = vmatmul.msk.bf16.gmra.mxu0 %vm2864_vm9, %v3973_v56  ;;  %v3804_v5 = vadd.f32 %v8243_v30, %v3707_v50  ;;  %v3161_v56 = vpack.c.bf16 %v7991_v0, %v7984_v15  ;;  %v4295_v22 = vmax.f32 %v4175_v37, 0.0 }
 0x4b1   : > { %v8301_v41 = vpop.f32.mrf.mxu1 }
 0x4b2   : > { %v3868_v27 = vadd.f32 %v3804_v5, %v3081_v51 }
 0x4b5   : > { %v3708_v61 = vpop.f32.mrf.mxu3  ;;  %v4176_v53 = vpop.f32.mrf.mxu0 }
 0x4b6   : > { %v3709_v29 = vadd.f32 %v3708_v61, %v8231_v39  ;;  %v4177_v34 = vadd.f32 %v8009_v19, %v4176_v53  ;;  %v3932_v39 = vmax.f32 %v3868_v27, 0.0  ;;  %v3444_v37 = vpop.f32.mrf.mxu2 }
 0x4b8   : > { %v3805_v46 = vadd.f32 %v8243_v30, %v3709_v29  ;;  %v4296_v11 = vmax.f32 %v4177_v34, 0.0 }
 0x4b9   : > { %v8314_v57 = vpop.f32.mrf.mxu1 }
 0x4ba   : > { %v3869_v50 = vadd.f32 %v3805_v46, %v3083_v6  ;;  %v4346_v12 = vpack.c.bf16 %v4296_v11, %v4295_v22  ;;  %5799 = vmatmul.msk.bf16.gmra.mxu3 %vm2864_vm9, %v3161_v56  ;;  %v9230_v56 = vld [vmem:[#allocation87_spill] sm:$0xff]  ;;  %v9231_v11 = vld [vmem:[#allocation88_spill] sm:$0xff] }
 0x4bb   : > { %v3086_v27 = vadd.f32 %v8253_v33, %v9230_v56 }
 0x4bc   : > { %v3933_v61 = vmax.f32 %v3869_v50, 0.0  ;;  %5861 = vmatmul.msk.bf16.gmra.mxu1 %vm2864_vm9, %v4346_v12 }
 0x4bd   : > { %v3711_v53 = vpop.f32.mrf.mxu3  ;;  %v4179_v21 = vpop.f32.mrf.mxu0 }
 0x4be   : > { %v3974_v16 = vpack.c.bf16 %v3933_v61, %v3932_v39  ;;  %v3712_v2 = vadd.f32 %v3711_v53, %v8266_v20  ;;  %v4180_v29 = vadd.f32 %v8009_v19, %v4179_v21  ;;  %v3088_v20 = vadd.f32 %v8253_v33, %v9231_v11  ;;  %v3446_v21 = vpop.f32.mrf.mxu2 }
 0x4c0   : > { %5830 = vmatmul.msk.bf16.gmra.mxu0 %vm2864_vm9, %v3974_v16  ;;  %v3806_v51 = vadd.f32 %v8243_v30, %v3712_v2  ;;  %v4297_v16 = vmax.f32 %v4180_v29, 0.0 }
 0x4c1   : > { %v4517_v5 = vpop.f32.mrf.mxu1 }
 0x4c2   : > { %v3870_v50 = vadd.f32 %v3806_v51, %v3086_v27 }
 0x4c4   : > { %v3934_v0 = vmax.f32 %v3870_v50, 0.0 }
 0x4c5   : > { %v3713_v34 = vpop.f32.mrf.mxu3  ;;  %v4181_v6 = vpop.f32.mrf.mxu0 }
 0x4c6   : > { %v3714_v22 = vadd.f32 %v3713_v34, %v8274_v18  ;;  %v4182_v46 = vadd.f32 %v8009_v19, %v4181_v6  ;;  %v8335_v50 = vpop.f32.mrf.mxu2 }
 0x4c8   : > { %v3807_v12 = vadd.f32 %v8243_v30, %v3714_v22  ;;  %v4298_v39 = vmax.f32 %v4182_v46, 0.0  ;;  %v9232_v46 = vld [vmem:[#allocation89_spill] sm:$0xff] }
 0x4c9   : > { %v4520_v2 = vpop.f32.mrf.mxu1 }
 0x4ca   : > { %v3871_v61 = vadd.f32 %v3807_v12, %v3088_v20  ;;  %v4347_v53 = vpack.c.bf16 %v4298_v39, %v4297_v16  ;;  %v3091_v20 = vadd.f32 %v8253_v33, %v9232_v46  ;;  %v9233_v39 = vld [vmem:[#allocation90_spill] sm:$0xff] }
 0x4cc   : > { %v3935_v15 = vmax.f32 %v3871_v61, 0.0  ;;  %5862 = vmatmul.msk.bf16.gmra.mxu1 %vm2864_vm9, %v4347_v53 }
 0x4cd   : > { %v3716_v56 = vpop.f32.mrf.mxu3  ;;  %v4184_v18 = vpop.f32.mrf.mxu0 }
 0x4ce   : > { %v3975_v34 = vpack.c.bf16 %v3935_v15, %v3934_v0  ;;  %v3717_v6 = vadd.f32 %v3716_v56, %v3439_v59  ;;  %v4185_v29 = vadd.f32 %v8009_v19, %v4184_v18  ;;  %v3093_v59 = vadd.f32 %v8253_v33, %v9233_v39 }
 0x4d0   : > { %5831 = vmatmul.msk.bf16.gmra.mxu0 %vm2864_vm9, %v3975_v34  ;;  %v3808_v51 = vadd.f32 %v8243_v30, %v3717_v6  ;;  %v4299_v0 = vmax.f32 %v4185_v29, 0.0 }
 0x4d1   : > { %v4522_v11 = vpop.f32.mrf.mxu1 }
 0x4d2   : > { %v3872_v15 = vadd.f32 %v3808_v51, %v3091_v20  ;;  %v4523_v29 = vadd.f32 %v8172_v36, %v4522_v11  ;;  %v9237_v11 = vld [vmem:[#allocation33_spill] sm:$0xff] }
 0x4d4   : > { %v3936_v6 = vmax.f32 %v3872_v15, 0.0 }
 0x4d5   : > { %v3718_v27 = vpop.f32.mrf.mxu3  ;;  %v4186_v22 = vpop.f32.mrf.mxu0 }
 0x4d6   : > { %v3719_v16 = vadd.f32 %v3718_v27, %v3441_v38  ;;  %v4187_v12 = vadd.f32 %v8009_v19, %v4186_v22  ;;  %v8342_v27 = vpop.f32.mrf.mxu2 }
 0x4d8   : > { %v3809_v61 = vadd.f32 %v8243_v30, %v3719_v16  ;;  %v4300_v53 = vmax.f32 %v4187_v12, 0.0  ;;  %v4521_v16 = vadd.f32 %v8172_v36, %v4520_v2  ;;  %v9234_v12 = vld [vmem:[#allocation36_spill] sm:$0xff] }
 0x4d9   : > { %v4525_v56 = vpop.f32.mrf.mxu1 }
 0x4da   : > { %v3873_v18 = vadd.f32 %v3809_v61, %v3093_v59  ;;  %v4348_v34 = vpack.c.bf16 %v4300_v53, %v4299_v0  ;;  %v4526_v22 = vadd.f32 %v8172_v36, %v4525_v56  ;;  %v9235_v0 = vld [vmem:[#allocation40_spill] sm:$0xff]  ;;  %v9236_v53 = vld [vmem:[#allocation91_spill] sm:$0xff]  ;;  %v4518_v56 = vadd.f32 %v8172_v36, %v4517_v5 }
 0x4dc   : > { %v3937_v63 = vmax.f32 %v3873_v18, 0.0  ;;  %5863 = vmatmul.msk.bf16.gmra.mxu1 %vm2864_vm9, %v4348_v34  ;;  %v4664_v59 = vmul.f32 %v4526_v22, %v9234_v12  ;;  %v9238_v22 = vld [vmem:[#allocation92_spill] sm:$0xff] }
 0x4dd   : > { %v3721_v46 = vpop.f32.mrf.mxu3  ;;  %v4189_v43 = vpop.f32.mrf.mxu0 }
 0x4de   : > { %v3976_v38 = vpack.c.bf16 %v3937_v63, %v3936_v6  ;;  %v3722_v39 = vadd.f32 %v3721_v46, %v3444_v37  ;;  %v4190_v63 = vadd.f32 %v8009_v19, %v4189_v43  ;;  %v3096_v37 = vadd.f32 %v8253_v33, %v9236_v53 }
 0x4df   : > { %v4663_v6 = vmul.f32 %v4523_v29, %v9237_v11  ;;  %v4516_v43 = vadd.f32 %v8172_v36, %v8314_v57  ;;  %v4513_v29 = vadd.f32 %v8172_v36, %v8301_v41  ;;  %v4511_v57 = vadd.f32 %v8172_v36, %v8295_v1  ;;  %v9242_v41 = vld [vmem:[#allocation23_spill] sm:$0xff] }
 0x4e0   : > { %5832 = vmatmul.msk.bf16.gmra.mxu0 %vm2864_vm9, %v3976_v38  ;;  %v3810_v15 = vadd.f32 %v8243_v30, %v3722_v39  ;;  %v3098_v39 = vadd.f32 %v8253_v33, %v9238_v22 }
 0x4e1   : > { %v4527_v51 = vpop.f32.mrf.mxu1 }
 0x4e2   : > { %v4528_v20 = vadd.f32 %v8172_v36, %v4527_v51  ;;  %v9239_v51 = vld [vmem:[#allocation29_spill] sm:$0xff]  ;;  %v3874_v12 = vadd.f32 %v3810_v15, %v3096_v37 }
 0x4e4   : > { %v4665_v61 = vmul.f32 %v4528_v20, %v9235_v0  ;;  %v4662_v20 = vmul.f32 %v4521_v16, %v9239_v51  ;;  %v4301_v0 = vmax.f32 %v4190_v63, 0.0  ;;  %v9241_v16 = vld [vmem:[#allocation25_spill] sm:$0xff]  ;;  %v3938_v63 = vmax.f32 %v3874_v12, 0.0 }
 0x4e5   : > { %v3723_v18 = vpop.f32.mrf.mxu3  ;;  %v4191_v34 = vpop.f32.mrf.mxu0  ;;  %v4660_v15 = vmul.f32 %v4516_v43, %v9241_v16 }
 0x4e6   : > { %v4721_v46 = vpack.c.bf16 %v4665_v61, %v4664_v59  ;;  %v3724_v38 = vadd.f32 %v3723_v18, %v3446_v21  ;;  %v4192_v2 = vadd.f32 %v8009_v19, %v4191_v34  ;;  %v3454_v59 = vpop.f32.mrf.mxu2  ;;  %v9240_v61 = vld [vmem:[#allocation27_spill] sm:$0xff]  ;;  %v4720_v22 = vpack.c.bf16 %v4663_v6, %v4662_v20 }
 0x4e7   : > { %v4661_v18 = vmul.f32 %v4518_v56, %v9240_v61  ;;  %v9243_v56 = vld [vmem:[#allocation21_spill] sm:$0xff] }
 0x4e8   : > { %v3811_v5 = vadd.f32 %v8243_v30, %v3724_v38  ;;  %v4302_v53 = vmax.f32 %v4192_v2, 0.0  ;;  %4880 = vmatpush.bf16.msra.mxu2 %v4721_v46  ;;  %v4659_v2 = vmul.f32 %v4513_v29, %v9242_v41 }
 0x4e9   : > { %v4530_v21 = vpop.f32.mrf.mxu1  ;;  %v4719_v62 = vpack.c.bf16 %v4661_v18, %v4660_v15  ;;  %v9245_v18 = vld [vmem:[#allocation48_spill] sm:$0xff]  ;;  %v9247_v15 = vld [vmem:[#allocation94_spill] sm:$0xff] }
 0x4ea   : > { %v3875_v34 = vadd.f32 %v3811_v5, %v3098_v39  ;;  %v4349_v11 = vpack.c.bf16 %v4302_v53, %v4301_v0  ;;  %v4658_v39 = vmul.f32 %v4511_v57, %v9243_v56  ;;  %v4531_v6 = vadd.f32 %v8172_v36, %v4530_v21  ;;  %v9244_v5 = vld [vmem:[#allocation43_spill] sm:$0xff]  ;;  %v8391_v57 = vld [vmem:[%s8873_s13] ss:$0 sm:$0xff] }
 0x4ec   : > { %v3939_v37 = vmax.f32 %v3875_v34, 0.0  ;;  %5864 = vmatmul.msk.bf16.gmra.mxu1 %vm2864_vm9, %v4349_v11  ;;  %4881 = vmatpush.bf16.msra.mxu2 %v4720_v22  ;;  %v4718_v12 = vpack.c.bf16 %v4659_v2, %v4658_v39  ;;  %v8378_v53 = vmul.f32 %v4531_v6, %v9244_v5  ;;  %v9246_v11 = vld [vmem:[#allocation93_spill] sm:$0xff] }
 0x4ed   : > { %v3726_v46 = vpop.f32.mrf.mxu3  ;;  %v4194_v38 = vpop.f32.mrf.mxu0 }
 0x4ee   : > { %v3977_v51 = vpack.c.bf16 %v3939_v37, %v3938_v63  ;;  %v3727_v20 = vadd.f32 %v3726_v46, %v8335_v50  ;;  %v3456_v0 = vpop.f32.mrf.mxu2  ;;  %v4195_v61 = vadd.f32 %v8009_v19, %v4194_v38  ;;  %v3103_v63 = vadd.f32 %v8253_v33, %v9247_v15 }
 0x4f0   : > { %5833 = vmatmul.msk.bf16.gmra.mxu0 %vm2864_vm9, %v3977_v51  ;;  %4882 = vmatpush.bf16.msra.mxu2 %v4719_v62  ;;  %v3812_v29 = vadd.f32 %v8243_v30, %v3727_v20  ;;  %v3101_v62 = vadd.f32 %v8253_v33, %v9246_v11  ;;  %v4303_v46 = vmax.f32 %v4195_v61, 0.0  ;;  %v9249_v20 = vpack.c.bf16 %v8248_v58, %v8238_v25 }
 0x4f1   : > { %v4532_v1 = vpop.f32.mrf.mxu1 }
 0x4f2   : > { %v4533_v43 = vadd.f32 %v8172_v36, %v4532_v1  ;;  %v3876_v37 = vadd.f32 %v3812_v29, %v3101_v62 }
 0x4f4   : > { %v8383_v34 = vmul.f32 %v4533_v43, %v9245_v18  ;;  %4883 = vmatpush.bf16.msra.mxu2 %v4718_v12  ;;  %v3940_v39 = vmax.f32 %v3876_v37, 0.0 }
 0x4f5   : > { %v3728_v50 = vpop.f32.mrf.mxu3  ;;  %v4196_v21 = vpop.f32.mrf.mxu0 }
 0x4f6   : > { %v3729_v22 = vadd.f32 %v3728_v50, %v8342_v27  ;;  %v4197_v16 = vadd.f32 %v8391_v57, %v4196_v21  ;;  %v4722_v19 = vpack.c.bf16 %v8383_v34, %v8378_v53  ;;  %v9248_v27 = vpack.c.bf16 %v8282_v60, %v8277_v40  ;;  %v3459_v12 = vpop.f32.mrf.mxu2  ;;  %v9251_v21 = vld [vmem:[#allocation52_spill] sm:$0xff] }
 0x4f7   : > { %v9250_v40 = vpack.c.bf16 %v8214_v8, %v8209_v4  ;;  %v9253_v8 = vld [vmem:[#allocation95_spill] sm:$0xff] }
 0x4f8   : > { %v3813_v38 = vadd.f32 %v8243_v30, %v3729_v22  ;;  %v4304_v41 = vmax.f32 %v4197_v16, 0.0  ;;  %4884 = vmatpush.bf16.msra.mxu2 %v9248_v27  ;;  %v3106_v22 = vadd.f32 %v8253_v33, %v9253_v8 }
 0x4f9   : > { %v4535_v2 = vpop.f32.mrf.mxu1 }
 0x4fa   : > { %v3877_v51 = vadd.f32 %v3813_v38, %v3103_v63  ;;  %v4350_v56 = vpack.c.bf16 %v4304_v41, %v4303_v46  ;;  %v4536_v29 = vadd.f32 %v8172_v36, %v4535_v2  ;;  %v9254_v63 = vld [vmem:[#allocation96_spill] sm:$0xff] }
 0x4fb   : > { %v3108_v37 = vadd.f32 %v8253_v33, %v9254_v63 }
 0x4fc   : > { %v3941_v6 = vmax.f32 %v3877_v51, 0.0  ;;  %5865 = vmatmul.msk.bf16.gmra.mxu1 %vm2864_vm9, %v4350_v56  ;;  %4885 = vmatpush.bf16.msra.mxu2 %v9249_v20  ;;  %v8413_v50 = vmul.f32 %v4536_v29, %v9153_v42 }
 0x4fd   : > { %v3731_v1 = vpop.f32.mrf.mxu3  ;;  %v4199_v43 = vpop.f32.mrf.mxu0 }
 0x4fe   : > { %v3978_v5 = vpack.c.bf16 %v3941_v6, %v3940_v39  ;;  %v3732_v61 = vadd.f32 %v3731_v1, %v3454_v59  ;;  %v4200_v58 = vadd.f32 %v8391_v57, %v4199_v43  ;;  %v9252_v59 = vpack.c.bf16 %v8187_v55, %v8182_v48  ;;  %v3461_v46 = vpop.f32.mrf.mxu2 }
 0x500   : > { %5834 = vmatmul.msk.bf16.gmra.mxu0 %vm2864_vm9, %v3978_v5  ;;  %4886 = vmatpush.bf16.msra.mxu2 %v9250_v40  ;;  %v3814_v25 = vadd.f32 %v8243_v30, %v3732_v61  ;;  %v4305_v41 = vmax.f32 %v4200_v58, 0.0 }
 0x501   : > { %v4537_v60 = vpop.f32.mrf.mxu1 }
 0x502   : > { %v4538_v18 = vadd.f32 %v8172_v36, %v4537_v60  ;;  %v3878_v38 = vadd.f32 %v3814_v25, %v3106_v22  ;;  %v9255_v25 = vld [vmem:[#allocation56_spill] sm:$0xff] }
 0x504   : > { %v8418_v11 = vmul.f32 %v4538_v18, %v9251_v21  ;;  %4887 = vmatpush.bf16.msra.mxu2 %v9252_v59  ;;  %v3942_v56 = vmax.f32 %v3878_v38, 0.0 }
 0x505   : > { %v3733_v62 = vpop.f32.mrf.mxu3  ;;  %v4201_v4 = vpop.f32.mrf.mxu0 }
 0x506   : > { %v3734_v16 = vadd.f32 %v3733_v62, %v3456_v0  ;;  %v4202_v42 = vadd.f32 %v8391_v57, %v4201_v4  ;;  %v4723_v15 = vpack.c.bf16 %v8418_v11, %v8413_v50  ;;  %v3464_v29 = vpop.f32.mrf.mxu2  ;;  %v9256_v62 = vld [vmem:[#allocation97_spill] sm:$0xff] }
 0x508   : > { %v3815_v48 = vadd.f32 %v8243_v30, %v3734_v16  ;;  %v4306_v55 = vmax.f32 %v4202_v42, 0.0 }
 0x509   : > { %v4540_v27 = vpop.f32.mrf.mxu1 }
 0x50a   : > { %v3879_v2 = vadd.f32 %v3815_v48, %v3108_v37  ;;  %v4351_v51 = vpack.c.bf16 %v4306_v55, %v4305_v41  ;;  %v4541_v1 = vadd.f32 %v8172_v36, %v4540_v27 }
 0x50c   : > { %v3943_v39 = vmax.f32 %v3879_v2, 0.0  ;;  %5866 = vmatmul.msk.bf16.gmra.mxu1 %vm2864_vm9, %v4351_v51  ;;  %v8436_v40 = vmul.f32 %v4541_v1, %v7242_v13  ;;  %v9257_v13 = vld [vmem:[#allocation98_spill] sm:$0xff] }
 0x50d   : > { %v3736_v0 = vpop.f32.mrf.mxu3  ;;  %v4204_v6 = vpop.f32.mrf.mxu0  ;;  %v3113_v16 = vadd.f32 %v8253_v33, %v9257_v13 }
 0x50e   : > { %v3979_v20 = vpack.c.bf16 %v3943_v39, %v3942_v56  ;;  %v3737_v43 = vadd.f32 %v3736_v0, %v3459_v12  ;;  %v4205_v18 = vadd.f32 %v8391_v57, %v4204_v6  ;;  %v3111_v12 = vadd.f32 %v8253_v33, %v9256_v62  ;;  %v3466_v27 = vpop.f32.mrf.mxu2 }
 0x510   : > { %5835 = vmatmul.msk.bf16.gmra.mxu0 %vm2864_vm9, %v3979_v20  ;;  %v3816_v60 = vadd.f32 %v8243_v30, %v3737_v43  ;;  %v4307_v63 = vmax.f32 %v4205_v18, 0.0 }
 0x511   : > { %v4542_v5 = vpop.f32.mrf.mxu1 }
 0x512   : > { %v4543_v61 = vadd.f32 %v8172_v36, %v4542_v5  ;;  %v3880_v42 = vadd.f32 %v3816_v60, %v3111_v12 }
 0x514   : > { %v8441_v58 = vmul.f32 %v4543_v61, %v9255_v25  ;;  %v3944_v2 = vmax.f32 %v3880_v42, 0.0 }
 0x515   : > { %v3738_v21 = vpop.f32.mrf.mxu3  ;;  %v4206_v59 = vpop.f32.mrf.mxu0 }
 0x516   : > { %v3739_v4 = vadd.f32 %v3738_v21, %v3461_v46  ;;  %v4207_v8 = vadd.f32 %v8391_v57, %v4206_v59  ;;  %v4724_v22 = vpack.c.bf16 %v8441_v58, %v8436_v40  ;;  %v9258_v21 = vld [vmem:[#allocation100_spill] sm:$0xff]  ;;  %v3469_v59 = vpop.f32.mrf.mxu2 }
 0x518   : > { %v3817_v37 = vadd.f32 %v8243_v30, %v3739_v4  ;;  %v4308_v38 = vmax.f32 %v4207_v8, 0.0  ;;  %v9259_v4 = vld [vmem:[#allocation102_spill] sm:$0xff] }
 0x519   : > { %v4545_v41 = vpop.f32.mrf.mxu1  ;;  %v3118_v8 = vadd.f32 %v8253_v33, %v9259_v4 }
 0x51a   : > { %v3881_v48 = vadd.f32 %v3817_v37, %v3113_v16  ;;  %v4352_v55 = vpack.c.bf16 %v4308_v38, %v4307_v63  ;;  %v4546_v0 = vadd.f32 %v8172_v36, %v4545_v41 }
 0x51c   : > { %v3945_v51 = vmax.f32 %v3881_v48, 0.0  ;;  %5867 = vmatmul.msk.bf16.gmra.mxu1 %vm2864_vm9, %v4352_v55  ;;  %v8456_v43 = vmul.f32 %v4546_v0, %v7279_v7 }
 0x51d   : > { %v3741_v46 = vpop.f32.mrf.mxu3  ;;  %v4209_v56 = vpop.f32.mrf.mxu0 }
 0x51e   : > { %v3980_v39 = vpack.c.bf16 %v3945_v51, %v3944_v2  ;;  %v3742_v6 = vadd.f32 %v3741_v46, %v3464_v29  ;;  %v4210_v61 = vadd.f32 %v8391_v57, %v4209_v56  ;;  %v3116_v29 = vadd.f32 %v8253_v33, %v9258_v21  ;;  %v3471_v51 = vpop.f32.mrf.mxu2 }
 0x520   : > { %5836 = vmatmul.msk.bf16.gmra.mxu0 %vm2864_vm9, %v3980_v39  ;;  %v3818_v5 = vadd.f32 %v8243_v30, %v3742_v6  ;;  %v4309_v16 = vmax.f32 %v4210_v61, 0.0 }
 0x521   : > { %v4547_v20 = vpop.f32.mrf.mxu1 }
 0x522   : > { %v4548_v1 = vadd.f32 %v8172_v36, %v4547_v20  ;;  %v3882_v13 = vadd.f32 %v3818_v5, %v3116_v29 }
 0x524   : > { %v8461_v60 = vmul.f32 %v4548_v1, %v7292_v10  ;;  %v3946_v41 = vmax.f32 %v3882_v13, 0.0  ;;  %v9260_v1 = vld [vmem:[#allocation104_spill] sm:$0xff] }
 0x525   : > { %v3743_v18 = vpop.f32.mrf.mxu3  ;;  %v4211_v25 = vpop.f32.mrf.mxu0  ;;  %v3121_v5 = vadd.f32 %v8253_v33, %v9260_v1 }
 0x526   : > { %v3744_v62 = vadd.f32 %v3743_v18, %v3466_v27  ;;  %v4212_v12 = vadd.f32 %v8391_v57, %v4211_v25  ;;  %v4725_v7 = vpack.c.bf16 %v8461_v60, %v8456_v43  ;;  %v9261_v25 = vld [vmem:[#allocation106_spill] sm:$0xff]  ;;  %v9272_v43 = vld [vmem:[#allocation81_spill] sm:$0xff] }
 0x527   : > { %v3123_v21 = vadd.f32 %v8253_v33, %v9261_v25 }
 0x528   : > { %v3819_v10 = vadd.f32 %v8243_v30, %v3744_v62  ;;  %v4310_v42 = vmax.f32 %v4212_v12, 0.0 }
 0x529   : > { %v8471_v63 = vpop.f32.mrf.mxu1 }
 0x52a   : > { %v3883_v37 = vadd.f32 %v3819_v10, %v3118_v8  ;;  %v4353_v38 = vpack.c.bf16 %v4310_v42, %v4309_v16  ;;  %v3474_v8 = vpop.f32.mrf.mxu2 }
 0x52c   : > { %v3947_v48 = vmax.f32 %v3883_v37, 0.0  ;;  %5868 = vmatmul.msk.bf16.gmra.mxu1 %vm2864_vm9, %v4353_v38 }
 0x52d   : > { %v3746_v55 = vpop.f32.mrf.mxu3  ;;  %v4214_v27 = vpop.f32.mrf.mxu0 }
 0x52e   : > { %v3981_v2 = vpack.c.bf16 %v3947_v48, %v3946_v41  ;;  %v3747_v46 = vadd.f32 %v3746_v55, %v3469_v59  ;;  %v4215_v0 = vadd.f32 %v8391_v57, %v4214_v27 }
 0x530   : > { %5837 = vmatmul.msk.bf16.gmra.mxu0 %vm2864_vm9, %v3981_v2  ;;  %v3820_v39 = vadd.f32 %v8243_v30, %v3747_v46  ;;  %v4311_v59 = vmax.f32 %v4215_v0, 0.0  ;;  %v9262_v0 = vld [vmem:[#allocation107_spill] sm:$0xff] }
 0x531   : > { %v8475_v56 = vpop.f32.mrf.mxu1 }
 0x532   : > { %v3884_v29 = vadd.f32 %v3820_v39, %v3121_v5  ;;  %v3476_v27 = vpop.f32.mrf.mxu2  ;;  %v9263_v5 = vld [vmem:[#allocation109_spill] sm:$0xff] }
 0x534   : > { %v3948_v10 = vmax.f32 %v3884_v29, 0.0 }
 0x535   : > { %v3748_v6 = vpop.f32.mrf.mxu3  ;;  %v4216_v20 = vpop.f32.mrf.mxu0 }
 0x536   : > { %v3749_v61 = vadd.f32 %v3748_v6, %v3471_v51  ;;  %v4217_v18 = vadd.f32 %v8391_v57, %v4216_v20  ;;  %v3126_v6 = vadd.f32 %v8253_v33, %v9262_v0 }
 0x538   : > { %v3821_v62 = vadd.f32 %v8243_v30, %v3749_v61  ;;  %v4312_v12 = vmax.f32 %v4217_v18, 0.0  ;;  %v3128_v61 = vadd.f32 %v8253_v33, %v9263_v5 }
 0x539   : > { %v4555_v4 = vpop.f32.mrf.mxu1 }
 0x53a   : > { %v3885_v13 = vadd.f32 %v3821_v62, %v3123_v21  ;;  %v4354_v16 = vpack.c.bf16 %v4312_v12, %v4311_v59 }
 0x53c   : > { %v3949_v42 = vmax.f32 %v3885_v13, 0.0  ;;  %5869 = vmatmul.msk.bf16.gmra.mxu1 %vm2864_vm9, %v4354_v16 }
 0x53d   : > { %v3751_v37 = vpop.f32.mrf.mxu3  ;;  %v4219_v38 = vpop.f32.mrf.mxu0 }
 0x53e   : > { %v3982_v41 = vpack.c.bf16 %v3949_v42, %v3948_v10  ;;  %v3752_v48 = vadd.f32 %v3751_v37, %v3474_v8  ;;  %v4220_v51 = vadd.f32 %v8391_v57, %v4219_v38 }
 0x540   : > { %5838 = vmatmul.msk.bf16.gmra.mxu0 %vm2864_vm9, %v3982_v41  ;;  %v3822_v2 = vadd.f32 %v8243_v30, %v3752_v48  ;;  %v4313_v25 = vmax.f32 %v4220_v51, 0.0 }
 0x541   : > { %v4557_v55 = vpop.f32.mrf.mxu1 }
 0x542   : > { %v3886_v18 = vadd.f32 %v3822_v2, %v3126_v6 }
 0x544   : > { %v3950_v8 = vmax.f32 %v3886_v18, 0.0  ;;  %v4558_v18 = vadd.f32 %v8172_v36, %v4557_v55 }
 0x545   : > { %v3753_v46 = vpop.f32.mrf.mxu3  ;;  %v4221_v39 = vpop.f32.mrf.mxu0 }
 0x546   : > { %v3754_v20 = vadd.f32 %v3753_v46, %v3476_v27  ;;  %v4222_v1 = vadd.f32 %v8391_v57, %v4221_v39 }
 0x548   : > { %v3823_v21 = vadd.f32 %v8243_v30, %v3754_v20  ;;  %v4314_v29 = vmax.f32 %v4222_v1, 0.0 }
 0x549   : > { %v4560_v59 = vpop.f32.mrf.mxu1 }
 0x54a   : > { %v3887_v62 = vadd.f32 %v3823_v21, %v3128_v61  ;;  %v4355_v12 = vpack.c.bf16 %v4314_v29, %v4313_v25  ;;  %v4561_v6 = vadd.f32 %v8172_v36, %v4560_v59  ;;  %v9264_v25 = vld [vmem:[#allocation72_spill] sm:$0xff] }
 0x54c   : > { %v3951_v13 = vmax.f32 %v3887_v62, 0.0  ;;  %5870 = vmatmul.msk.bf16.gmra.mxu1 %vm2864_vm9, %v4355_v12  ;;  %v4556_v12 = vadd.f32 %v8172_v36, %v4555_v4 }
 0x54d   : > { %v4224_v16 = vpop.f32.mrf.mxu0 }
 0x54e   : > { %v3983_v10 = vpack.c.bf16 %v3951_v13, %v3950_v8  ;;  %v4225_v37 = vadd.f32 %v8391_v57, %v4224_v16  ;;  %v9265_v8 = vld [vmem:[#allocation69_spill] sm:$0xff] }
 0x54f   : > { %v4678_v13 = vmul.f32 %v4561_v6, %v9265_v8  ;;  %v9270_v6 = vld [vmem:[#allocation76_spill] sm:$0xff] }
 0x550   : > { %5839 = vmatmul.msk.bf16.gmra.mxu0 %vm2864_vm9, %v3983_v10  ;;  %v4315_v41 = vmax.f32 %v4225_v37, 0.0  ;;  %v4553_v10 = vadd.f32 %v8172_v36, %v8475_v56 }
 0x551   : > { %v4562_v42 = vpop.f32.mrf.mxu1 }
 0x552   : > { %v4563_v39 = vadd.f32 %v8172_v36, %v4562_v42 }
 0x554   : > { %v4679_v21 = vmul.f32 %v4563_v39, %v9264_v25 }
 0x555   : > { %v4226_v33 = vpop.f32.mrf.mxu0 }
 0x556   : > { %v4227_v38 = vadd.f32 %v8391_v57, %v4226_v33  ;;  %v4728_v55 = vpack.c.bf16 %v4679_v21, %v4678_v13  ;;  %v4551_v33 = vadd.f32 %v8172_v36, %v8471_v63 }
 0x558   : > { %v4316_v30 = vmax.f32 %v4227_v38, 0.0  ;;  %v9267_v38 = vld [vmem:[#allocation65_spill] sm:$0xff] }
 0x559   : > { %v4565_v48 = vpop.f32.mrf.mxu1 }
 0x55a   : > { %v4356_v27 = vpack.c.bf16 %v4316_v30, %v4315_v41  ;;  %v4566_v51 = vadd.f32 %v8172_v36, %v4565_v48  ;;  %v4676_v41 = vmul.f32 %v4556_v12, %v9267_v38  ;;  %v9268_v30 = vld [vmem:[#allocation63_spill] sm:$0xff] }
 0x55b   : > { %v4675_v48 = vmul.f32 %v4553_v10, %v9268_v30 }
 0x55c   : > { %5871 = vmatmul.msk.bf16.gmra.mxu1 %vm2864_vm9, %v4356_v27  ;;  %v4680_v20 = vmul.f32 %v4566_v51, %v7432_v3 }
 0x55d   : > { %v4229_v2 = vpop.f32.mrf.mxu0 }
 0x55e   : > { %v4230_v1 = vadd.f32 %v8391_v57, %v4229_v2  ;;  %v9269_v2 = vld [vmem:[#allocation60_spill] sm:$0xff] }
 0x55f   : > { %v4674_v51 = vmul.f32 %v4551_v33, %v9269_v2  ;;  %v9274_v33 = vld [vmem:[#allocation35_spill] sm:$0xff] }
 0x560   : > { %v4317_v16 = vmax.f32 %v4230_v1, 0.0  ;;  %v9271_v1 = vld [vmem:[#allocation79_spill] sm:$0xff] }
 0x561   : > { %v4567_v46 = vpop.f32.mrf.mxu1 }
 0x562   : > { %v4568_v0 = vadd.f32 %v8172_v36, %v4567_v46 }
 0x564   : > { %v4681_v5 = vmul.f32 %v4568_v0, %v7444_v28  ;;  %v9266_v28 = vld [vmem:[#allocation67_spill] sm:$0xff]  ;;  %v4726_v0 = vpack.c.bf16 %v4675_v48, %v4674_v51 }
 0x565   : > { %v4231_v61 = vpop.f32.mrf.mxu0  ;;  %v4677_v42 = vmul.f32 %v4558_v18, %v9266_v28 }
 0x566   : > { %v4729_v29 = vpack.c.bf16 %v4681_v5, %v4680_v20  ;;  %v4232_v62 = vadd.f32 %v8391_v57, %v4231_v61 }
 0x567   : > { %v4727_v27 = vpack.c.bf16 %v4677_v42, %v4676_v41  ;;  %v8562_v42 = vld [vmem:[%s8875_s15] ss:$0 sm:$0xff] }
 0x568   : > { %v4318_v59 = vmax.f32 %v4232_v62, 0.0  ;;  %4909 = vmatpush.bf16.msra.mxu3 %v4729_v29 }
 0x569   : > { %v4570_v3 = vpop.f32.mrf.mxu1 }
 0x56a   : > { %v4357_v37 = vpack.c.bf16 %v4318_v59, %v4317_v16  ;;  %v4571_v56 = vadd.f32 %v8172_v36, %v4570_v3  ;;  %v9273_v3 = vld [vmem:[#allocation31_spill] sm:$0xff] }
 0x56c   : > { %5872 = vmatmul.msk.bf16.gmra.mxu1 %vm2864_vm9, %v4357_v37  ;;  %4910 = vmatpush.bf16.msra.mxu3 %v4728_v55  ;;  %v8524_v63 = vmul.f32 %v4571_v56, %v9270_v6 }
 0x56d   : > { %v4234_v4 = vpop.f32.mrf.mxu0 }
 0x56e   : > { %v4235_v20 = vadd.f32 %v8391_v57, %v4234_v4 }
 0x570   : > { %4911 = vmatpush.bf16.msra.mxu3 %v4727_v27  ;;  %v4319_v21 = vmax.f32 %v4235_v20, 0.0 }
 0x571   : > { %v4572_v46 = vpop.f32.mrf.mxu1 }
 0x572   : > { %v4573_v39 = vadd.f32 %v8172_v36, %v4572_v46 }
 0x574   : > { %v8528_v5 = vmul.f32 %v4573_v39, %v9271_v1  ;;  %4912 = vmatpush.bf16.msra.mxu3 %v4726_v0 }
 0x575   : > { %v4236_v61 = vpop.f32.mrf.mxu0 }
 0x576   : > { %v4237_v18 = vadd.f32 %v8391_v57, %v4236_v61  ;;  %v4730_v25 = vpack.c.bf16 %v8528_v5, %v8524_v63 }
 0x578   : > { %v4320_v29 = vmax.f32 %v4237_v18, 0.0  ;;  %4913 = vmatpush.bf16.msra.mxu3 %v4725_v7 }
 0x579   : > { %v4575_v62 = vpop.f32.mrf.mxu1 }
 0x57a   : > { %v4358_v12 = vpack.c.bf16 %v4320_v29, %v4319_v21  ;;  %v4576_v13 = vadd.f32 %v8172_v36, %v4575_v62 }
 0x57c   : > { %5873 = vmatmul.msk.bf16.gmra.mxu1 %vm2864_vm9, %v4358_v12  ;;  %4914 = vmatpush.bf16.msra.mxu3 %v4724_v22  ;;  %v8546_v60 = vmul.f32 %v4576_v13, %v9272_v43 }
 0x57d   : > { %v4239_v8 = vpop.f32.mrf.mxu0 }
 0x57e   : > { %v4240_v7 = vadd.f32 %v8391_v57, %v4239_v8 }
 0x580   : > { %4915 = vmatpush.bf16.msra.mxu3 %v4723_v15  ;;  %v4321_v11 = vmax.f32 %v4240_v7, 0.0 }
 0x581   : > { %v4577_v16 = vpop.f32.mrf.mxu1 }
 0x582   : > { %v4578_v59 = vadd.f32 %v8172_v36, %v4577_v16 }
 0x584   : > { %v8550_v10 = vmul.f32 %v4578_v59, %v9273_v3  ;;  %4916 = vmatpush.bf16.msra.mxu3 %v4722_v19 }
 0x585   : > { %v4241_v40 = vpop.f32.mrf.mxu0 }
 0x586   : > { %v4242_v58 = vadd.f32 %v8391_v57, %v4241_v40  ;;  %v4731_v50 = vpack.c.bf16 %v8550_v10, %v8546_v60 }
 0x588   : > { %v4322_v36 = vmax.f32 %v4242_v58, 0.0 }
 0x589   : > { %v4580_v15 = vpop.f32.mrf.mxu1 }
 0x58a   : > { %v4359_v22 = vpack.c.bf16 %v4322_v36, %v4321_v11  ;;  %v4581_v53 = vadd.f32 %v8562_v42, %v4580_v15 }
 0x58c   : > { %5874 = vmatmul.msk.bf16.gmra.mxu1 %vm2864_vm9, %v4359_v22  ;;  %v8567_v37 = vmul.f32 %v4581_v53, %v9187_v9 }
 0x58d   : > { %v4244_v28 = vpop.f32.mrf.mxu0 }
 0x58e   : > { %v4245_v55 = vadd.f32 %v8391_v57, %v4244_v28 }
 0x590   : > { %v4323_v48 = vmax.f32 %v4245_v55, 0.0 }
 0x591   : > { %v4582_v34 = vpop.f32.mrf.mxu1 }
 0x592   : > { %v4583_v19 = vadd.f32 %v8562_v42, %v4582_v34 }
 0x594   : > { %v8571_v38 = vmul.f32 %v4583_v19, %v9274_v33 }
 0x595   : > { %v4246_v41 = vpop.f32.mrf.mxu0 }
 0x596   : > { %v4247_v4 = vadd.f32 %v8391_v57, %v4246_v41  ;;  %v4732_v30 = vpack.c.bf16 %v8571_v38, %v8567_v37 }
 0x598   : > { %v4324_v27 = vmax.f32 %v4247_v4, 0.0 }
 0x599   : > { %v4585_v2 = vpop.f32.mrf.mxu1 }
 0x59a   : > { %v4360_v51 = vpack.c.bf16 %v4324_v27, %v4323_v48  ;;  %v4586_v9 = vadd.f32 %v8562_v42, %v4585_v2 }
 0x59c   : > { %5875 = vmatmul.msk.bf16.gmra.mxu1 %vm2864_vm9, %v4360_v51  ;;  %v8580_v0 = vmul.f32 %v4586_v9, %v7580_v17 }
 0x59d   : > { %v4249_v56 = vpop.f32.mrf.mxu0 }
 0x59e   : > { %v4250_v6 = vadd.f32 %v8391_v57, %v4249_v56 }
 0x5a0   : > { %v4325_v21 = vmax.f32 %v4250_v6, 0.0 }
 0x5a1   : > { %v4587_v46 = vpop.f32.mrf.mxu1 }
 0x5a2   : > { %v4588_v39 = vadd.f32 %v8562_v42, %v4587_v46 }
 0x5a4   : > { %v8584_v20 = vmul.f32 %v4588_v39, %v7587_v52 }
 0x5a5   : > { %v4251_v1 = vpop.f32.mrf.mxu0 }
 0x5a6   : > { %v4252_v61 = vadd.f32 %v8391_v57, %v4251_v1  ;;  %v4733_v18 = vpack.c.bf16 %v8584_v20, %v8580_v0 }
 0x5a8   : > { %v4326_v29 = vmax.f32 %v4252_v61, 0.0 }
 0x5a9   : > { %v4590_v62 = vpop.f32.mrf.mxu1 }
 0x5aa   : > { %v4361_v12 = vpack.c.bf16 %v4326_v29, %v4325_v21 }
 0x5ac   : > { %5876 = vmatmul.msk.bf16.gmra.mxu1 %vm2864_vm9, %v4361_v12 }
 0x5ad   : > { %v4254_v8 = vpop.f32.mrf.mxu0 }
 0x5ae   : > { %v4255_v13 = vadd.f32 %v8391_v57, %v4254_v8 }
 0x5b0   : > { %v4327_v59 = vmax.f32 %v4255_v13, 0.0 }
 0x5b1   : > { %v4592_v17 = vpop.f32.mrf.mxu1 }
 0x5b5   : > { %v4256_v16 = vpop.f32.mrf.mxu0 }
 0x5b6   : > { %v4257_v52 = vadd.f32 %v8391_v57, %v4256_v16  ;;  %v4593_v16 = vadd.f32 %v8562_v42, %v4592_v17 }
 0x5b8   : > { %v4328_v43 = vmax.f32 %v4257_v52, 0.0 }
 0x5b9   : > { %v4595_v7 = vpop.f32.mrf.mxu1 }
 0x5ba   : > { %v4362_v3 = vpack.c.bf16 %v4328_v43, %v4327_v59  ;;  %v4596_v12 = vadd.f32 %v8562_v42, %v4595_v7  ;;  %v4691_v43 = vmul.f32 %v4593_v16, %v7687_v44 }
 0x5bc   : > { %5877 = vmatmul.msk.bf16.gmra.mxu1 %vm2864_vm9, %v4362_v3 }
 0x5bd   : > { %v4259_v40 = vpop.f32.mrf.mxu0 }
 0x5be   : > { %v4260_v11 = vadd.f32 %v8391_v57, %v4259_v40 }
 0x5c0   : > { %v4329_v22 = vmax.f32 %v4260_v11, 0.0 }
 0x5c1   : > { %v4597_v58 = vpop.f32.mrf.mxu1 }
 0x5c5   : > { %v4261_v36 = vpop.f32.mrf.mxu0 }
 0x5c6   : > { %v4262_v15 = vadd.f32 %v8391_v57, %v4261_v36  ;;  %v9277_v36 = vld [vmem:[#allocation50_spill] sm:$0xff] }
 0x5c8   : > { %v4330_v28 = vmax.f32 %v4262_v15, 0.0 }
 0x5c9   : > { %v4600_v53 = vpop.f32.mrf.mxu1 }
 0x5ca   : > { %v4363_v34 = vpack.c.bf16 %v4330_v28, %v4329_v22  ;;  %v4601_v6 = vadd.f32 %v8562_v42, %v4600_v53  ;;  %v9278_v22 = vld [vmem:[#allocation16_spill] sm:$0xff] }
 0x5cc   : > { %5878 = vmatmul.msk.bf16.gmra.mxu1 %vm2864_vm9, %v4363_v34  ;;  %v4694_v8 = vmul.f32 %v4601_v6, %v9197_v32 }
 0x5cd   : > { %v4264_v19 = vpop.f32.mrf.mxu0 }
 0x5ce   : > { %v4265_v33 = vadd.f32 %v8391_v57, %v4264_v19 }
 0x5d0   : > { %v4331_v48 = vmax.f32 %v4265_v33, 0.0 }
 0x5d1   : > { %v4602_v55 = vpop.f32.mrf.mxu1 }
 0x5d2   : > { %v4603_v46 = vadd.f32 %v8562_v42, %v4602_v55 }
 0x5d4   : > { %v4695_v21 = vmul.f32 %v4603_v46, %v9198_v35  ;;  %v6081_v46 = vmov 1.0|1.0  }
 0x5d5   : > { %v4266_v41 = vpop.f32.mrf.mxu0 }
 0x5d6   : > { %v4267_v4 = vadd.f32 %v8391_v57, %v4266_v41  ;;  %v4598_v57 = vadd.f32 %v8562_v42, %v4597_v58  ;;  %v4736_v59 = vpack.c.bf16 %v4695_v21, %v4694_v8 }
 0x5d8   : > { %v4332_v27 = vmax.f32 %v4267_v4, 0.0  ;;  %v4693_v52 = vmul.f32 %v4598_v57, %v7709_v23  ;;  %v9279_v4 = vlaneseq }
 0x5d9   : > { %v4605_v2 = vpop.f32.mrf.mxu1 }
 0x5da   : > { %v4364_v51 = vpack.c.bf16 %v4332_v27, %v4331_v48  ;;  %v4606_v56 = vadd.f32 %v8562_v42, %v4605_v2  ;;  %v8668_v48 = vshrl.u32 %v9279_v4, 7  ;;  %v8675_v27 = vld [vmem:[%s699_s20] sm:$0xf]  ;;  %v4873_v4 = vld [vmem:[#allocation2 + $0x8] sm:$0xff]  ;;  %s9297_s20 = sld [smem:[#allocation122_spill]] (!%p5944_p6) }
 0x5db   : > { %v8697_v6 = vperm.slane %v8675_v27, 2 }
 0x5dc   : > { %5879 = vmatmul.msk.bf16.gmra.mxu1 %vm2864_vm9, %v4364_v51  ;;  %v4696_v1 = vmul.f32 %v4606_v56, %v9201_v24  ;;  %v4591_v24 = vadd.f32 %v8562_v42, %v4590_v62  ;;  %v8678_v51 = vadd.s32 8, %v8668_v48  ;;  %v8681_v56 = vperm.slane %v8675_v27, 0 }
 0x5dd   : > { %vm4762_vm3 = vcmp.eq.s32.totalorder %v8668_v48, %v8697_v6  ;;  %v8706_v57 = vadd.s32 16, %v8668_v48  ;;  %v8709_v21 = vadd.s32 24, %v8668_v48 }
 0x5de   : > { %v4690_v3 = vmul.f32 %v4591_v24, %v7675_v49  ;;  %vm4760_vm4 = vcmp.eq.s32.totalorder %v8668_v48, %v8681_v56  ;;  %vm4764_vm13 = vcmp.eq.s32.totalorder %v8678_v51, %v8681_v56  ;;  %vm4766_vm5 = vcmp.eq.s32.totalorder %v8678_v51, %v8697_v6 }
 0x5df   : > { %vm5912_vm0 = vmpackc.low %vm4764_vm13, %vm4760_vm4  ;;  %vm4768_vm1 = vcmp.eq.s32.totalorder %v8706_v57, %v8681_v56  ;;  %vm4772_vm7 = vcmp.eq.s32.totalorder %v8709_v21, %v8681_v56  ;;  %vm4770_vm4 = vcmp.eq.s32.totalorder %v8706_v57, %v8697_v6  ;;  %vm4774_vm13 = vcmp.eq.s32.totalorder %v8709_v21, %v8697_v6 }
 0x5e0   : > { %v4734_v17 = vpack.c.bf16 %v4691_v43, %v4690_v3  ;;  %5913 = vmatmul.msk.bf16.vlgmr.msra.gmra.mxu2 %vm5912_vm0, %v6081_v46  ;;  %vm5928_vm6 = vmpackc.low %vm4766_vm5, %vm4762_vm3 }
 0x5e1   : > { %v4607_v9 = vpop.f32.mrf.mxu1  ;;  %vm5914_vm10 = vmpackc.low %vm4772_vm7, %vm4768_vm1 }
 0x5e2   : > { %v4608_v39 = vadd.f32 %v8562_v42, %v4607_v9  ;;  %v8684_v9 = vperm.slane %v8675_v27, 1 }
 0x5e4   : > { %v4697_v61 = vmul.f32 %v4608_v39, %v9202_v54  ;;  %v4692_v54 = vmul.f32 %v4596_v12, %v7694_v26  ;;  %vm4761_vm14 = vcmp.eq.s32.totalorder %v8668_v48, %v8684_v9  ;;  %vm4765_vm15 = vcmp.eq.s32.totalorder %v8678_v51, %v8684_v9 }
 0x5e5   : > { %vm5920_vm2 = vmpackc.low %vm4765_vm15, %vm4761_vm14  ;;  %vm4769_vm8 = vcmp.eq.s32.totalorder %v8706_v57, %v8684_v9  ;;  %vm4773_vm11 = vcmp.eq.s32.totalorder %v8709_v21, %v8684_v9 }
 0x5e6   : > { %v4737_v29 = vpack.c.bf16 %v4697_v61, %v4696_v1  ;;  %v4735_v35 = vpack.c.bf16 %v4693_v52, %v4692_v54  ;;  %5921 = vmatmul.msk.bf16.vlgmr.msra.gmra.mxu3 %vm5920_vm2, %v6081_v46  ;;  %v9282_v52 = vld [vmem:[#allocation32_spill] sm:$0xff]  ;;  %vm5922_vm12 = vmpackc.low %vm4773_vm11, %vm4769_vm8 }
 0x5e7   : > { %v9283_v54 = vld [vmem:[#allocation28_spill] sm:$0xff]  ;;  %vm5930_vm14 = vmpackc.low %vm4774_vm13, %vm4770_vm4 }
 0x5e8   : > { %4938 = vmatpush.bf16.msra.mxu0 %v4737_v29 }
 0x5e9   : > { %v4610_v13 = vpop.f32.mrf.mxu1 }
 0x5ea   : > { %v4611_v7 = vadd.f32 %v8562_v42, %v4610_v13  ;;  %v9281_v13 = vld [vmem:[#allocation30_spill] sm:$0xff] }
 0x5ec   : > { %4939 = vmatpush.bf16.msra.mxu0 %v4736_v59  ;;  %v8618_v23 = vmul.f32 %v4611_v7, %v9205_v14  ;;  %v9284_v7 = vld [vmem:[#allocation26_spill] sm:$0xff] }
 0x5f0   : > { %4940 = vmatpush.bf16.msra.mxu0 %v4735_v35  ;;  %5915 = vmatmul.msk.bf16.gmra.mxu2 %vm5914_vm10, %v6081_v46 }
 0x5f1   : > { %v4612_v32 = vpop.f32.mrf.mxu1 }
 0x5f2   : > { %v4613_v40 = vadd.f32 %v8562_v42, %v4612_v32 }
 0x5f4   : > { %v8621_v62 = vmul.f32 %v4613_v40, %v9206_v47  ;;  %4941 = vmatpush.bf16.msra.mxu0 %v4734_v17  ;;  %v9285_v17 = vld [vmem:[#allocation24_spill] sm:$0xff] }
 0x5f6   : > { %v4738_v26 = vpack.c.bf16 %v8621_v62, %v8618_v23  ;;  %5923 = vmatmul.msk.bf16.gmra.mxu3 %vm5922_vm12, %v6081_v46 }
 0x5f8   : > { %4942 = vmatpush.bf16.msra.mxu0 %v4733_v18 }
 0x5f9   : > { %v4615_v49 = vpop.f32.mrf.mxu1 }
 0x5fa   : > { %v4616_v44 = vadd.f32 %v8562_v42, %v4615_v49 }
 0x5fc   : > { %4943 = vmatpush.bf16.msra.mxu0 %v4732_v30  ;;  %v8637_v58 = vmul.f32 %v4616_v44, %v9209_v31  ;;  %v9275_v30 = vld [vmem:[#allocation12_spill] sm:$0xff]  ;;  %v9276_v31 = vld [vmem:[#allocation14_spill] sm:$0xff] }
 0x600   : > { %4944 = vmatpush.bf16.msra.mxu0 %v4731_v50 }
 0x601   : > { %v4617_v14 = vpop.f32.mrf.mxu1 }
 0x602   : > { %v4618_v47 = vadd.f32 %v8562_v42, %v4617_v14 }
 0x604   : > { %v8640_v0 = vmul.f32 %v4618_v47, %v7824_v45  ;;  %4945 = vmatpush.bf16.msra.mxu0 %v4730_v25  ;;  %v9286_v47 = vld [vmem:[#allocation22_spill] sm:$0xff] }
 0x606   : > { %v4739_v37 = vpack.c.bf16 %v8640_v0, %v8637_v58 }
 0x607   : > { %5929 = vmatmul.msk.bf16.vlgmr.msra.gmra.mxu0 %vm5928_vm6, %v6081_v46 }
 0x609   : > { %v4620_v38 = vpop.f32.mrf.mxu1 }
 0x60a   : > { %v4621_v60 = vadd.f32 %v8562_v42, %v4620_v38 }
 0x60c   : > { %v8650_v20 = vmul.f32 %v4621_v60, %v9275_v30  ;;  %v9287_v60 = vld [vmem:[#allocation20_spill] sm:$0xff]  ;;  %v9288_v30 = vld [vmem:[#allocation18_spill] sm:$0xff] }
 0x611   : > { %v4622_v10 = vpop.f32.mrf.mxu1 }
 0x612   : > { %v4623_v50 = vadd.f32 %v8562_v42, %v4622_v10 }
 0x614   : > { %v8653_v45 = vmul.f32 %v4623_v50, %v9276_v31 }
 0x616   : > { %v4740_v63 = vpack.c.bf16 %v8653_v45, %v8650_v20 }
 0x617   : > { %5931 = vmatmul.msk.bf16.gmra.mxu0 %vm5930_vm14, %v6081_v46 }
 0x619   : > { %v4625_v5 = vpop.f32.mrf.mxu1 }
 0x61a   : > { %v4626_v25 = vadd.f32 %v8562_v42, %v4625_v5  ;;  %v4751_v5 = vadd.s32 32, %v8668_v48 }
 0x61c   : > { %v8660_v15 = vmul.f32 %v4626_v25, %v9277_v36  ;;  %v4752_v25 = vadd.s32 40, %v8668_v48  ;;  %vm4776_vm15 = vcmp.eq.s32.totalorder %v4751_v5, %v8681_v56  ;;  %vm4777_vm2 = vcmp.eq.s32.totalorder %v4751_v5, %v8684_v9 }
 0x61d   : > { %vm4778_vm1 = vcmp.eq.s32.totalorder %v4751_v5, %v8697_v6  ;;  %v4754_v36 = vadd.s32 56, %v8668_v48 }
 0x61e   : > { %vm4780_vm0 = vcmp.eq.s32.totalorder %v4752_v25, %v8681_v56  ;;  %vm4781_vm3 = vcmp.eq.s32.totalorder %v4752_v25, %v8684_v9  ;;  %vm4782_vm7 = vcmp.eq.s32.totalorder %v4752_v25, %v8697_v6 }
 0x61f   : > { %vm5916_vm5 = vmpackc.low %vm4780_vm0, %vm4776_vm15  ;;  %vm4788_vm13 = vcmp.eq.s32.totalorder %v4754_v36, %v8681_v56  ;;  %vm4789_vm15 = vcmp.eq.s32.totalorder %v4754_v36, %v8684_v9 }
 0x620   : > { %5917 = vmatmul.msk.bf16.gmra.mxu2 %vm5916_vm5, %v6081_v46  ;;  %vm5924_vm6 = vmpackc.low %vm4781_vm3, %vm4777_vm2  ;;  %vm4790_vm5 = vcmp.eq.s32.totalorder %v4754_v36, %v8697_v6 }
 0x621   : > { %v4627_v18 = vpop.f32.mrf.mxu1  ;;  %5925 = vmatmul.msk.bf16.gmra.mxu3 %vm5924_vm6, %v6081_v46  ;;  %vm5932_vm8 = vmpackc.low %vm4782_vm7, %vm4778_vm1 }
 0x622   : > { %v4628_v11 = vadd.f32 %v8562_v42, %v4627_v18 }
 0x624   : > { %v8663_v28 = vmul.f32 %v4628_v11, %v9278_v22  ;;  %v4753_v11 = vadd.s32 48, %v8668_v48  ;;  %v4872_v22 = vld [vmem:[#allocation2] sm:$0xff] }
 0x626   : > { %v4741_v53 = vpack.c.bf16 %v8663_v28, %v8660_v15  ;;  %vm4784_vm4 = vcmp.eq.s32.totalorder %v4753_v11, %v8681_v56  ;;  %vm4785_vm14 = vcmp.eq.s32.totalorder %v4753_v11, %v8684_v9  ;;  %vm4786_vm3 = vcmp.eq.s32.totalorder %v4753_v11, %v8697_v6 }
 0x627   : > { %5933 = vmatmul.msk.bf16.gmra.mxu0 %vm5932_vm8, %v6081_v46  ;;  %vm5918_vm0 = vmpackc.low %vm4788_vm13, %vm4784_vm4 }
 0x628   : > { %vm5926_vm2 = vmpackc.low %vm4789_vm15, %vm4785_vm14 }
 0x629   : > { %v4630_v34 = vpop.f32.mrf.mxu1  ;;  %vm5934_vm6 = vmpackc.low %vm4790_vm5, %vm4786_vm3 }
 0x62a   : > { %v4631_v14 = vadd.f32 %v8562_v42, %v4630_v34 }
 0x62c   : > { %v4706_v31 = vmul.f32 %v4631_v14, %v9288_v30 }
 0x630   : > { %5919 = vmatmul.msk.bf16.gmra.mxu2 %vm5918_vm0, %v6081_v46 }
 0x631   : > { %v4632_v19 = vpop.f32.mrf.mxu1  ;;  %5927 = vmatmul.msk.bf16.gmra.mxu3 %vm5926_vm2, %v6081_v46 }
 0x632   : > { %v4633_v40 = vadd.f32 %v8562_v42, %v4632_v19 }
 0x634   : > { %v4707_v10 = vmul.f32 %v4633_v40, %v9287_v60 }
 0x636   : > { %v4742_v18 = vpack.c.bf16 %v4707_v10, %v4706_v31 }
 0x637   : > { %5935 = vmatmul.msk.bf16.gmra.mxu0 %vm5934_vm6, %v6081_v46 }
 0x639   : > { %v4635_v55 = vpop.f32.mrf.mxu1 }
 0x63a   : > { %v4636_v3 = vadd.f32 %v8562_v42, %v4635_v55 }
 0x63c   : > { %v4708_v38 = vmul.f32 %v4636_v3, %v9286_v47  ;;  %v4876_v3 = vld [vmem:[#allocation2 + $0x20] sm:$0xff] }
 0x641   : > { %v4637_v33 = vpop.f32.mrf.mxu1 }
 0x642   : > { %v4638_v24 = vadd.f32 %v8562_v42, %v4637_v33 }
 0x644   : > { %v4709_v49 = vmul.f32 %v4638_v24, %v9285_v17 }
 0x646   : > { %v4743_v50 = vpack.c.bf16 %v4709_v49, %v4708_v38  ;;  %v4877_v38 = vld [vmem:[#allocation2 + $0x28] sm:$0xff] }
 0x649   : > { %v4640_v41 = vpop.f32.mrf.mxu1 }
 0x64a   : > { %v4641_v8 = vadd.f32 %v8562_v42, %v4640_v41 }
 0x64c   : > { %v4710_v32 = vmul.f32 %v4641_v8, %v9284_v7 }
 0x651   : > { %v4642_v2 = vpop.f32.mrf.mxu1 }
 0x652   : > { %v4643_v29 = vadd.f32 %v8562_v42, %v4642_v2 }
 0x654   : > { %v4711_v43 = vmul.f32 %v4643_v29, %v9283_v54 }
 0x656   : > { %v4744_v44 = vpack.c.bf16 %v4711_v43, %v4710_v32 }
 0x659   : > { %v4645_v39 = vpop.f32.mrf.mxu1 }
 0x65a   : > { %v4646_v1 = vadd.f32 %v8562_v42, %v4645_v39  ;;  %v4874_v39 = vld [vmem:[#allocation2 + $0x10] sm:$0xff] }
 0x65c   : > { %v4712_v16 = vmul.f32 %v4646_v1, %v9281_v13  ;;  %v4875_v13 = vld [vmem:[#allocation2 + $0x18] sm:$0xff] }
 0x661   : > { %v4647_v61 = vpop.f32.mrf.mxu1 }
 0x662   : > { %v4648_v12 = vadd.f32 %v8562_v42, %v4647_v61  ;;  %v4759_v42 = vperm.slane %v8675_v27, 3 }
 0x663   : > { %v4889_v23 = vpop.f32.mrf.mxu2 }
 0x664   : > { %v4713_v59 = vmul.f32 %v4648_v12, %v9282_v52  ;;  %vm4763_vm10 = vcmp.eq.s32.totalorder %v8668_v48, %v4759_v42  ;;  %vm4767_vm11 = vcmp.eq.s32.totalorder %v8678_v51, %v4759_v42  ;;  %vm4771_vm1 = vcmp.eq.s32.totalorder %v8706_v57, %v4759_v42 }
 0x665   : > { %vm5936_vm12 = vmpackc.low %vm4767_vm11, %vm4763_vm10  ;;  %vm4775_vm7 = vcmp.eq.s32.totalorder %v8709_v21, %v4759_v42  ;;  %vm4779_vm10 = vcmp.eq.s32.totalorder %v4751_v5, %v4759_v42  ;;  %vm4783_vm11 = vcmp.eq.s32.totalorder %v4752_v25, %v4759_v42  ;;  %vm4791_vm13 = vcmp.eq.s32.totalorder %v4754_v36, %v4759_v42 }
 0x666   : > { %v4745_v35 = vpack.c.bf16 %v4713_v59, %v4712_v16  ;;  %vm5938_vm8 = vmpackc.low %vm4775_vm7, %vm4771_vm1 }
 0x667   : > { %vm5940_vm4 = vmpackc.low %vm4783_vm11, %vm4779_vm10 }
 0x668   : > { %4967 = vmatpush.bf16.msra.mxu1 %v4745_v35 }
 0x669   : > { %v4918_v62 = vpop.f32.mrf.mxu3 }
 0x66a   : > { %v4919_v20 = vadd.f32 %v4918_v62, %v4889_v23 }
 0x66b   : > { %v4891_v58 = vpop.f32.mrf.mxu2 }
 0x66c   : > { %4968 = vmatpush.bf16.msra.mxu1 %v4744_v44 }
 0x670   : > { %4969 = vmatpush.bf16.msra.mxu1 %v4743_v50 }
 0x671   : > { %v4920_v0 = vpop.f32.mrf.mxu3 }
 0x672   : > { %v4921_v55 = vadd.f32 %v4920_v0, %v4891_v58  ;;  %v4879_v0 = vld [vmem:[#allocation2 + $0x38] sm:$0xff] }
 0x674   : > { %4970 = vmatpush.bf16.msra.mxu1 %v4742_v18  ;;  %v4878_v18 = vld [vmem:[#allocation2 + $0x30] sm:$0xff] }
 0x678   : > { %4971 = vmatpush.bf16.msra.mxu1 %v4741_v53 }
 0x679   : > { %v4923_v15 = vpop.f32.mrf.mxu3 }
 0x67c   : > { %4972 = vmatpush.bf16.msra.mxu1 %v4740_v63  ;;  %v4894_v63 = vpop.f32.mrf.mxu2 }
 0x67d   : > { %v4924_v51 = vadd.f32 %v4923_v15, %v4894_v63 }
 0x680   : > { %4973 = vmatpush.bf16.msra.mxu1 %v4739_v37 }
 0x681   : > { %v4925_v27 = vpop.f32.mrf.mxu3 }
 0x684   : > { %4974 = vmatpush.bf16.msra.mxu1 %v4738_v26  ;;  %v4947_v26 = vpop.f32.mrf.mxu0  ;;  %v4896_v41 = vpop.f32.mrf.mxu2 }
 0x685   : > { %v4948_v45 = vadd.f32 %v4947_v26, %v4919_v20  ;;  %v4926_v29 = vadd.f32 %v4925_v27, %v4896_v41 }
 0x687   : > { %5937 = vmatmul.msk.bf16.vlgmr.msra.gmra.mxu1 %vm5936_vm12, %v6081_v46  ;;  %vm4787_vm12 = vcmp.eq.s32.totalorder %v4753_v11, %v4759_v42 }
 0x688   : > { %vm5942_vm14 = vmpackc.low %vm4791_vm13, %vm4787_vm12 }
 0x68c   : > { %v4949_v37 = vpop.f32.mrf.mxu0 }
 0x68d   : > { %v4950_v33 = vadd.f32 %v4949_v37, %v4921_v55 }
 0x694   : > { %v4952_v34 = vpop.f32.mrf.mxu0 }
 0x697   : > { %5939 = vmatmul.msk.bf16.gmra.mxu1 %vm5938_vm8, %v6081_v46 }
 0x69c   : > { %v4954_v9 = vpop.f32.mrf.mxu0 }
 0x69d   : > { %v4955_v8 = vadd.f32 %v4954_v9, %v4926_v29 }
 0x6a3   : > { %v4899_v61 = vpop.f32.mrf.mxu2 }
 0x6a4   : > { %v4928_v57 = vpop.f32.mrf.mxu3  ;;  %v4957_v12 = vpop.f32.mrf.mxu0 }
 0x6a5   : > { %v4929_v59 = vadd.f32 %v4928_v57, %v4899_v61 }
 0x6a7   : > { %5941 = vmatmul.msk.bf16.gmra.mxu1 %vm5940_vm4, %v6081_v46  ;;  %v4958_v35 = vadd.f32 %v4957_v12, %v4929_v59 }
 0x6ab   : > { %v4901_v54 = vpop.f32.mrf.mxu2 }
 0x6ac   : > { %v4930_v43 = vpop.f32.mrf.mxu3  ;;  %v4959_v32 = vpop.f32.mrf.mxu0 }
 0x6ad   : > { %v4931_v49 = vadd.f32 %v4930_v43, %v4901_v54 }
 0x6af   : > { %v4960_v47 = vadd.f32 %v4959_v32, %v4931_v49 }
 0x6b3   : > { %v4904_v44 = vpop.f32.mrf.mxu2 }
 0x6b4   : > { %v4933_v14 = vpop.f32.mrf.mxu3  ;;  %v4962_v30 = vpop.f32.mrf.mxu0 }
 0x6b5   : > { %v4934_v50 = vadd.f32 %v4933_v14, %v4904_v44 }
 0x6b7   : > { %5943 = vmatmul.msk.bf16.gmra.mxu1 %vm5942_vm14, %v6081_v46  ;;  %v4953_v46 = vadd.f32 %v4952_v34, %v4924_v51  ;;  %v4963_v5 = vadd.f32 %v4962_v30, %v4934_v50 }
 0x6bb   : > { %v4906_v25 = vpop.f32.mrf.mxu2 }
 0x6bc   : > { %v4935_v11 = vpop.f32.mrf.mxu3  ;;  %v4964_v26 = vpop.f32.mrf.mxu0 }
 0x6bd   : > { %v4936_v62 = vadd.f32 %v4935_v11, %v4906_v25 }
 0x6bf   : > { %v4965_v58 = vadd.f32 %v4964_v26, %v4936_v62 }
 0x704   : > { %v4976_v28 = vpop.f32.mrf.mxu1 }
 0x705   : > { %v4977_v53 = vadd.f32 %v4976_v28, %v4948_v45 }
 0x707   : > { %v4996_v19 = vadd.f32 %v4977_v53, %v4872_v22 }
 0x709   : > { %5004 = vst.msk [vmem:[#allocation2] sm:$0xff] %vm2864_vm9, %v4996_v19 }
 0x70c   : > { %v4978_v48 = vpop.f32.mrf.mxu1 }
 0x70d   : > { %v4979_v2 = vadd.f32 %v4978_v48, %v4950_v33 }
 0x70f   : > { %v4997_v56 = vadd.f32 %v4979_v2, %v4873_v4 }
 0x711   : > { %5005 = vst.msk [vmem:[#allocation2 + $0x8] sm:$0xff] %vm2864_vm9, %v4997_v56 }
 0x714   : > { %v4981_v6 = vpop.f32.mrf.mxu1 }
 0x715   : > { %v4982_v1 = vadd.f32 %v4981_v6, %v4953_v46 }
 0x717   : > { %v4998_v21 = vadd.f32 %v4982_v1, %v4874_v39 }
 0x719   : > { %5006 = vst.msk [vmem:[#allocation2 + $0x10] sm:$0xff] %vm2864_vm9, %v4998_v21 }
 0x71c   : > { %v4983_v16 = vpop.f32.mrf.mxu1 }
 0x71d   : > { %v4984_v52 = vadd.f32 %v4983_v16, %v4955_v8 }
 0x71f   : > { %v4999_v24 = vadd.f32 %v4984_v52, %v4875_v13 }
 0x721   : > { %5007 = vst.msk [vmem:[#allocation2 + $0x18] sm:$0xff] %vm2864_vm9, %v4999_v24 }
 0x724   : > { %v4986_v7 = vpop.f32.mrf.mxu1 }
 0x725   : > { %v4987_v40 = vadd.f32 %v4986_v7, %v4958_v35 }
 0x727   : > { %v5000_v17 = vadd.f32 %v4987_v40, %v4876_v3 }
 0x729   : > { %5008 = vst.msk [vmem:[#allocation2 + $0x20] sm:$0xff] %vm2864_vm9, %v5000_v17 }
 0x72c   : > { %v4988_v60 = vpop.f32.mrf.mxu1 }
 0x72d   : > { %v4989_v10 = vadd.f32 %v4988_v60, %v4960_v47 }
 0x72f   : > { %v5001_v31 = vadd.f32 %v4989_v10, %v4877_v38 }
 0x731   : > { %5009 = vst.msk [vmem:[#allocation2 + $0x28] sm:$0xff] %vm2864_vm9, %v5001_v31 }
 0x734   : > { %v4991_v42 = vpop.f32.mrf.mxu1 }
 0x735   : > { %v4992_v36 = vadd.f32 %v4991_v42, %v4963_v5 }
 0x737   : > { %v5002_v23 = vadd.f32 %v4992_v36, %v4878_v18 }
 0x739   : > { %5010 = vst.msk [vmem:[#allocation2 + $0x30] sm:$0xff] %vm2864_vm9, %v5002_v23 }
 0x73c   : > { %v4993_v37 = vpop.f32.mrf.mxu1 }
 0x73d   : > { %v4994_v20 = vadd.f32 %v4993_v37, %v4965_v58  ;;  %5015 = sbr.rel (%p5944_p6) target bundleno = 2189 (0x88d), region = 112 }
 0x73f   : > { %v5003_v45 = vadd.f32 %v4994_v20, %v4879_v0 }
 0x741   : > { %5011 = vst.msk [vmem:[#allocation2 + $0x38] sm:$0xff] %vm2864_vm9, %v5003_v45 }
 0x742   : > { %v6033_v63 = vld [vmem:[%s9289_s28 + $0x8] sm:$0xff]  ;;  %v6032_v22 = vld [vmem:[%s9289_s28] sm:$0xff]  ;;  %v5022_v34 = vld [vmem:[#allocation2 + $0x10] sm:$0xff] }
 0x743   : > { %v6031_v15 = vld [vmem:[%s9290_s0 + $0x8] sm:$0xff]  ;;  %v5020_v28 = vld [vmem:[#allocation2] sm:$0xff]  ;;  %5066 = vmatpush.bf16.msra.mxu0 %v6033_v63  ;;  %6036 = vmatpush.bf16.msra.mxu3 %v6033_v63  ;;  %v5023_v19 = vld [vmem:[#allocation2 + $0x18] sm:$0xff] }
 0x744   : > { %v5021_v53 = vld [vmem:[#allocation2 + $0x8] sm:$0xff]  ;;  %6038 = vmatpush.bf16.msra.mxu1 %v6031_v15  ;;  %v6030_v55 = vld [vmem:[%s9290_s0] sm:$0xff]  ;;  %v5029_v41 = vpack.c.bf16 %v5023_v19, %v5022_v34  ;;  %v9291_v4 = vld [vmem:[#allocation6_spill] sm:$0xff] }
 0x745   : > { %v5028_v33 = vpack.c.bf16 %v5021_v53, %v5020_v28  ;;  %v5024_v48 = vld [vmem:[#allocation2 + $0x20] sm:$0xff]  ;;  %v5025_v27 = vld [vmem:[#allocation2 + $0x28] sm:$0xff]  ;;  %v9292_v51 = vld [vmem:[#allocation7_spill] sm:$0xff] }
 0x746   : > { %v5030_v2 = vpack.c.bf16 %v5025_v27, %v5024_v48  ;;  %v9293_v56 = vld [vmem:[#allocation5_spill] sm:$0xff]  ;;  %v5026_v9 = vld [vmem:[#allocation2 + $0x30] sm:$0xff]  ;;  %v9294_v6 = vld [vmem:[#allocation4_spill] sm:$0xff] }
 0x747   : > { %5067 = vmatpush.bf16.msra.mxu0 %v6032_v22  ;;  %6037 = vmatpush.bf16.msra.mxu3 %v6032_v22  ;;  %v6035_v1 = vld [vmem:[%s9295_s16 + $0x8] sm:$0xff]  ;;  %v6034_v61 = vld [vmem:[%s9295_s16] sm:$0xff] }
 0x748   : > { %6039 = vmatpush.bf16.msra.mxu1 %v6030_v55  ;;  %v5027_v46 = vld [vmem:[#allocation2 + $0x38] sm:$0xff]  ;;  %6040 = vmatpush.bf16.msra.mxu2 %v6035_v1  ;;  %v6068_v16 = vld [vmem:[%s9296_s1] ss:$0 sm:$0xff] }
 0x749   : > { %v5031_v39 = vpack.c.bf16 %v5027_v46, %v5026_v9  ;;  %v6069_v28 = vld [vmem:[%s9297_s20] ss:$0 sm:$0xff] }
 0x74a   : > { %5953 = vmatmul.msk.bf16.vlgmr.msra.gmra.mxu0 %vm2864_vm9, %v5028_v33  ;;  %5954 = vmatmul.msk.bf16.vlgmr.msra.gmra.mxu3 %vm2864_vm9, %v5029_v41 }
 0x74b   : > { %5119 = vmatpush.bf16.msrb.mxu0 %v6031_v15  ;;  %5966 = vmatmul.msk.bf16.vlgmr.msra.gmra.mxu1 %vm2864_vm9, %v9291_v4 }
 0x74c   : > { %6041 = vmatpush.bf16.msra.mxu2 %v6034_v61 }
 0x74f   : > { %5120 = vmatpush.bf16.msrb.mxu0 %v6030_v55 }
 0x753   : > { %5204 = vmatpush.bf16.msra.mxu0 %v6035_v1 }
 0x757   : > { %5205 = vmatpush.bf16.msra.mxu0 %v6034_v61 }
 0x75a   : > { %5955 = vmatmul.msk.bf16.gmra.mxu3 %vm2864_vm9, %v5030_v2  ;;  %5965 = vmatmul.msk.bf16.vlgmr.msrb.gmra.mxu0 %vm2864_vm9, %v9292_v51 }
 0x75b   : > { %5967 = vmatmul.msk.bf16.gmra.mxu1 %vm2864_vm9, %v9293_v56 }
 0x76a   : > { %5956 = vmatmul.msk.bf16.gmra.mxu3 %vm2864_vm9, %v5031_v39 }
 0x76b   : > { %5968 = vmatmul.msk.bf16.gmra.mxu1 %vm2864_vm9, %v9294_v6 }
 0x7c7   : > { %v5069_v57 = vpop.f32.mrf.mxu0 }
 0x7c8   : > { %v5127_v21 = vpop.f32.mrf.mxu1 }
 0x7cd   : > { %v5074_v29 = vpop.f32.mrf.mxu3 }
 0x7ce   : > { %v5128_v13 = vadd.f32 %v5127_v21, %v5074_v29 }
 0x7cf   : > { %v5071_v12 = vpop.f32.mrf.mxu0 }
 0x7d0   : > { %v5129_v8 = vpop.f32.mrf.mxu1  ;;  %v5148_v59 = vadd.f32 %v6068_v16, %v5128_v13 }
 0x7d2   : > { %v5156_v3 = vmax.f32 %v5148_v59, 0.0 }
 0x7d5   : > { %v5076_v52 = vpop.f32.mrf.mxu3 }
 0x7d6   : > { %v5130_v24 = vadd.f32 %v5129_v8, %v5076_v52 }
 0x7d7   : > { %v5122_v54 = vpop.f32.mrf.mxu0 }
 0x7d8   : > { %v5149_v43 = vadd.f32 %v6068_v16, %v5130_v24  ;;  %v5132_v35 = vpop.f32.mrf.mxu1  ;;  %v5123_v32 = vadd.f32 %v5122_v54, %v5069_v57 }
 0x7da   : > { %v5157_v7 = vmax.f32 %v5149_v43, 0.0  ;;  %v5146_v49 = vadd.f32 %v6068_v16, %v5123_v32 }
 0x7dc   : > { %v5163_v40 = vpack.c.bf16 %v5157_v7, %v5156_v3  ;;  %v5154_v38 = vmax.f32 %v5146_v49, 0.0 }
 0x7dd   : > { %v5079_v17 = vpop.f32.mrf.mxu3 }
 0x7de   : > { %5978 = vmatmul.msk.bf16.vlgmr.msra.gmra.mxu2 %vm2864_vm9, %v5163_v40  ;;  %v5133_v60 = vadd.f32 %v5132_v35, %v5079_v17 }
 0x7df   : > { %v5124_v44 = vpop.f32.mrf.mxu0 }
 0x7e0   : > { %v5125_v14 = vadd.f32 %v5124_v44, %v5071_v12  ;;  %v5134_v47 = vpop.f32.mrf.mxu1  ;;  %v5150_v31 = vadd.f32 %v6068_v16, %v5133_v60 }
 0x7e2   : > { %v5147_v10 = vadd.f32 %v6068_v16, %v5125_v14  ;;  %v5158_v42 = vmax.f32 %v5150_v31, 0.0 }
 0x7e4   : > { %v5155_v50 = vmax.f32 %v5147_v10, 0.0 }
 0x7e5   : > { %v5081_v30 = vpop.f32.mrf.mxu3 }
 0x7e6   : > { %v5162_v5 = vpack.c.bf16 %v5155_v50, %v5154_v38  ;;  %v5135_v25 = vadd.f32 %v5134_v47, %v5081_v30 }
 0x7e8   : > { %v5151_v18 = vadd.f32 %v6068_v16, %v5135_v25  ;;  %5977 = vmatmul.msk.bf16.vlgmr.msra.gmra.mxu0 %vm2864_vm9, %v5162_v5  ;;  %v5137_v36 = vpop.f32.mrf.mxu1 }
 0x7ea   : > { %v5159_v11 = vmax.f32 %v5151_v18, 0.0 }
 0x7ec   : > { %v5164_v23 = vpack.c.bf16 %v5159_v11, %v5158_v42 }
 0x7ed   : > { %v5084_v62 = vpop.f32.mrf.mxu3 }
 0x7ee   : > { %5979 = vmatmul.msk.bf16.gmra.mxu2 %vm2864_vm9, %v5164_v23  ;;  %v5138_v26 = vadd.f32 %v5137_v36, %v5084_v62 }
 0x7f0   : > { %v5139_v58 = vpop.f32.mrf.mxu1  ;;  %v5152_v37 = vadd.f32 %v6068_v16, %v5138_v26 }
 0x7f2   : > { %v5160_v63 = vmax.f32 %v5152_v37, 0.0 }
 0x7f5   : > { %v5086_v0 = vpop.f32.mrf.mxu3 }
 0x7f6   : > { %v5140_v20 = vadd.f32 %v5139_v58, %v5086_v0 }
 0x7f8   : > { %v5153_v45 = vadd.f32 %v6068_v16, %v5140_v20 }
 0x7fa   : > { %v5161_v15 = vmax.f32 %v5153_v45, 0.0 }
 0x7fc   : > { %v5165_v22 = vpack.c.bf16 %v5161_v15, %v5160_v63 }
 0x7fe   : > { %5980 = vmatmul.msk.bf16.gmra.mxu2 %vm2864_vm9, %v5165_v22 }
 0x861   : > { %v5212_v53 = vpop.f32.mrf.mxu2 }
 0x862   : > { %v5213_v34 = vadd.f32 %v6069_v28, %v5212_v53 }
 0x864   : > { %5229 = vst [vmem:[%s9298_s29 + $0x10] sm:$0xff] %v5213_v34 }
 0x865   : > { %v5207_v19 = vpop.f32.mrf.mxu0 }
 0x866   : > { %v5208_v55 = vadd.f32 %v6069_v28, %v5207_v19 }
 0x868   : > { %5227 = vst [vmem:[%s9298_s29] sm:$0xff] %v5208_v55 }
 0x869   : > { %v5214_v33 = vpop.f32.mrf.mxu2 }
 0x86a   : > { %v5215_v41 = vadd.f32 %v6069_v28, %v5214_v33 }
 0x86c   : > { %5230 = vst [vmem:[%s9298_s29 + $0x18] sm:$0xff] %v5215_v41 }
 0x86d   : > { %v5209_v4 = vpop.f32.mrf.mxu0 }
 0x86e   : > { %v5210_v48 = vadd.f32 %v6069_v28, %v5209_v4 }
 0x870   : > { %5228 = vst [vmem:[%s9298_s29 + $0x8] sm:$0xff] %v5210_v48 }
 0x871   : > { %v5217_v27 = vpop.f32.mrf.mxu2 }
 0x872   : > { %v5218_v2 = vadd.f32 %v6069_v28, %v5217_v27 }
 0x874   : > { %5231 = vst [vmem:[%s9298_s29 + $0x20] sm:$0xff] %v5218_v2 }
 0x879   : > { %v5219_v51 = vpop.f32.mrf.mxu2 }
 0x87a   : > { %v5220_v56 = vadd.f32 %v6069_v28, %v5219_v51 }
 0x87c   : > { %5232 = vst [vmem:[%s9298_s29 + $0x28] sm:$0xff] %v5220_v56 }
 0x881   : > { %v5222_v9 = vpop.f32.mrf.mxu2 }
 0x882   : > { %v5223_v46 = vadd.f32 %v6069_v28, %v5222_v9 }
 0x884   : > { %5233 = vst [vmem:[%s9298_s29 + $0x30] sm:$0xff] %v5223_v46 }
 0x889   : > { %v5224_v39 = vpop.f32.mrf.mxu2 }
 0x88a   : > { %v5225_v6 = vadd.f32 %v6069_v28, %v5224_v39 }
 0x88c   : > { %5234 = vst [vmem:[%s9298_s29 + $0x38] sm:$0xff] %v5225_v6 }
 0x88d PF: > { %s9299_s27 = sld [smem:[#allocation3_spill]] }
 0x893   : > { %s31_s2 = sadd.s32 1, %s9299_s27  }
 0x894   : > { %p28_p7 = scmp.ge.s32.totalorder %s31_s2, 4  }
 0x896   :  { %30 = sbr.rel (!%p28_p7) target bundleno = 13 (0xd), region = 147 }

</bundles_post_ra>
